<compile_context>
chip_gen: v5e
topology: v5e:2x2
jax: 0.10.0
libtpu: 0.0.40
codegen_flags: <defaults>
</compile_context>

<pallas_src>
import functools

import jax
import jax.numpy as jnp
from jax.experimental import pallas as pl
from jax.experimental.pallas import tpu as pltpu


def _round_up(x, m):
    return (x + m - 1) // m * m


# ----------------------------------------------------------------------------
# Fused BiGRU + running masked-max kernel (one grid step = one batch tile).
# ----------------------------------------------------------------------------
def _bigru_max_kernel(x_ref, mbias_ref, wih_ref, bgx_ref, whh_ref, bhn_ref,
                      yw_ref, y_ref, gx_scr, h_scr, mx_scr, *, unroll):
    T, Bt, E = x_ref.shape
    H = whh_ref.shape[1]                     # padded hidden size (multiple of 128)

    # ---- Phase 1: one fat input projection for BOTH directions. ------------
    x2 = x_ref[...].reshape(T * Bt, E)                                  # bf16
    gx = jnp.dot(x2, wih_ref[...], preferred_element_type=jnp.float32)
    gx = gx + bgx_ref[...]                                              # [T*Bt, 6H] f32
    gx_scr[...] = gx.reshape(T, Bt, 6 * H)

    # ---- Phase 2: serial recurrence, both directions per iteration. --------
    h_scr[...] = jnp.zeros_like(h_scr)
    mx_scr[...] = jnp.full(mx_scr.shape, -1e30, dtype=mx_scr.dtype)

    w_hh_f = whh_ref[0]                                                 # [H, 3H] bf16
    w_hh_b = whh_ref[1]
    # Hoisted bias broadcasts (JAX does not CSE broadcast_in_dim in the unrolled loop).
    b_hn_f = jnp.broadcast_to(bhn_ref[0], (Bt, H))                      # [Bt, H] f32
    b_hn_b = jnp.broadcast_to(bhn_ref[1], (Bt, H))

    def gru_cell(gx_t, h_prev, w_hh, b_hn):
        # Only the hidden-state projection stays on the serial critical path.
        gh = jnp.dot(h_prev.astype(w_hh.dtype), w_hh,
                     preferred_element_type=jnp.float32)                # [Bt, 3H]
        # PyTorch GRU gate order r, z, n; r/z biases pre-folded into gx.
        r = jax.nn.sigmoid(gx_t[:, 0:H] + gh[:, 0:H])
        z = jax.nn.sigmoid(gx_t[:, H:2 * H] + gh[:, H:2 * H])
        n = jnp.tanh(gx_t[:, 2 * H:3 * H] + r * (gh[:, 2 * H:3 * H] + b_hn))
        return (1.0 - z) * n + z * h_prev

    @pl.loop(0, T, unroll=unroll)
    def _(t):
        rt = T - 1 - t
        gx_f = gx_scr[t, :, 0:3 * H]                                    # [Bt, 3H]
        gx_b = gx_scr[rt, :, 3 * H:6 * H]

        h_f = gru_cell(gx_f, h_scr[0], w_hh_f, b_hn_f)                  # fwd @ t
        h_b = gru_cell(gx_b, h_scr[1], w_hh_b, b_hn_b)                  # bwd @ rt
        h_scr[0] = h_f
        h_scr[1] = h_b

        # Time-major, full-sublane, lane-aligned stores (no masked vst).
        yw_ref[t, :, 0:H] = h_f.astype(yw_ref.dtype)
        yw_ref[rt, :, H:2 * H] = h_b.astype(yw_ref.dtype)

        # Fused running masked max (output_type='max'): additive -1e30 bias on pads.
        mx_scr[0] = jnp.maximum(mx_scr[0], h_f + mbias_ref[t])
        mx_scr[1] = jnp.maximum(mx_scr[1], h_b + mbias_ref[rt])

    # ---- Phase 3: emit y (guard all-padding rows -> 0, e.g. batch-pad rows). ----
    y = jnp.concatenate([mx_scr[0], mx_scr[1]], axis=-1)                # [Bt, 2H]
    y = jnp.where(y > -1e20, y, 0.0)
    y_ref[...] = y[:, None, :].astype(y_ref.dtype)


def bigru_max(x_tm, mbias, w_ih_cat, b_gx_cat, w_hh, b_hn, *, b_tile=8,
              out_dtype=jnp.float32):
    """x_tm: [T, B_pad, E_pad] bf16 time-major embeddings.
    mbias: [T, B_pad, 1] f32 additive mask (0 valid / -1e30 pad).
    w_ih_cat: [E_pad, 6H_pad] bf16 (both directions), b_gx_cat: [1, 6H_pad] f32,
    w_hh: [2, H_pad, 3H_pad] bf16, b_hn: [2, 1, H_pad] f32.
    Returns (y_word_tm [T, B_pad, 2H_pad], y [B_pad, 1, 2H_pad])."""
    T, B_pad, E_pad = x_tm.shape
    H_pad = w_hh.shape[1]
    assert B_pad % b_tile == 0
    n_b = B_pad // b_tile
    unroll = T <= 32                         # full unroll only for short sequences
    out_sz = jnp.dtype(out_dtype).itemsize

    # VMEM budget estimate (double-buffered gridded operands + weights + scratch).
    est = (2 * T * b_tile * E_pad * 2                      # x block (bf16)
           + 2 * T * b_tile * 4                            # mbias block
           + E_pad * 6 * H_pad * 2 + 6 * H_pad * 4         # w_ih_cat + b_gx_cat
           + 2 * H_pad * 3 * H_pad * 2 + 2 * H_pad * 4     # w_hh + b_hn
           + 2 * T * b_tile * 2 * H_pad * out_sz           # y_word block
           + 2 * b_tile * 2 * H_pad * out_sz               # y block
           + T * b_tile * 6 * H_pad * 4                    # gx scratch
           + 4 * b_tile * H_pad * 4)                       # h + mx scratch
    vmem_limit = int(min(max(3 * est, 8 << 20), 64 << 20))

    grid_spec = pltpu.PrefetchScalarGridSpec(
        num_scalar_prefetch=0,
        grid=(n_b,),
        in_specs=[
            pl.BlockSpec((T, b_tile, E_pad), lambda b: (0, b, 0)),       # x_tm
            pl.BlockSpec((T, b_tile, 1), lambda b: (0, b, 0)),           # mbias
            pl.BlockSpec((E_pad, 6 * H_pad), lambda b: (0, 0)),          # w_ih_cat
            pl.BlockSpec((1, 6 * H_pad), lambda b: (0, 0)),              # b_gx_cat
            pl.BlockSpec((2, H_pad, 3 * H_pad), lambda b: (0, 0, 0)),    # w_hh
            pl.BlockSpec((2, 1, H_pad), lambda b: (0, 0, 0)),            # b_hn
        ],
        out_specs=[
            pl.BlockSpec((T, b_tile, 2 * H_pad), lambda b: (0, b, 0)),   # y_word (time-major)
            pl.BlockSpec((b_tile, 1, 2 * H_pad), lambda b: (b, 0, 0)),   # y
        ],
        scratch_shapes=[
            pltpu.VMEM((T, b_tile, 6 * H_pad), jnp.float32),             # gx (both dirs)
            pltpu.VMEM((2, b_tile, H_pad), jnp.float32),                 # fwd/bwd hidden
            pltpu.VMEM((2, b_tile, H_pad), jnp.float32),                 # running max
        ],
    )
    return pl.pallas_call(
        functools.partial(_bigru_max_kernel, unroll=unroll),
        out_shape=(jax.ShapeDtypeStruct((T, B_pad, 2 * H_pad), out_dtype),
                   jax.ShapeDtypeStruct((B_pad, 1, 2 * H_pad), out_dtype)),
        grid_spec=grid_spec,
        compiler_params=pltpu.CompilerParams(
            dimension_semantics=("parallel",),           # batch tiles -> both v7x TCs
            vmem_limit_bytes=vmem_limit),
    )(x_tm, mbias, w_ih_cat, b_gx_cat, w_hh, b_hn)


# ----------------------------------------------------------------------------
# Full module forward (output_type == 'max').
# ----------------------------------------------------------------------------
@functools.partial(jax.jit, static_argnames=("b_tile",))
def lstm_forward(ref_expr_inds, word_emb, w_ih, w_hh, b_ih, b_hh, b_tile=8):
    # NOTE: b_tile=8 fits the demo; use >=128 in production for MXU-friendly M.
    B, T = ref_expr_inds.shape
    E = word_emb.shape[-1]
    H = w_hh.shape[1]
    E_pad = _round_up(E, 128)
    H_pad = _round_up(H, 128)
    B_pad = _round_up(B, b_tile)

    # y_mask: True = padding / ignored.
    y_mask = jnp.abs(ref_expr_inds) == 0                                 # [B, T] bool

    # Time-major ids; padded batch rows use pad-token 0 (all-invalid).
    ids_tm = jnp.transpose(ref_expr_inds, (1, 0))                        # [T, B]
    ids_tm = jnp.pad(ids_tm, ((0, 0), (0, B_pad - B)))
    valid_tm = jnp.abs(ids_tm) != 0                                      # [T, B_pad]

    # Embedding gather directly in time-major order; pad E with zeros.
    # TODO(synk): fuse the row gather into the kernel via scalar-prefetched ids +
    # pl.Element BlockSpec instead of an XLA gather.
    emb = jnp.pad(word_emb, ((0, 0), (0, E_pad - E)))
    x_tm = jnp.take(emb, ids_tm, axis=0).astype(jnp.bfloat16)            # [T, B_pad, E_pad]

    # Additive mask bias for the fused running max.
    mbias = jnp.where(valid_tm, 0.0, -1e30).astype(jnp.float32)[:, :, None]

    # ---- Parameter prep: gate-block-aware padding, bias folding, direction merge. ----
    def pad_gates(w):
        # [..., 3H] -> [..., 3*H_pad] with zeros inside each gate block (r|z|n layout kept).
        shp = w.shape
        w4 = w.reshape(shp[:-1] + (3, H))
        w4 = jnp.pad(w4, [(0, 0)] * (w4.ndim - 1) + [(0, H_pad - H)])
        return w4.reshape(shp[:-1] + (3 * H_pad,))

    w_ih_p = jnp.pad(pad_gates(w_ih), ((0, 0), (0, E_pad - E), (0, 0)))  # [2, E_pad, 3H_pad]
    w_hh_p = jnp.pad(pad_gates(w_hh), ((0, 0), (0, H_pad - H), (0, 0)))  # [2, H_pad, 3H_pad]

    # Pre-fold r/z biases into the gx pass; keep b_hn separate for the n gate.
    b_gx = jnp.concatenate([b_ih[:, :, :2 * H] + b_hh[:, :, :2 * H],
                            b_ih[:, :, 2 * H:]], axis=-1)                # [2, 1, 3H]
    b_gx_p = pad_gates(b_gx)                                             # [2, 1, 3H_pad]
    b_hn_p = jnp.pad(b_hh[:, :, 2 * H:], ((0, 0), (0, 0), (0, H_pad - H)))

    w_ih_cat = jnp.concatenate([w_ih_p[0], w_ih_p[1]], axis=-1).astype(jnp.bfloat16)
    b_gx_cat = jnp.concatenate([b_gx_p[0], b_gx_p[1]], axis=-1)          # [1, 6H_pad]
    w_hh_bf = w_hh_p.astype(jnp.bfloat16)

    yw_tm, y_pad = bigru_max(x_tm, mbias, w_ih_cat, b_gx_cat, w_hh_bf, b_hn_p,
                             b_tile=b_tile)

    # Un-pad lanes (fwd half then bwd half) + one layout fix (time-major -> batch-first).
    y_word = jnp.concatenate([yw_tm[:, :B, :H], yw_tm[:, :B, H_pad:H_pad + H]], axis=-1)
    y_word = jnp.transpose(y_word, (1, 0, 2))                            # [B, T, 2H]
    y = jnp.concatenate([y_pad[:B, :, :H], y_pad[:B, :, H_pad:H_pad + H]], axis=-1)
    return y, y_word, y_mask


# ----------------------------------------------------------------------------
# Pure-JAX reference (PyTorch nn.GRU semantics) for a tolerance check.
# ----------------------------------------------------------------------------
def _ref_forward(ids, word_emb, w_ih, w_hh, b_ih, b_hh):
    B, T = ids.shape
    H = w_hh.shape[1]
    y_mask = jnp.abs(ids) == 0
    x = word_emb[ids]                                                    # [B, T, E]

    def cell(h, xt, d):
        gx = xt @ w_ih[d] + b_ih[d][0]
        gh = h @ w_hh[d] + b_hh[d][0]
        r = jax.nn.sigmoid(gx[:, :H] + gh[:, :H])
        z = jax.nn.sigmoid(gx[:, H:2 * H] + gh[:, H:2 * H])
        n = jnp.tanh(gx[:, 2 * H:] + r * gh[:, 2 * H:])
        return (1.0 - z) * n + z * h

    h = jnp.zeros((B, H), jnp.float32)
    fwd = []
    for t in range(T):
        h = cell(h, x[:, t], 0)
        fwd.append(h)
    h = jnp.zeros((B, H), jnp.float32)
    bwd = [None] * T
    for t in range(T - 1, -1, -1):
        h = cell(h, x[:, t], 1)
        bwd[t] = h
    y_word = jnp.concatenate([jnp.stack(fwd, 1), jnp.stack(bwd, 1)], axis=-1)
    masked = jnp.where((~y_mask)[:, :, None], y_word, -jnp.inf)
    y = jnp.max(masked, axis=1, keepdims=True)
    return y, y_word, y_mask


if __name__ == "__main__":
    # Small, forward-consistent shapes (reference uses H=512; demo uses 32).
    B, T = 2, 8           # batch, max_token
    V = 20                # vocabulary size
    E = 32                # word embedding dim
    H = 32                # GRU hidden size

    key = jax.random.PRNGKey(0)
    k_emb, k_wih, k_whh, k_bih, k_bhh, k_ids = jax.random.split(key, 6)

    scale = 1.0 / jnp.sqrt(jnp.float32(H))
    word_emb = jax.random.normal(k_emb, (V, E), dtype=jnp.float32)
    w_ih = jax.random.uniform(k_wih, (2, E, 3 * H), jnp.float32, -scale, scale)
    w_hh = jax.random.uniform(k_whh, (2, H, 3 * H), jnp.float32, -scale, scale)
    b_ih = jax.random.uniform(k_bih, (2, 1, 3 * H), jnp.float32, -scale, scale)
    b_hh = jax.random.uniform(k_bhh, (2, 1, 3 * H), jnp.float32, -scale, scale)

    # Token ids: non-zero valid tokens, trailing zeros are padding.
    ids = jax.random.randint(k_ids, (B, T), 1, V, dtype=jnp.int32)
    ids = ids.at[0, 6:].set(0)   # row 0: 6 valid tokens
    ids = ids.at[1, 4:].set(0)   # row 1: 4 valid tokens

    y, y_word, y_mask = lstm_forward(ids, word_emb, w_ih, w_hh, b_ih, b_hh)
    jax.block_until_ready((y, y_word, y_mask))

    assert y.shape == (B, 1, 2 * H)
    assert y_word.shape == (B, T, 2 * H)
    assert y_mask.shape == (B, T) and y_mask.dtype == jnp.bool_
    assert bool(jnp.all(jnp.isfinite(y)))
    assert bool(jnp.all(jnp.isfinite(y_word)))

    # Tolerance check vs. pure-JAX f32 reference (bf16 MXU inputs -> small drift).
    y_r, y_word_r, y_mask_r = _ref_forward(ids, word_emb, w_ih, w_hh, b_ih, b_hh)
    assert bool(jnp.all(y_mask == y_mask_r))
    assert bool(jnp.allclose(y_word, y_word_r, atol=5e-2, rtol=0))
    assert bool(jnp.allclose(y, y_r, atol=5e-2, rtol=0))

    print("KERNEL_OK")
</pallas_src>

<mosaic_0001>
module attributes {stable_mosaic.version = 11 : i64} {
  func.func @_bigru_max_kernel(%arg0: i32, %arg1: memref<8x8x128xbf16, #tpu.memory_space<vmem>>, %arg2: memref<8x8x1xf32, #tpu.memory_space<vmem>>, %arg3: memref<128x768xbf16, #tpu.memory_space<vmem>>, %arg4: memref<1x768xf32, #tpu.memory_space<vmem>>, %arg5: memref<2x128x384xbf16, #tpu.memory_space<vmem>>, %arg6: memref<2x1x128xf32, #tpu.memory_space<vmem>>, %arg7: memref<8x8x256xf32, #tpu.memory_space<vmem>>, %arg8: memref<8x1x256xf32, #tpu.memory_space<vmem>>, %arg9: memref<8x8x768xf32, #tpu.memory_space<vmem>>, %arg10: memref<2x8x128xf32, #tpu.memory_space<vmem>>, %arg11: memref<2x8x128xf32, #tpu.memory_space<vmem>>) attributes {dimension_semantics = [#tpu.dimension_semantics<parallel>], iteration_bounds = array<i64: 1>, scalar_prefetch = 0 : i64, scratch_operands = 3 : i64, tpu.core_type = #tpu.core_type<tc>, window_params = [{transform_indices = @transform_0, window_bounds = array<i64: 8, 8, 128>}, {transform_indices = @transform_1, window_bounds = array<i64: 8, 8, 1>}, {pipeline_mode = #tpu.pipeline_mode<synchronous>, transform_indices = @transform_2, window_bounds = array<i64: 128, 768>}, {pipeline_mode = #tpu.pipeline_mode<synchronous>, transform_indices = @transform_3, window_bounds = array<i64: 1, 768>}, {pipeline_mode = #tpu.pipeline_mode<synchronous>, transform_indices = @transform_4, window_bounds = array<i64: 2, 128, 384>}, {pipeline_mode = #tpu.pipeline_mode<synchronous>, transform_indices = @transform_5, window_bounds = array<i64: 2, 1, 128>}, {transform_indices = @transform_6, window_bounds = array<i64: 8, 8, 256>}, {transform_indices = @transform_7, window_bounds = array<i64: 8, 1, 256>}]} {
    %c0 = arith.constant 0 : index
    %c0_0 = arith.constant 0 : index
    %c0_1 = arith.constant 0 : index
    %0 = vector.load %arg1[%c0, %c0_0, %c0_1] : memref<8x8x128xbf16, #tpu.memory_space<vmem>>, vector<8x8x128xbf16>
    %1 = vector.shape_cast %0 : vector<8x8x128xbf16> to vector<64x128xbf16>
    %c0_2 = arith.constant 0 : index
    %c0_3 = arith.constant 0 : index
    %2 = vector.load %arg3[%c0_2, %c0_3] : memref<128x768xbf16, #tpu.memory_space<vmem>>, vector<128x768xbf16>
    %cst = arith.constant dense<0.000000e+00> : vector<64x768xf32>
    %3 = tpu.matmul %1, %2, %cst {dimension_numbers = #tpu.dot_dimension_numbers<[1], [0], [0], [1], [0, 0, 1, 1], [], []>} : vector<64x128xbf16>, vector<128x768xbf16>, vector<64x768xf32> -> vector<64x768xf32>
    %c0_4 = arith.constant 0 : index
    %c0_5 = arith.constant 0 : index
    %4 = vector.load %arg4[%c0_4, %c0_5] : memref<1x768xf32, #tpu.memory_space<vmem>>, vector<1x768xf32>
    %5 = vector.broadcast %4 : vector<1x768xf32> to vector<64x768xf32>
    %6 = arith.addf %3, %5 : vector<64x768xf32>
    %7 = vector.shape_cast %6 : vector<64x768xf32> to vector<8x8x768xf32>
    %c0_6 = arith.constant 0 : index
    %c0_7 = arith.constant 0 : index
    %c0_8 = arith.constant 0 : index
    %8 = vector.load %arg9[%c0_6, %c0_7, %c0_8] : memref<8x8x768xf32, #tpu.memory_space<vmem>>, vector<8x8x768xf32>
    tpu.vector_store %arg9[%c0_6, %c0_7, %c0_8], %7 {strides = array<i32>} : memref<8x8x768xf32, #tpu.memory_space<vmem>>, vector<8x8x768xf32>,
    %cst_9 = arith.constant 0.000000e+00 : f32
    %9 = vector.broadcast %cst_9 : f32 to vector<2x8x128xf32>
    %c0_10 = arith.constant 0 : index
    %c0_11 = arith.constant 0 : index
    %c0_12 = arith.constant 0 : index
    %10 = vector.load %arg10[%c0_10, %c0_11, %c0_12] : memref<2x8x128xf32, #tpu.memory_space<vmem>>, vector<2x8x128xf32>
    tpu.vector_store %arg10[%c0_10, %c0_11, %c0_12], %9 {strides = array<i32>} : memref<2x8x128xf32, #tpu.memory_space<vmem>>, vector<2x8x128xf32>,
    %cst_13 = arith.constant -1.000000e+30 : f32
    %11 = vector.broadcast %cst_13 : f32 to vector<2x8x128xf32>
    %c0_14 = arith.constant 0 : index
    %c0_15 = arith.constant 0 : index
    %c0_16 = arith.constant 0 : index
    %12 = vector.load %arg11[%c0_14, %c0_15, %c0_16] : memref<2x8x128xf32, #tpu.memory_space<vmem>>, vector<2x8x128xf32>
    tpu.vector_store %arg11[%c0_14, %c0_15, %c0_16], %11 {strides = array<i32>} : memref<2x8x128xf32, #tpu.memory_space<vmem>>, vector<2x8x128xf32>,
    %c0_17 = arith.constant 0 : index
    %c0_18 = arith.constant 0 : index
    %c0_19 = arith.constant 0 : index
    %13 = vector.load %arg5[%c0_17, %c0_18, %c0_19] : memref<2x128x384xbf16, #tpu.memory_space<vmem>>, vector<1x128x384xbf16>
    %14 = vector.shape_cast %13 : vector<1x128x384xbf16> to vector<128x384xbf16>
    %c1 = arith.constant 1 : index
    %c0_20 = arith.constant 0 : index
    %c0_21 = arith.constant 0 : index
    %15 = vector.load %arg5[%c1, %c0_20, %c0_21] : memref<2x128x384xbf16, #tpu.memory_space<vmem>>, vector<1x128x384xbf16>
    %16 = vector.shape_cast %15 : vector<1x128x384xbf16> to vector<128x384xbf16>
    %c0_22 = arith.constant 0 : index
    %c0_23 = arith.constant 0 : index
    %c0_24 = arith.constant 0 : index
    %17 = vector.load %arg6[%c0_22, %c0_23, %c0_24] : memref<2x1x128xf32, #tpu.memory_space<vmem>>, vector<1x1x128xf32>
    %18 = vector.shape_cast %17 : vector<1x1x128xf32> to vector<1x128xf32>
    %19 = vector.shape_cast %18 : vector<1x128xf32> to vector<1x128xf32>
    %20 = vector.broadcast %19 : vector<1x128xf32> to vector<8x128xf32>
    %c1_25 = arith.constant 1 : index
    %c0_26 = arith.constant 0 : index
    %c0_27 = arith.constant 0 : index
    %21 = vector.load %arg6[%c1_25, %c0_26, %c0_27] : memref<2x1x128xf32, #tpu.memory_space<vmem>>, vector<1x1x128xf32>
    %22 = vector.shape_cast %21 : vector<1x1x128xf32> to vector<1x128xf32>
    %23 = vector.shape_cast %22 : vector<1x128xf32> to vector<1x128xf32>
    %24 = vector.broadcast %23 : vector<1x128xf32> to vector<8x128xf32>
    %c0_i32 = arith.constant 0 : i32
    %c1_i32 = arith.constant 1 : i32
    %25 = arith.muli %c0_i32, %c1_i32 : i32
    %c0_i32_28 = arith.constant 0 : i32
    %26 = arith.addi %c0_i32_28, %25 : i32
    %c7_i32 = arith.constant 7 : i32
    %27 = arith.subi %c7_i32, %26 : i32
    %28 = arith.index_cast %26 : i32 to index
    %c0_29 = arith.constant 0 : index
    %c0_30 = arith.constant 0 : index
    %29 = vector.load %arg9[%28, %c0_29, %c0_30] : memref<8x8x768xf32, #tpu.memory_space<vmem>>, vector<1x8x384xf32>
    %30 = vector.shape_cast %29 : vector<1x8x384xf32> to vector<8x384xf32>
    %31 = arith.index_cast %27 : i32 to index
    %c0_31 = arith.constant 0 : index
    %c384 = arith.constant 384 : index
    %32 = vector.load %arg9[%31, %c0_31, %c384] : memref<8x8x768xf32, #tpu.memory_space<vmem>>, vector<1x8x384xf32>
    %33 = vector.shape_cast %32 : vector<1x8x384xf32> to vector<8x384xf32>
    %c0_32 = arith.constant 0 : index
    %c0_33 = arith.constant 0 : index
    %c0_34 = arith.constant 0 : index
    %34 = vector.load %arg10[%c0_32, %c0_33, %c0_34] : memref<2x8x128xf32, #tpu.memory_space<vmem>>, vector<1x8x128xf32>
    %35 = vector.shape_cast %34 : vector<1x8x128xf32> to vector<8x128xf32>
    %36 = arith.truncf %35 : vector<8x128xf32> to vector<8x128xbf16>
    %cst_35 = arith.constant dense<0.000000e+00> : vector<8x384xf32>
    %37 = tpu.matmul %36, %14, %cst_35 {dimension_numbers = #tpu.dot_dimension_numbers<[1], [0], [0], [1], [0, 0, 1, 1], [], []>} : vector<8x128xbf16>, vector<128x384xbf16>, vector<8x384xf32> -> vector<8x384xf32>
    %38 = vector.extract_strided_slice %30 {offsets = [0, 0], sizes = [8, 128], strides = [1, 1]} : vector<8x384xf32> to vector<8x128xf32>
    %39 = vector.extract_strided_slice %37 {offsets = [0, 0], sizes = [8, 128], strides = [1, 1]} : vector<8x384xf32> to vector<8x128xf32>
    %40 = arith.addf %38, %39 : vector<8x128xf32>
    %41 = arith.negf %40 : vector<8x128xf32>
    %42 = math.exp %41 : vector<8x128xf32>
    %cst_36 = arith.constant 1.000000e+00 : f32
    %43 = vector.broadcast %cst_36 : f32 to vector<8x128xf32>
    %44 = arith.addf %43, %42 : vector<8x128xf32>
    %45 = arith.divf %43, %44 : vector<8x128xf32>
    %46 = vector.extract_strided_slice %30 {offsets = [0, 128], sizes = [8, 128], strides = [1, 1]} : vector<8x384xf32> to vector<8x128xf32>
    %47 = vector.extract_strided_slice %37 {offsets = [0, 128], sizes = [8, 128], strides = [1, 1]} : vector<8x384xf32> to vector<8x128xf32>
    %48 = arith.addf %46, %47 : vector<8x128xf32>
    %49 = arith.negf %48 : vector<8x128xf32>
    %50 = math.exp %49 : vector<8x128xf32>
    %cst_37 = arith.constant 1.000000e+00 : f32
    %51 = vector.broadcast %cst_37 : f32 to vector<8x128xf32>
    %52 = arith.addf %51, %50 : vector<8x128xf32>
    %53 = arith.divf %51, %52 : vector<8x128xf32>
    %54 = vector.extract_strided_slice %30 {offsets = [0, 256], sizes = [8, 128], strides = [1, 1]} : vector<8x384xf32> to vector<8x128xf32>
    %55 = vector.extract_strided_slice %37 {offsets = [0, 256], sizes = [8, 128], strides = [1, 1]} : vector<8x384xf32> to vector<8x128xf32>
    %56 = arith.addf %55, %20 : vector<8x128xf32>
    %57 = arith.mulf %45, %56 : vector<8x128xf32>
    %58 = arith.addf %54, %57 : vector<8x128xf32>
    %59 = math.tanh %58 : vector<8x128xf32>
    %cst_38 = arith.constant 1.000000e+00 : f32
    %60 = vector.broadcast %cst_38 : f32 to vector<8x128xf32>
    %61 = arith.subf %60, %53 : vector<8x128xf32>
    %62 = arith.mulf %61, %59 : vector<8x128xf32>
    %63 = arith.mulf %53, %35 : vector<8x128xf32>
    %64 = arith.addf %62, %63 : vector<8x128xf32>
    %c1_39 = arith.constant 1 : index
    %c0_40 = arith.constant 0 : index
    %c0_41 = arith.constant 0 : index
    %65 = vector.load %arg10[%c1_39, %c0_40, %c0_41] : memref<2x8x128xf32, #tpu.memory_space<vmem>>, vector<1x8x128xf32>
    %66 = vector.shape_cast %65 : vector<1x8x128xf32> to vector<8x128xf32>
    %67 = arith.truncf %66 : vector<8x128xf32> to vector<8x128xbf16>
    %cst_42 = arith.constant dense<0.000000e+00> : vector<8x384xf32>
    %68 = tpu.matmul %67, %16, %cst_42 {dimension_numbers = #tpu.dot_dimension_numbers<[1], [0], [0], [1], [0, 0, 1, 1], [], []>} : vector<8x128xbf16>, vector<128x384xbf16>, vector<8x384xf32> -> vector<8x384xf32>
    %69 = vector.extract_strided_slice %33 {offsets = [0, 0], sizes = [8, 128], strides = [1, 1]} : vector<8x384xf32> to vector<8x128xf32>
    %70 = vector.extract_strided_slice %68 {offsets = [0, 0], sizes = [8, 128], strides = [1, 1]} : vector<8x384xf32> to vector<8x128xf32>
    %71 = arith.addf %69, %70 : vector<8x128xf32>
    %72 = arith.negf %71 : vector<8x128xf32>
    %73 = math.exp %72 : vector<8x128xf32>
    %cst_43 = arith.constant 1.000000e+00 : f32
    %74 = vector.broadcast %cst_43 : f32 to vector<8x128xf32>
    %75 = arith.addf %74, %73 : vector<8x128xf32>
    %76 = arith.divf %74, %75 : vector<8x128xf32>
    %77 = vector.extract_strided_slice %33 {offsets = [0, 128], sizes = [8, 128], strides = [1, 1]} : vector<8x384xf32> to vector<8x128xf32>
    %78 = vector.extract_strided_slice %68 {offsets = [0, 128], sizes = [8, 128], strides = [1, 1]} : vector<8x384xf32> to vector<8x128xf32>
    %79 = arith.addf %77, %78 : vector<8x128xf32>
    %80 = arith.negf %79 : vector<8x128xf32>
    %81 = math.exp %80 : vector<8x128xf32>
    %cst_44 = arith.constant 1.000000e+00 : f32
    %82 = vector.broadcast %cst_44 : f32 to vector<8x128xf32>
    %83 = arith.addf %82, %81 : vector<8x128xf32>
    %84 = arith.divf %82, %83 : vector<8x128xf32>
    %85 = vector.extract_strided_slice %33 {offsets = [0, 256], sizes = [8, 128], strides = [1, 1]} : vector<8x384xf32> to vector<8x128xf32>
    %86 = vector.extract_strided_slice %68 {offsets = [0, 256], sizes = [8, 128], strides = [1, 1]} : vector<8x384xf32> to vector<8x128xf32>
    %87 = arith.addf %86, %24 : vector<8x128xf32>
    %88 = arith.mulf %76, %87 : vector<8x128xf32>
    %89 = arith.addf %85, %88 : vector<8x128xf32>
    %90 = math.tanh %89 : vector<8x128xf32>
    %cst_45 = arith.constant 1.000000e+00 : f32
    %91 = vector.broadcast %cst_45 : f32 to vector<8x128xf32>
    %92 = arith.subf %91, %84 : vector<8x128xf32>
    %93 = arith.mulf %92, %90 : vector<8x128xf32>
    %94 = arith.mulf %84, %66 : vector<8x128xf32>
    %95 = arith.addf %93, %94 : vector<8x128xf32>
    %c0_46 = arith.constant 0 : index
    %c0_47 = arith.constant 0 : index
    %c0_48 = arith.constant 0 : index
    %96 = vector.load %arg10[%c0_46, %c0_47, %c0_48] : memref<2x8x128xf32, #tpu.memory_space<vmem>>, vector<1x8x128xf32>
    %97 = vector.shape_cast %96 : vector<1x8x128xf32> to vector<8x128xf32>
    %98 = vector.shape_cast %64 : vector<8x128xf32> to vector<1x8x128xf32>
    tpu.vector_store %arg10[%c0_46, %c0_47, %c0_48], %98 {strides = array<i32>} : memref<2x8x128xf32, #tpu.memory_space<vmem>>, vector<1x8x128xf32>,
    %c1_49 = arith.constant 1 : index
    %c0_50 = arith.constant 0 : index
    %c0_51 = arith.constant 0 : index
    %99 = vector.load %arg10[%c1_49, %c0_50, %c0_51] : memref<2x8x128xf32, #tpu.memory_space<vmem>>, vector<1x8x128xf32>
    %100 = vector.shape_cast %99 : vector<1x8x128xf32> to vector<8x128xf32>
    %101 = vector.shape_cast %95 : vector<8x128xf32> to vector<1x8x128xf32>
    tpu.vector_store %arg10[%c1_49, %c0_50, %c0_51], %101 {strides = array<i32>} : memref<2x8x128xf32, #tpu.memory_space<vmem>>, vector<1x8x128xf32>,
    %102 = arith.index_cast %26 : i32 to index
    %c0_52 = arith.constant 0 : index
    %c0_53 = arith.constant 0 : index
    %103 = vector.load %arg7[%102, %c0_52, %c0_53] : memref<8x8x256xf32, #tpu.memory_space<vmem>>, vector<1x8x128xf32>
    %104 = vector.shape_cast %103 : vector<1x8x128xf32> to vector<8x128xf32>
    %105 = vector.shape_cast %64 : vector<8x128xf32> to vector<1x8x128xf32>
    tpu.vector_store %arg7[%102, %c0_52, %c0_53], %105 {strides = array<i32>} : memref<8x8x256xf32, #tpu.memory_space<vmem>>, vector<1x8x128xf32>,
    %106 = arith.index_cast %27 : i32 to index
    %c0_54 = arith.constant 0 : index
    %c128 = arith.constant 128 : index
    %107 = vector.load %arg7[%106, %c0_54, %c128] : memref<8x8x256xf32, #tpu.memory_space<vmem>>, vector<1x8x128xf32>
    %108 = vector.shape_cast %107 : vector<1x8x128xf32> to vector<8x128xf32>
    %109 = vector.shape_cast %95 : vector<8x128xf32> to vector<1x8x128xf32>
    tpu.vector_store %arg7[%106, %c0_54, %c128], %109 {strides = array<i32>} : memref<8x8x256xf32, #tpu.memory_space<vmem>>, vector<1x8x128xf32>,
    %c0_55 = arith.constant 0 : index
    %c0_56 = arith.constant 0 : index
    %c0_57 = arith.constant 0 : index
    %110 = vector.load %arg11[%c0_55, %c0_56, %c0_57] : memref<2x8x128xf32, #tpu.memory_space<vmem>>, vector<1x8x128xf32>
    %111 = vector.shape_cast %110 : vector<1x8x128xf32> to vector<8x128xf32>
    %112 = arith.index_cast %26 : i32 to index
    %c0_58 = arith.constant 0 : index
    %c0_59 = arith.constant 0 : index
    %113 = vector.load %arg2[%112, %c0_58, %c0_59] : memref<8x8x1xf32, #tpu.memory_space<vmem>>, vector<1x8x1xf32>
    %114 = vector.shape_cast %113 : vector<1x8x1xf32> to vector<8x1xf32>
    %115 = vector.broadcast %114 : vector<8x1xf32> to vector<8x128xf32>
    %116 = arith.addf %64, %115 : vector<8x128xf32>
    %117 = arith.maximumf %111, %116 : vector<8x128xf32>
    %c0_60 = arith.constant 0 : index
    %c0_61 = arith.constant 0 : index
    %c0_62 = arith.constant 0 : index
    %118 = vector.load %arg11[%c0_60, %c0_61, %c0_62] : memref<2x8x128xf32, #tpu.memory_space<vmem>>, vector<1x8x128xf32>
    %119 = vector.shape_cast %118 : vector<1x8x128xf32> to vector<8x128xf32>
    %120 = vector.shape_cast %117 : vector<8x128xf32> to vector<1x8x128xf32>
    tpu.vector_store %arg11[%c0_60, %c0_61, %c0_62], %120 {strides = array<i32>} : memref<2x8x128xf32, #tpu.memory_space<vmem>>, vector<1x8x128xf32>,
    %c1_63 = arith.constant 1 : index
    %c0_64 = arith.constant 0 : index
    %c0_65 = arith.constant 0 : index
    %121 = vector.load %arg11[%c1_63, %c0_64, %c0_65] : memref<2x8x128xf32, #tpu.memory_space<vmem>>, vector<1x8x128xf32>
    %122 = vector.shape_cast %121 : vector<1x8x128xf32> to vector<8x128xf32>
    %123 = arith.index_cast %27 : i32 to index
    %c0_66 = arith.constant 0 : index
    %c0_67 = arith.constant 0 : index
    %124 = vector.load %arg2[%123, %c0_66, %c0_67] : memref<8x8x1xf32, #tpu.memory_space<vmem>>, vector<1x8x1xf32>
    %125 = vector.shape_cast %124 : vector<1x8x1xf32> to vector<8x1xf32>
    %126 = vector.broadcast %125 : vector<8x1xf32> to vector<8x128xf32>
    %127 = arith.addf %95, %126 : vector<8x128xf32>
    %128 = arith.maximumf %122, %127 : vector<8x128xf32>
    %c1_68 = arith.constant 1 : index
    %c0_69 = arith.constant 0 : index
    %c0_70 = arith.constant 0 : index
    %129 = vector.load %arg11[%c1_68, %c0_69, %c0_70] : memref<2x8x128xf32, #tpu.memory_space<vmem>>, vector<1x8x128xf32>
    %130 = vector.shape_cast %129 : vector<1x8x128xf32> to vector<8x128xf32>
    %131 = vector.shape_cast %128 : vector<8x128xf32> to vector<1x8x128xf32>
    tpu.vector_store %arg11[%c1_68, %c0_69, %c0_70], %131 {strides = array<i32>} : memref<2x8x128xf32, #tpu.memory_space<vmem>>, vector<1x8x128xf32>,
    %c1_i32_71 = arith.constant 1 : i32
    %c1_i32_72 = arith.constant 1 : i32
    %132 = arith.muli %c1_i32_71, %c1_i32_72 : i32
    %c0_i32_73 = arith.constant 0 : i32
    %133 = arith.addi %c0_i32_73, %132 : i32
    %c7_i32_74 = arith.constant 7 : i32
    %134 = arith.subi %c7_i32_74, %133 : i32
    %135 = arith.index_cast %133 : i32 to index
    %c0_75 = arith.constant 0 : index
    %c0_76 = arith.constant 0 : index
    %136 = vector.load %arg9[%135, %c0_75, %c0_76] : memref<8x8x768xf32, #tpu.memory_space<vmem>>, vector<1x8x384xf32>
    %137 = vector.shape_cast %136 : vector<1x8x384xf32> to vector<8x384xf32>
    %138 = arith.index_cast %134 : i32 to index
    %c0_77 = arith.constant 0 : index
    %c384_78 = arith.constant 384 : index
    %139 = vector.load %arg9[%138, %c0_77, %c384_78] : memref<8x8x768xf32, #tpu.memory_space<vmem>>, vector<1x8x384xf32>
    %140 = vector.shape_cast %139 : vector<1x8x384xf32> to vector<8x384xf32>
    %c0_79 = arith.constant 0 : index
    %c0_80 = arith.constant 0 : index
    %c0_81 = arith.constant 0 : index
    %141 = vector.load %arg10[%c0_79, %c0_80, %c0_81] : memref<2x8x128xf32, #tpu.memory_space<vmem>>, vector<1x8x128xf32>
    %142 = vector.shape_cast %141 : vector<1x8x128xf32> to vector<8x128xf32>
    %143 = arith.truncf %142 : vector<8x128xf32> to vector<8x128xbf16>
    %cst_82 = arith.constant dense<0.000000e+00> : vector<8x384xf32>
    %144 = tpu.matmul %143, %14, %cst_82 {dimension_numbers = #tpu.dot_dimension_numbers<[1], [0], [0], [1], [0, 0, 1, 1], [], []>} : vector<8x128xbf16>, vector<128x384xbf16>, vector<8x384xf32> -> vector<8x384xf32>
    %145 = vector.extract_strided_slice %137 {offsets = [0, 0], sizes = [8, 128], strides = [1, 1]} : vector<8x384xf32> to vector<8x128xf32>
    %146 = vector.extract_strided_slice %144 {offsets = [0, 0], sizes = [8, 128], strides = [1, 1]} : vector<8x384xf32> to vector<8x128xf32>
    %147 = arith.addf %145, %146 : vector<8x128xf32>
    %148 = arith.negf %147 : vector<8x128xf32>
    %149 = math.exp %148 : vector<8x128xf32>
    %cst_83 = arith.constant 1.000000e+00 : f32
    %150 = vector.broadcast %cst_83 : f32 to vector<8x128xf32>
    %151 = arith.addf %150, %149 : vector<8x128xf32>
    %152 = arith.divf %150, %151 : vector<8x128xf32>
    %153 = vector.extract_strided_slice %137 {offsets = [0, 128], sizes = [8, 128], strides = [1, 1]} : vector<8x384xf32> to vector<8x128xf32>
    %154 = vector.extract_strided_slice %144 {offsets = [0, 128], sizes = [8, 128], strides = [1, 1]} : vector<8x384xf32> to vector<8x128xf32>
    %155 = arith.addf %153, %154 : vector<8x128xf32>
    %156 = arith.negf %155 : vector<8x128xf32>
    %157 = math.exp %156 : vector<8x128xf32>
    %cst_84 = arith.constant 1.000000e+00 : f32
    %158 = vector.broadcast %cst_84 : f32 to vector<8x128xf32>
    %159 = arith.addf %158, %157 : vector<8x128xf32>
    %160 = arith.divf %158, %159 : vector<8x128xf32>
    %161 = vector.extract_strided_slice %137 {offsets = [0, 256], sizes = [8, 128], strides = [1, 1]} : vector<8x384xf32> to vector<8x128xf32>
    %162 = vector.extract_strided_slice %144 {offsets = [0, 256], sizes = [8, 128], strides = [1, 1]} : vector<8x384xf32> to vector<8x128xf32>
    %163 = arith.addf %162, %20 : vector<8x128xf32>
    %164 = arith.mulf %152, %163 : vector<8x128xf32>
    %165 = arith.addf %161, %164 : vector<8x128xf32>
    %166 = math.tanh %165 : vector<8x128xf32>
    %cst_85 = arith.constant 1.000000e+00 : f32
    %167 = vector.broadcast %cst_85 : f32 to vector<8x128xf32>
    %168 = arith.subf %167, %160 : vector<8x128xf32>
    %169 = arith.mulf %168, %166 : vector<8x128xf32>
    %170 = arith.mulf %160, %142 : vector<8x128xf32>
    %171 = arith.addf %169, %170 : vector<8x128xf32>
    %c1_86 = arith.constant 1 : index
    %c0_87 = arith.constant 0 : index
    %c0_88 = arith.constant 0 : index
    %172 = vector.load %arg10[%c1_86, %c0_87, %c0_88] : memref<2x8x128xf32, #tpu.memory_space<vmem>>, vector<1x8x128xf32>
    %173 = vector.shape_cast %172 : vector<1x8x128xf32> to vector<8x128xf32>
    %174 = arith.truncf %173 : vector<8x128xf32> to vector<8x128xbf16>
    %cst_89 = arith.constant dense<0.000000e+00> : vector<8x384xf32>
    %175 = tpu.matmul %174, %16, %cst_89 {dimension_numbers = #tpu.dot_dimension_numbers<[1], [0], [0], [1], [0, 0, 1, 1], [], []>} : vector<8x128xbf16>, vector<128x384xbf16>, vector<8x384xf32> -> vector<8x384xf32>
    %176 = vector.extract_strided_slice %140 {offsets = [0, 0], sizes = [8, 128], strides = [1, 1]} : vector<8x384xf32> to vector<8x128xf32>
    %177 = vector.extract_strided_slice %175 {offsets = [0, 0], sizes = [8, 128], strides = [1, 1]} : vector<8x384xf32> to vector<8x128xf32>
    %178 = arith.addf %176, %177 : vector<8x128xf32>
    %179 = arith.negf %178 : vector<8x128xf32>
    %180 = math.exp %179 : vector<8x128xf32>
    %cst_90 = arith.constant 1.000000e+00 : f32
    %181 = vector.broadcast %cst_90 : f32 to vector<8x128xf32>
    %182 = arith.addf %181, %180 : vector<8x128xf32>
    %183 = arith.divf %181, %182 : vector<8x128xf32>
    %184 = vector.extract_strided_slice %140 {offsets = [0, 128], sizes = [8, 128], strides = [1, 1]} : vector<8x384xf32> to vector<8x128xf32>
    %185 = vector.extract_strided_slice %175 {offsets = [0, 128], sizes = [8, 128], strides = [1, 1]} : vector<8x384xf32> to vector<8x128xf32>
    %186 = arith.addf %184, %185 : vector<8x128xf32>
    %187 = arith.negf %186 : vector<8x128xf32>
    %188 = math.exp %187 : vector<8x128xf32>
    %cst_91 = arith.constant 1.000000e+00 : f32
    %189 = vector.broadcast %cst_91 : f32 to vector<8x128xf32>
    %190 = arith.addf %189, %188 : vector<8x128xf32>
    %191 = arith.divf %189, %190 : vector<8x128xf32>
    %192 = vector.extract_strided_slice %140 {offsets = [0, 256], sizes = [8, 128], strides = [1, 1]} : vector<8x384xf32> to vector<8x128xf32>
    %193 = vector.extract_strided_slice %175 {offsets = [0, 256], sizes = [8, 128], strides = [1, 1]} : vector<8x384xf32> to vector<8x128xf32>
    %194 = arith.addf %193, %24 : vector<8x128xf32>
    %195 = arith.mulf %183, %194 : vector<8x128xf32>
    %196 = arith.addf %192, %195 : vector<8x128xf32>
    %197 = math.tanh %196 : vector<8x128xf32>
    %cst_92 = arith.constant 1.000000e+00 : f32
    %198 = vector.broadcast %cst_92 : f32 to vector<8x128xf32>
    %199 = arith.subf %198, %191 : vector<8x128xf32>
    %200 = arith.mulf %199, %197 : vector<8x128xf32>
    %201 = arith.mulf %191, %173 : vector<8x128xf32>
    %202 = arith.addf %200, %201 : vector<8x128xf32>
    %c0_93 = arith.constant 0 : index
    %c0_94 = arith.constant 0 : index
    %c0_95 = arith.constant 0 : index
    %203 = vector.load %arg10[%c0_93, %c0_94, %c0_95] : memref<2x8x128xf32, #tpu.memory_space<vmem>>, vector<1x8x128xf32>
    %204 = vector.shape_cast %203 : vector<1x8x128xf32> to vector<8x128xf32>
    %205 = vector.shape_cast %171 : vector<8x128xf32> to vector<1x8x128xf32>
    tpu.vector_store %arg10[%c0_93, %c0_94, %c0_95], %205 {strides = array<i32>} : memref<2x8x128xf32, #tpu.memory_space<vmem>>, vector<1x8x128xf32>,
    %c1_96 = arith.constant 1 : index
    %c0_97 = arith.constant 0 : index
    %c0_98 = arith.constant 0 : index
    %206 = vector.load %arg10[%c1_96, %c0_97, %c0_98] : memref<2x8x128xf32, #tpu.memory_space<vmem>>, vector<1x8x128xf32>
    %207 = vector.shape_cast %206 : vector<1x8x128xf32> to vector<8x128xf32>
    %208 = vector.shape_cast %202 : vector<8x128xf32> to vector<1x8x128xf32>
    tpu.vector_store %arg10[%c1_96, %c0_97, %c0_98], %208 {strides = array<i32>} : memref<2x8x128xf32, #tpu.memory_space<vmem>>, vector<1x8x128xf32>,
    %209 = arith.index_cast %133 : i32 to index
    %c0_99 = arith.constant 0 : index
    %c0_100 = arith.constant 0 : index
    %210 = vector.load %arg7[%209, %c0_99, %c0_100] : memref<8x8x256xf32, #tpu.memory_space<vmem>>, vector<1x8x128xf32>
    %211 = vector.shape_cast %210 : vector<1x8x128xf32> to vector<8x128xf32>
    %212 = vector.shape_cast %171 : vector<8x128xf32> to vector<1x8x128xf32>
    tpu.vector_store %arg7[%209, %c0_99, %c0_100], %212 {strides = array<i32>} : memref<8x8x256xf32, #tpu.memory_space<vmem>>, vector<1x8x128xf32>,
    %213 = arith.index_cast %134 : i32 to index
    %c0_101 = arith.constant 0 : index
    %c128_102 = arith.constant 128 : index
    %214 = vector.load %arg7[%213, %c0_101, %c128_102] : memref<8x8x256xf32, #tpu.memory_space<vmem>>, vector<1x8x128xf32>
    %215 = vector.shape_cast %214 : vector<1x8x128xf32> to vector<8x128xf32>
    %216 = vector.shape_cast %202 : vector<8x128xf32> to vector<1x8x128xf32>
    tpu.vector_store %arg7[%213, %c0_101, %c128_102], %216 {strides = array<i32>} : memref<8x8x256xf32, #tpu.memory_space<vmem>>, vector<1x8x128xf32>,
    %c0_103 = arith.constant 0 : index
    %c0_104 = arith.constant 0 : index
    %c0_105 = arith.constant 0 : index
    %217 = vector.load %arg11[%c0_103, %c0_104, %c0_105] : memref<2x8x128xf32, #tpu.memory_space<vmem>>, vector<1x8x128xf32>
    %218 = vector.shape_cast %217 : vector<1x8x128xf32> to vector<8x128xf32>
    %219 = arith.index_cast %133 : i32 to index
    %c0_106 = arith.constant 0 : index
    %c0_107 = arith.constant 0 : index
    %220 = vector.load %arg2[%219, %c0_106, %c0_107] : memref<8x8x1xf32, #tpu.memory_space<vmem>>, vector<1x8x1xf32>
    %221 = vector.shape_cast %220 : vector<1x8x1xf32> to vector<8x1xf32>
    %222 = vector.broadcast %221 : vector<8x1xf32> to vector<8x128xf32>
    %223 = arith.addf %171, %222 : vector<8x128xf32>
    %224 = arith.maximumf %218, %223 : vector<8x128xf32>
    %c0_108 = arith.constant 0 : index
    %c0_109 = arith.constant 0 : index
    %c0_110 = arith.constant 0 : index
    %225 = vector.load %arg11[%c0_108, %c0_109, %c0_110] : memref<2x8x128xf32, #tpu.memory_space<vmem>>, vector<1x8x128xf32>
    %226 = vector.shape_cast %225 : vector<1x8x128xf32> to vector<8x128xf32>
    %227 = vector.shape_cast %224 : vector<8x128xf32> to vector<1x8x128xf32>
    tpu.vector_store %arg11[%c0_108, %c0_109, %c0_110], %227 {strides = array<i32>} : memref<2x8x128xf32, #tpu.memory_space<vmem>>, vector<1x8x128xf32>,
    %c1_111 = arith.constant 1 : index
    %c0_112 = arith.constant 0 : index
    %c0_113 = arith.constant 0 : index
    %228 = vector.load %arg11[%c1_111, %c0_112, %c0_113] : memref<2x8x128xf32, #tpu.memory_space<vmem>>, vector<1x8x128xf32>
    %229 = vector.shape_cast %228 : vector<1x8x128xf32> to vector<8x128xf32>
    %230 = arith.index_cast %134 : i32 to index
    %c0_114 = arith.constant 0 : index
    %c0_115 = arith.constant 0 : index
    %231 = vector.load %arg2[%230, %c0_114, %c0_115] : memref<8x8x1xf32, #tpu.memory_space<vmem>>, vector<1x8x1xf32>
    %232 = vector.shape_cast %231 : vector<1x8x1xf32> to vector<8x1xf32>
    %233 = vector.broadcast %232 : vector<8x1xf32> to vector<8x128xf32>
    %234 = arith.addf %202, %233 : vector<8x128xf32>
    %235 = arith.maximumf %229, %234 : vector<8x128xf32>
    %c1_116 = arith.constant 1 : index
    %c0_117 = arith.constant 0 : index
    %c0_118 = arith.constant 0 : index
    %236 = vector.load %arg11[%c1_116, %c0_117, %c0_118] : memref<2x8x128xf32, #tpu.memory_space<vmem>>, vector<1x8x128xf32>
    %237 = vector.shape_cast %236 : vector<1x8x128xf32> to vector<8x128xf32>
    %238 = vector.shape_cast %235 : vector<8x128xf32> to vector<1x8x128xf32>
    tpu.vector_store %arg11[%c1_116, %c0_117, %c0_118], %238 {strides = array<i32>} : memref<2x8x128xf32, #tpu.memory_space<vmem>>, vector<1x8x128xf32>,
    %c2_i32 = arith.constant 2 : i32
    %c1_i32_119 = arith.constant 1 : i32
    %239 = arith.muli %c2_i32, %c1_i32_119 : i32
    %c0_i32_120 = arith.constant 0 : i32
    %240 = arith.addi %c0_i32_120, %239 : i32
    %c7_i32_121 = arith.constant 7 : i32
    %241 = arith.subi %c7_i32_121, %240 : i32
    %242 = arith.index_cast %240 : i32 to index
    %c0_122 = arith.constant 0 : index
    %c0_123 = arith.constant 0 : index
    %243 = vector.load %arg9[%242, %c0_122, %c0_123] : memref<8x8x768xf32, #tpu.memory_space<vmem>>, vector<1x8x384xf32>
    %244 = vector.shape_cast %243 : vector<1x8x384xf32> to vector<8x384xf32>
    %245 = arith.index_cast %241 : i32 to index
    %c0_124 = arith.constant 0 : index
    %c384_125 = arith.constant 384 : index
    %246 = vector.load %arg9[%245, %c0_124, %c384_125] : memref<8x8x768xf32, #tpu.memory_space<vmem>>, vector<1x8x384xf32>
    %247 = vector.shape_cast %246 : vector<1x8x384xf32> to vector<8x384xf32>
    %c0_126 = arith.constant 0 : index
    %c0_127 = arith.constant 0 : index
    %c0_128 = arith.constant 0 : index
    %248 = vector.load %arg10[%c0_126, %c0_127, %c0_128] : memref<2x8x128xf32, #tpu.memory_space<vmem>>, vector<1x8x128xf32>
    %249 = vector.shape_cast %248 : vector<1x8x128xf32> to vector<8x128xf32>
    %250 = arith.truncf %249 : vector<8x128xf32> to vector<8x128xbf16>
    %cst_129 = arith.constant dense<0.000000e+00> : vector<8x384xf32>
    %251 = tpu.matmul %250, %14, %cst_129 {dimension_numbers = #tpu.dot_dimension_numbers<[1], [0], [0], [1], [0, 0, 1, 1], [], []>} : vector<8x128xbf16>, vector<128x384xbf16>, vector<8x384xf32> -> vector<8x384xf32>
    %252 = vector.extract_strided_slice %244 {offsets = [0, 0], sizes = [8, 128], strides = [1, 1]} : vector<8x384xf32> to vector<8x128xf32>
    %253 = vector.extract_strided_slice %251 {offsets = [0, 0], sizes = [8, 128], strides = [1, 1]} : vector<8x384xf32> to vector<8x128xf32>
    %254 = arith.addf %252, %253 : vector<8x128xf32>
    %255 = arith.negf %254 : vector<8x128xf32>
    %256 = math.exp %255 : vector<8x128xf32>
    %cst_130 = arith.constant 1.000000e+00 : f32
    %257 = vector.broadcast %cst_130 : f32 to vector<8x128xf32>
    %258 = arith.addf %257, %256 : vector<8x128xf32>
    %259 = arith.divf %257, %258 : vector<8x128xf32>
    %260 = vector.extract_strided_slice %244 {offsets = [0, 128], sizes = [8, 128], strides = [1, 1]} : vector<8x384xf32> to vector<8x128xf32>
    %261 = vector.extract_strided_slice %251 {offsets = [0, 128], sizes = [8, 128], strides = [1, 1]} : vector<8x384xf32> to vector<8x128xf32>
    %262 = arith.addf %260, %261 : vector<8x128xf32>
    %263 = arith.negf %262 : vector<8x128xf32>
    %264 = math.exp %263 : vector<8x128xf32>
    %cst_131 = arith.constant 1.000000e+00 : f32
    %265 = vector.broadcast %cst_131 : f32 to vector<8x128xf32>
    %266 = arith.addf %265, %264 : vector<8x128xf32>
    %267 = arith.divf %265, %266 : vector<8x128xf32>
    %268 = vector.extract_strided_slice %244 {offsets = [0, 256], sizes = [8, 128], strides = [1, 1]} : vector<8x384xf32> to vector<8x128xf32>
    %269 = vector.extract_strided_slice %251 {offsets = [0, 256], sizes = [8, 128], strides = [1, 1]} : vector<8x384xf32> to vector<8x128xf32>
    %270 = arith.addf %269, %20 : vector<8x128xf32>
    %271 = arith.mulf %259, %270 : vector<8x128xf32>
    %272 = arith.addf %268, %271 : vector<8x128xf32>
    %273 = math.tanh %272 : vector<8x128xf32>
    %cst_132 = arith.constant 1.000000e+00 : f32
    %274 = vector.broadcast %cst_132 : f32 to vector<8x128xf32>
    %275 = arith.subf %274, %267 : vector<8x128xf32>
    %276 = arith.mulf %275, %273 : vector<8x128xf32>
    %277 = arith.mulf %267, %249 : vector<8x128xf32>
    %278 = arith.addf %276, %277 : vector<8x128xf32>
    %c1_133 = arith.constant 1 : index
    %c0_134 = arith.constant 0 : index
    %c0_135 = arith.constant 0 : index
    %279 = vector.load %arg10[%c1_133, %c0_134, %c0_135] : memref<2x8x128xf32, #tpu.memory_space<vmem>>, vector<1x8x128xf32>
    %280 = vector.shape_cast %279 : vector<1x8x128xf32> to vector<8x128xf32>
    %281 = arith.truncf %280 : vector<8x128xf32> to vector<8x128xbf16>
    %cst_136 = arith.constant dense<0.000000e+00> : vector<8x384xf32>
    %282 = tpu.matmul %281, %16, %cst_136 {dimension_numbers = #tpu.dot_dimension_numbers<[1], [0], [0], [1], [0, 0, 1, 1], [], []>} : vector<8x128xbf16>, vector<128x384xbf16>, vector<8x384xf32> -> vector<8x384xf32>
    %283 = vector.extract_strided_slice %247 {offsets = [0, 0], sizes = [8, 128], strides = [1, 1]} : vector<8x384xf32> to vector<8x128xf32>
    %284 = vector.extract_strided_slice %282 {offsets = [0, 0], sizes = [8, 128], strides = [1, 1]} : vector<8x384xf32> to vector<8x128xf32>
    %285 = arith.addf %283, %284 : vector<8x128xf32>
    %286 = arith.negf %285 : vector<8x128xf32>
    %287 = math.exp %286 : vector<8x128xf32>
    %cst_137 = arith.constant 1.000000e+00 : f32
    %288 = vector.broadcast %cst_137 : f32 to vector<8x128xf32>
    %289 = arith.addf %288, %287 : vector<8x128xf32>
    %290 = arith.divf %288, %289 : vector<8x128xf32>
    %291 = vector.extract_strided_slice %247 {offsets = [0, 128], sizes = [8, 128], strides = [1, 1]} : vector<8x384xf32> to vector<8x128xf32>
    %292 = vector.extract_strided_slice %282 {offsets = [0, 128], sizes = [8, 128], strides = [1, 1]} : vector<8x384xf32> to vector<8x128xf32>
    %293 = arith.addf %291, %292 : vector<8x128xf32>
    %294 = arith.negf %293 : vector<8x128xf32>
    %295 = math.exp %294 : vector<8x128xf32>
    %cst_138 = arith.constant 1.000000e+00 : f32
    %296 = vector.broadcast %cst_138 : f32 to vector<8x128xf32>
    %297 = arith.addf %296, %295 : vector<8x128xf32>
    %298 = arith.divf %296, %297 : vector<8x128xf32>
    %299 = vector.extract_strided_slice %247 {offsets = [0, 256], sizes = [8, 128], strides = [1, 1]} : vector<8x384xf32> to vector<8x128xf32>
    %300 = vector.extract_strided_slice %282 {offsets = [0, 256], sizes = [8, 128], strides = [1, 1]} : vector<8x384xf32> to vector<8x128xf32>
    %301 = arith.addf %300, %24 : vector<8x128xf32>
    %302 = arith.mulf %290, %301 : vector<8x128xf32>
    %303 = arith.addf %299, %302 : vector<8x128xf32>
    %304 = math.tanh %303 : vector<8x128xf32>
    %cst_139 = arith.constant 1.000000e+00 : f32
    %305 = vector.broadcast %cst_139 : f32 to vector<8x128xf32>
    %306 = arith.subf %305, %298 : vector<8x128xf32>
    %307 = arith.mulf %306, %304 : vector<8x128xf32>
    %308 = arith.mulf %298, %280 : vector<8x128xf32>
    %309 = arith.addf %307, %308 : vector<8x128xf32>
    %c0_140 = arith.constant 0 : index
    %c0_141 = arith.constant 0 : index
    %c0_142 = arith.constant 0 : index
    %310 = vector.load %arg10[%c0_140, %c0_141, %c0_142] : memref<2x8x128xf32, #tpu.memory_space<vmem>>, vector<1x8x128xf32>
    %311 = vector.shape_cast %310 : vector<1x8x128xf32> to vector<8x128xf32>
    %312 = vector.shape_cast %278 : vector<8x128xf32> to vector<1x8x128xf32>
    tpu.vector_store %arg10[%c0_140, %c0_141, %c0_142], %312 {strides = array<i32>} : memref<2x8x128xf32, #tpu.memory_space<vmem>>, vector<1x8x128xf32>,
    %c1_143 = arith.constant 1 : index
    %c0_144 = arith.constant 0 : index
    %c0_145 = arith.constant 0 : index
    %313 = vector.load %arg10[%c1_143, %c0_144, %c0_145] : memref<2x8x128xf32, #tpu.memory_space<vmem>>, vector<1x8x128xf32>
    %314 = vector.shape_cast %313 : vector<1x8x128xf32> to vector<8x128xf32>
    %315 = vector.shape_cast %309 : vector<8x128xf32> to vector<1x8x128xf32>
    tpu.vector_store %arg10[%c1_143, %c0_144, %c0_145], %315 {strides = array<i32>} : memref<2x8x128xf32, #tpu.memory_space<vmem>>, vector<1x8x128xf32>,
    %316 = arith.index_cast %240 : i32 to index
    %c0_146 = arith.constant 0 : index
    %c0_147 = arith.constant 0 : index
    %317 = vector.load %arg7[%316, %c0_146, %c0_147] : memref<8x8x256xf32, #tpu.memory_space<vmem>>, vector<1x8x128xf32>
    %318 = vector.shape_cast %317 : vector<1x8x128xf32> to vector<8x128xf32>
    %319 = vector.shape_cast %278 : vector<8x128xf32> to vector<1x8x128xf32>
    tpu.vector_store %arg7[%316, %c0_146, %c0_147], %319 {strides = array<i32>} : memref<8x8x256xf32, #tpu.memory_space<vmem>>, vector<1x8x128xf32>,
    %320 = arith.index_cast %241 : i32 to index
    %c0_148 = arith.constant 0 : index
    %c128_149 = arith.constant 128 : index
    %321 = vector.load %arg7[%320, %c0_148, %c128_149] : memref<8x8x256xf32, #tpu.memory_space<vmem>>, vector<1x8x128xf32>
    %322 = vector.shape_cast %321 : vector<1x8x128xf32> to vector<8x128xf32>
    %323 = vector.shape_cast %309 : vector<8x128xf32> to vector<1x8x128xf32>
    tpu.vector_store %arg7[%320, %c0_148, %c128_149], %323 {strides = array<i32>} : memref<8x8x256xf32, #tpu.memory_space<vmem>>, vector<1x8x128xf32>,
    %c0_150 = arith.constant 0 : index
    %c0_151 = arith.constant 0 : index
    %c0_152 = arith.constant 0 : index
    %324 = vector.load %arg11[%c0_150, %c0_151, %c0_152] : memref<2x8x128xf32, #tpu.memory_space<vmem>>, vector<1x8x128xf32>
    %325 = vector.shape_cast %324 : vector<1x8x128xf32> to vector<8x128xf32>
    %326 = arith.index_cast %240 : i32 to index
    %c0_153 = arith.constant 0 : index
    %c0_154 = arith.constant 0 : index
    %327 = vector.load %arg2[%326, %c0_153, %c0_154] : memref<8x8x1xf32, #tpu.memory_space<vmem>>, vector<1x8x1xf32>
    %328 = vector.shape_cast %327 : vector<1x8x1xf32> to vector<8x1xf32>
    %329 = vector.broadcast %328 : vector<8x1xf32> to vector<8x128xf32>
    %330 = arith.addf %278, %329 : vector<8x128xf32>
    %331 = arith.maximumf %325, %330 : vector<8x128xf32>
    %c0_155 = arith.constant 0 : index
    %c0_156 = arith.constant 0 : index
    %c0_157 = arith.constant 0 : index
    %332 = vector.load %arg11[%c0_155, %c0_156, %c0_157] : memref<2x8x128xf32, #tpu.memory_space<vmem>>, vector<1x8x128xf32>
    %333 = vector.shape_cast %332 : vector<1x8x128xf32> to vector<8x128xf32>
    %334 = vector.shape_cast %331 : vector<8x128xf32> to vector<1x8x128xf32>
    tpu.vector_store %arg11[%c0_155, %c0_156, %c0_157], %334 {strides = array<i32>} : memref<2x8x128xf32, #tpu.memory_space<vmem>>, vector<1x8x128xf32>,
    %c1_158 = arith.constant 1 : index
    %c0_159 = arith.constant 0 : index
    %c0_160 = arith.constant 0 : index
    %335 = vector.load %arg11[%c1_158, %c0_159, %c0_160] : memref<2x8x128xf32, #tpu.memory_space<vmem>>, vector<1x8x128xf32>
    %336 = vector.shape_cast %335 : vector<1x8x128xf32> to vector<8x128xf32>
    %337 = arith.index_cast %241 : i32 to index
    %c0_161 = arith.constant 0 : index
    %c0_162 = arith.constant 0 : index
    %338 = vector.load %arg2[%337, %c0_161, %c0_162] : memref<8x8x1xf32, #tpu.memory_space<vmem>>, vector<1x8x1xf32>
    %339 = vector.shape_cast %338 : vector<1x8x1xf32> to vector<8x1xf32>
    %340 = vector.broadcast %339 : vector<8x1xf32> to vector<8x128xf32>
    %341 = arith.addf %309, %340 : vector<8x128xf32>
    %342 = arith.maximumf %336, %341 : vector<8x128xf32>
    %c1_163 = arith.constant 1 : index
    %c0_164 = arith.constant 0 : index
    %c0_165 = arith.constant 0 : index
    %343 = vector.load %arg11[%c1_163, %c0_164, %c0_165] : memref<2x8x128xf32, #tpu.memory_space<vmem>>, vector<1x8x128xf32>
    %344 = vector.shape_cast %343 : vector<1x8x128xf32> to vector<8x128xf32>
    %345 = vector.shape_cast %342 : vector<8x128xf32> to vector<1x8x128xf32>
    tpu.vector_store %arg11[%c1_163, %c0_164, %c0_165], %345 {strides = array<i32>} : memref<2x8x128xf32, #tpu.memory_space<vmem>>, vector<1x8x128xf32>,
    %c3_i32 = arith.constant 3 : i32
    %c1_i32_166 = arith.constant 1 : i32
    %346 = arith.muli %c3_i32, %c1_i32_166 : i32
    %c0_i32_167 = arith.constant 0 : i32
    %347 = arith.addi %c0_i32_167, %346 : i32
    %c7_i32_168 = arith.constant 7 : i32
    %348 = arith.subi %c7_i32_168, %347 : i32
    %349 = arith.index_cast %347 : i32 to index
    %c0_169 = arith.constant 0 : index
    %c0_170 = arith.constant 0 : index
    %350 = vector.load %arg9[%349, %c0_169, %c0_170] : memref<8x8x768xf32, #tpu.memory_space<vmem>>, vector<1x8x384xf32>
    %351 = vector.shape_cast %350 : vector<1x8x384xf32> to vector<8x384xf32>
    %352 = arith.index_cast %348 : i32 to index
    %c0_171 = arith.constant 0 : index
    %c384_172 = arith.constant 384 : index
    %353 = vector.load %arg9[%352, %c0_171, %c384_172] : memref<8x8x768xf32, #tpu.memory_space<vmem>>, vector<1x8x384xf32>
    %354 = vector.shape_cast %353 : vector<1x8x384xf32> to vector<8x384xf32>
    %c0_173 = arith.constant 0 : index
    %c0_174 = arith.constant 0 : index
    %c0_175 = arith.constant 0 : index
    %355 = vector.load %arg10[%c0_173, %c0_174, %c0_175] : memref<2x8x128xf32, #tpu.memory_space<vmem>>, vector<1x8x128xf32>
    %356 = vector.shape_cast %355 : vector<1x8x128xf32> to vector<8x128xf32>
    %357 = arith.truncf %356 : vector<8x128xf32> to vector<8x128xbf16>
    %cst_176 = arith.constant dense<0.000000e+00> : vector<8x384xf32>
    %358 = tpu.matmul %357, %14, %cst_176 {dimension_numbers = #tpu.dot_dimension_numbers<[1], [0], [0], [1], [0, 0, 1, 1], [], []>} : vector<8x128xbf16>, vector<128x384xbf16>, vector<8x384xf32> -> vector<8x384xf32>
    %359 = vector.extract_strided_slice %351 {offsets = [0, 0], sizes = [8, 128], strides = [1, 1]} : vector<8x384xf32> to vector<8x128xf32>
    %360 = vector.extract_strided_slice %358 {offsets = [0, 0], sizes = [8, 128], strides = [1, 1]} : vector<8x384xf32> to vector<8x128xf32>
    %361 = arith.addf %359, %360 : vector<8x128xf32>
    %362 = arith.negf %361 : vector<8x128xf32>
    %363 = math.exp %362 : vector<8x128xf32>
    %cst_177 = arith.constant 1.000000e+00 : f32
    %364 = vector.broadcast %cst_177 : f32 to vector<8x128xf32>
    %365 = arith.addf %364, %363 : vector<8x128xf32>
    %366 = arith.divf %364, %365 : vector<8x128xf32>
    %367 = vector.extract_strided_slice %351 {offsets = [0, 128], sizes = [8, 128], strides = [1, 1]} : vector<8x384xf32> to vector<8x128xf32>
    %368 = vector.extract_strided_slice %358 {offsets = [0, 128], sizes = [8, 128], strides = [1, 1]} : vector<8x384xf32> to vector<8x128xf32>
    %369 = arith.addf %367, %368 : vector<8x128xf32>
    %370 = arith.negf %369 : vector<8x128xf32>
    %371 = math.exp %370 : vector<8x128xf32>
    %cst_178 = arith.constant 1.000000e+00 : f32
    %372 = vector.broadcast %cst_178 : f32 to vector<8x128xf32>
    %373 = arith.addf %372, %371 : vector<8x128xf32>
    %374 = arith.divf %372, %373 : vector<8x128xf32>
    %375 = vector.extract_strided_slice %351 {offsets = [0, 256], sizes = [8, 128], strides = [1, 1]} : vector<8x384xf32> to vector<8x128xf32>
    %376 = vector.extract_strided_slice %358 {offsets = [0, 256], sizes = [8, 128], strides = [1, 1]} : vector<8x384xf32> to vector<8x128xf32>
    %377 = arith.addf %376, %20 : vector<8x128xf32>
    %378 = arith.mulf %366, %377 : vector<8x128xf32>
    %379 = arith.addf %375, %378 : vector<8x128xf32>
    %380 = math.tanh %379 : vector<8x128xf32>
    %cst_179 = arith.constant 1.000000e+00 : f32
    %381 = vector.broadcast %cst_179 : f32 to vector<8x128xf32>
    %382 = arith.subf %381, %374 : vector<8x128xf32>
    %383 = arith.mulf %382, %380 : vector<8x128xf32>
    %384 = arith.mulf %374, %356 : vector<8x128xf32>
    %385 = arith.addf %383, %384 : vector<8x128xf32>
    %c1_180 = arith.constant 1 : index
    %c0_181 = arith.constant 0 : index
    %c0_182 = arith.constant 0 : index
    %386 = vector.load %arg10[%c1_180, %c0_181, %c0_182] : memref<2x8x128xf32, #tpu.memory_space<vmem>>, vector<1x8x128xf32>
    %387 = vector.shape_cast %386 : vector<1x8x128xf32> to vector<8x128xf32>
    %388 = arith.truncf %387 : vector<8x128xf32> to vector<8x128xbf16>
    %cst_183 = arith.constant dense<0.000000e+00> : vector<8x384xf32>
    %389 = tpu.matmul %388, %16, %cst_183 {dimension_numbers = #tpu.dot_dimension_numbers<[1], [0], [0], [1], [0, 0, 1, 1], [], []>} : vector<8x128xbf16>, vector<128x384xbf16>, vector<8x384xf32> -> vector<8x384xf32>
    %390 = vector.extract_strided_slice %354 {offsets = [0, 0], sizes = [8, 128], strides = [1, 1]} : vector<8x384xf32> to vector<8x128xf32>
    %391 = vector.extract_strided_slice %389 {offsets = [0, 0], sizes = [8, 128], strides = [1, 1]} : vector<8x384xf32> to vector<8x128xf32>
    %392 = arith.addf %390, %391 : vector<8x128xf32>
    %393 = arith.negf %392 : vector<8x128xf32>
    %394 = math.exp %393 : vector<8x128xf32>
    %cst_184 = arith.constant 1.000000e+00 : f32
    %395 = vector.broadcast %cst_184 : f32 to vector<8x128xf32>
    %396 = arith.addf %395, %394 : vector<8x128xf32>
    %397 = arith.divf %395, %396 : vector<8x128xf32>
    %398 = vector.extract_strided_slice %354 {offsets = [0, 128], sizes = [8, 128], strides = [1, 1]} : vector<8x384xf32> to vector<8x128xf32>
    %399 = vector.extract_strided_slice %389 {offsets = [0, 128], sizes = [8, 128], strides = [1, 1]} : vector<8x384xf32> to vector<8x128xf32>
    %400 = arith.addf %398, %399 : vector<8x128xf32>
    %401 = arith.negf %400 : vector<8x128xf32>
    %402 = math.exp %401 : vector<8x128xf32>
    %cst_185 = arith.constant 1.000000e+00 : f32
    %403 = vector.broadcast %cst_185 : f32 to vector<8x128xf32>
    %404 = arith.addf %403, %402 : vector<8x128xf32>
    %405 = arith.divf %403, %404 : vector<8x128xf32>
    %406 = vector.extract_strided_slice %354 {offsets = [0, 256], sizes = [8, 128], strides = [1, 1]} : vector<8x384xf32> to vector<8x128xf32>
    %407 = vector.extract_strided_slice %389 {offsets = [0, 256], sizes = [8, 128], strides = [1, 1]} : vector<8x384xf32> to vector<8x128xf32>
    %408 = arith.addf %407, %24 : vector<8x128xf32>
    %409 = arith.mulf %397, %408 : vector<8x128xf32>
    %410 = arith.addf %406, %409 : vector<8x128xf32>
    %411 = math.tanh %410 : vector<8x128xf32>
    %cst_186 = arith.constant 1.000000e+00 : f32
    %412 = vector.broadcast %cst_186 : f32 to vector<8x128xf32>
    %413 = arith.subf %412, %405 : vector<8x128xf32>
    %414 = arith.mulf %413, %411 : vector<8x128xf32>
    %415 = arith.mulf %405, %387 : vector<8x128xf32>
    %416 = arith.addf %414, %415 : vector<8x128xf32>
    %c0_187 = arith.constant 0 : index
    %c0_188 = arith.constant 0 : index
    %c0_189 = arith.constant 0 : index
    %417 = vector.load %arg10[%c0_187, %c0_188, %c0_189] : memref<2x8x128xf32, #tpu.memory_space<vmem>>, vector<1x8x128xf32>
    %418 = vector.shape_cast %417 : vector<1x8x128xf32> to vector<8x128xf32>
    %419 = vector.shape_cast %385 : vector<8x128xf32> to vector<1x8x128xf32>
    tpu.vector_store %arg10[%c0_187, %c0_188, %c0_189], %419 {strides = array<i32>} : memref<2x8x128xf32, #tpu.memory_space<vmem>>, vector<1x8x128xf32>,
    %c1_190 = arith.constant 1 : index
    %c0_191 = arith.constant 0 : index
    %c0_192 = arith.constant 0 : index
    %420 = vector.load %arg10[%c1_190, %c0_191, %c0_192] : memref<2x8x128xf32, #tpu.memory_space<vmem>>, vector<1x8x128xf32>
    %421 = vector.shape_cast %420 : vector<1x8x128xf32> to vector<8x128xf32>
    %422 = vector.shape_cast %416 : vector<8x128xf32> to vector<1x8x128xf32>
    tpu.vector_store %arg10[%c1_190, %c0_191, %c0_192], %422 {strides = array<i32>} : memref<2x8x128xf32, #tpu.memory_space<vmem>>, vector<1x8x128xf32>,
    %423 = arith.index_cast %347 : i32 to index
    %c0_193 = arith.constant 0 : index
    %c0_194 = arith.constant 0 : index
    %424 = vector.load %arg7[%423, %c0_193, %c0_194] : memref<8x8x256xf32, #tpu.memory_space<vmem>>, vector<1x8x128xf32>
    %425 = vector.shape_cast %424 : vector<1x8x128xf32> to vector<8x128xf32>
    %426 = vector.shape_cast %385 : vector<8x128xf32> to vector<1x8x128xf32>
    tpu.vector_store %arg7[%423, %c0_193, %c0_194], %426 {strides = array<i32>} : memref<8x8x256xf32, #tpu.memory_space<vmem>>, vector<1x8x128xf32>,
    %427 = arith.index_cast %348 : i32 to index
    %c0_195 = arith.constant 0 : index
    %c128_196 = arith.constant 128 : index
    %428 = vector.load %arg7[%427, %c0_195, %c128_196] : memref<8x8x256xf32, #tpu.memory_space<vmem>>, vector<1x8x128xf32>
    %429 = vector.shape_cast %428 : vector<1x8x128xf32> to vector<8x128xf32>
    %430 = vector.shape_cast %416 : vector<8x128xf32> to vector<1x8x128xf32>
    tpu.vector_store %arg7[%427, %c0_195, %c128_196], %430 {strides = array<i32>} : memref<8x8x256xf32, #tpu.memory_space<vmem>>, vector<1x8x128xf32>,
    %c0_197 = arith.constant 0 : index
    %c0_198 = arith.constant 0 : index
    %c0_199 = arith.constant 0 : index
    %431 = vector.load %arg11[%c0_197, %c0_198, %c0_199] : memref<2x8x128xf32, #tpu.memory_space<vmem>>, vector<1x8x128xf32>
    %432 = vector.shape_cast %431 : vector<1x8x128xf32> to vector<8x128xf32>
    %433 = arith.index_cast %347 : i32 to index
    %c0_200 = arith.constant 0 : index
    %c0_201 = arith.constant 0 : index
    %434 = vector.load %arg2[%433, %c0_200, %c0_201] : memref<8x8x1xf32, #tpu.memory_space<vmem>>, vector<1x8x1xf32>
    %435 = vector.shape_cast %434 : vector<1x8x1xf32> to vector<8x1xf32>
    %436 = vector.broadcast %435 : vector<8x1xf32> to vector<8x128xf32>
    %437 = arith.addf %385, %436 : vector<8x128xf32>
    %438 = arith.maximumf %432, %437 : vector<8x128xf32>
    %c0_202 = arith.constant 0 : index
    %c0_203 = arith.constant 0 : index
    %c0_204 = arith.constant 0 : index
    %439 = vector.load %arg11[%c0_202, %c0_203, %c0_204] : memref<2x8x128xf32, #tpu.memory_space<vmem>>, vector<1x8x128xf32>
    %440 = vector.shape_cast %439 : vector<1x8x128xf32> to vector<8x128xf32>
    %441 = vector.shape_cast %438 : vector<8x128xf32> to vector<1x8x128xf32>
    tpu.vector_store %arg11[%c0_202, %c0_203, %c0_204], %441 {strides = array<i32>} : memref<2x8x128xf32, #tpu.memory_space<vmem>>, vector<1x8x128xf32>,
    %c1_205 = arith.constant 1 : index
    %c0_206 = arith.constant 0 : index
    %c0_207 = arith.constant 0 : index
    %442 = vector.load %arg11[%c1_205, %c0_206, %c0_207] : memref<2x8x128xf32, #tpu.memory_space<vmem>>, vector<1x8x128xf32>
    %443 = vector.shape_cast %442 : vector<1x8x128xf32> to vector<8x128xf32>
    %444 = arith.index_cast %348 : i32 to index
    %c0_208 = arith.constant 0 : index
    %c0_209 = arith.constant 0 : index
    %445 = vector.load %arg2[%444, %c0_208, %c0_209] : memref<8x8x1xf32, #tpu.memory_space<vmem>>, vector<1x8x1xf32>
    %446 = vector.shape_cast %445 : vector<1x8x1xf32> to vector<8x1xf32>
    %447 = vector.broadcast %446 : vector<8x1xf32> to vector<8x128xf32>
    %448 = arith.addf %416, %447 : vector<8x128xf32>
    %449 = arith.maximumf %443, %448 : vector<8x128xf32>
    %c1_210 = arith.constant 1 : index
    %c0_211 = arith.constant 0 : index
    %c0_212 = arith.constant 0 : index
    %450 = vector.load %arg11[%c1_210, %c0_211, %c0_212] : memref<2x8x128xf32, #tpu.memory_space<vmem>>, vector<1x8x128xf32>
    %451 = vector.shape_cast %450 : vector<1x8x128xf32> to vector<8x128xf32>
    %452 = vector.shape_cast %449 : vector<8x128xf32> to vector<1x8x128xf32>
    tpu.vector_store %arg11[%c1_210, %c0_211, %c0_212], %452 {strides = array<i32>} : memref<2x8x128xf32, #tpu.memory_space<vmem>>, vector<1x8x128xf32>,
    %c4_i32 = arith.constant 4 : i32
    %c1_i32_213 = arith.constant 1 : i32
    %453 = arith.muli %c4_i32, %c1_i32_213 : i32
    %c0_i32_214 = arith.constant 0 : i32
    %454 = arith.addi %c0_i32_214, %453 : i32
    %c7_i32_215 = arith.constant 7 : i32
    %455 = arith.subi %c7_i32_215, %454 : i32
    %456 = arith.index_cast %454 : i32 to index
    %c0_216 = arith.constant 0 : index
    %c0_217 = arith.constant 0 : index
    %457 = vector.load %arg9[%456, %c0_216, %c0_217] : memref<8x8x768xf32, #tpu.memory_space<vmem>>, vector<1x8x384xf32>
    %458 = vector.shape_cast %457 : vector<1x8x384xf32> to vector<8x384xf32>
    %459 = arith.index_cast %455 : i32 to index
    %c0_218 = arith.constant 0 : index
    %c384_219 = arith.constant 384 : index
    %460 = vector.load %arg9[%459, %c0_218, %c384_219] : memref<8x8x768xf32, #tpu.memory_space<vmem>>, vector<1x8x384xf32>
    %461 = vector.shape_cast %460 : vector<1x8x384xf32> to vector<8x384xf32>
    %c0_220 = arith.constant 0 : index
    %c0_221 = arith.constant 0 : index
    %c0_222 = arith.constant 0 : index
    %462 = vector.load %arg10[%c0_220, %c0_221, %c0_222] : memref<2x8x128xf32, #tpu.memory_space<vmem>>, vector<1x8x128xf32>
    %463 = vector.shape_cast %462 : vector<1x8x128xf32> to vector<8x128xf32>
    %464 = arith.truncf %463 : vector<8x128xf32> to vector<8x128xbf16>
    %cst_223 = arith.constant dense<0.000000e+00> : vector<8x384xf32>
    %465 = tpu.matmul %464, %14, %cst_223 {dimension_numbers = #tpu.dot_dimension_numbers<[1], [0], [0], [1], [0, 0, 1, 1], [], []>} : vector<8x128xbf16>, vector<128x384xbf16>, vector<8x384xf32> -> vector<8x384xf32>
    %466 = vector.extract_strided_slice %458 {offsets = [0, 0], sizes = [8, 128], strides = [1, 1]} : vector<8x384xf32> to vector<8x128xf32>
    %467 = vector.extract_strided_slice %465 {offsets = [0, 0], sizes = [8, 128], strides = [1, 1]} : vector<8x384xf32> to vector<8x128xf32>
    %468 = arith.addf %466, %467 : vector<8x128xf32>
    %469 = arith.negf %468 : vector<8x128xf32>
    %470 = math.exp %469 : vector<8x128xf32>
    %cst_224 = arith.constant 1.000000e+00 : f32
    %471 = vector.broadcast %cst_224 : f32 to vector<8x128xf32>
    %472 = arith.addf %471, %470 : vector<8x128xf32>
    %473 = arith.divf %471, %472 : vector<8x128xf32>
    %474 = vector.extract_strided_slice %458 {offsets = [0, 128], sizes = [8, 128], strides = [1, 1]} : vector<8x384xf32> to vector<8x128xf32>
    %475 = vector.extract_strided_slice %465 {offsets = [0, 128], sizes = [8, 128], strides = [1, 1]} : vector<8x384xf32> to vector<8x128xf32>
    %476 = arith.addf %474, %475 : vector<8x128xf32>
    %477 = arith.negf %476 : vector<8x128xf32>
    %478 = math.exp %477 : vector<8x128xf32>
    %cst_225 = arith.constant 1.000000e+00 : f32
    %479 = vector.broadcast %cst_225 : f32 to vector<8x128xf32>
    %480 = arith.addf %479, %478 : vector<8x128xf32>
    %481 = arith.divf %479, %480 : vector<8x128xf32>
    %482 = vector.extract_strided_slice %458 {offsets = [0, 256], sizes = [8, 128], strides = [1, 1]} : vector<8x384xf32> to vector<8x128xf32>
    %483 = vector.extract_strided_slice %465 {offsets = [0, 256], sizes = [8, 128], strides = [1, 1]} : vector<8x384xf32> to vector<8x128xf32>
    %484 = arith.addf %483, %20 : vector<8x128xf32>
    %485 = arith.mulf %473, %484 : vector<8x128xf32>
    %486 = arith.addf %482, %485 : vector<8x128xf32>
    %487 = math.tanh %486 : vector<8x128xf32>
    %cst_226 = arith.constant 1.000000e+00 : f32
    %488 = vector.broadcast %cst_226 : f32 to vector<8x128xf32>
    %489 = arith.subf %488, %481 : vector<8x128xf32>
    %490 = arith.mulf %489, %487 : vector<8x128xf32>
    %491 = arith.mulf %481, %463 : vector<8x128xf32>
    %492 = arith.addf %490, %491 : vector<8x128xf32>
    %c1_227 = arith.constant 1 : index
    %c0_228 = arith.constant 0 : index
    %c0_229 = arith.constant 0 : index
    %493 = vector.load %arg10[%c1_227, %c0_228, %c0_229] : memref<2x8x128xf32, #tpu.memory_space<vmem>>, vector<1x8x128xf32>
    %494 = vector.shape_cast %493 : vector<1x8x128xf32> to vector<8x128xf32>
    %495 = arith.truncf %494 : vector<8x128xf32> to vector<8x128xbf16>
    %cst_230 = arith.constant dense<0.000000e+00> : vector<8x384xf32>
    %496 = tpu.matmul %495, %16, %cst_230 {dimension_numbers = #tpu.dot_dimension_numbers<[1], [0], [0], [1], [0, 0, 1, 1], [], []>} : vector<8x128xbf16>, vector<128x384xbf16>, vector<8x384xf32> -> vector<8x384xf32>
    %497 = vector.extract_strided_slice %461 {offsets = [0, 0], sizes = [8, 128], strides = [1, 1]} : vector<8x384xf32> to vector<8x128xf32>
    %498 = vector.extract_strided_slice %496 {offsets = [0, 0], sizes = [8, 128], strides = [1, 1]} : vector<8x384xf32> to vector<8x128xf32>
    %499 = arith.addf %497, %498 : vector<8x128xf32>
    %500 = arith.negf %499 : vector<8x128xf32>
    %501 = math.exp %500 : vector<8x128xf32>
    %cst_231 = arith.constant 1.000000e+00 : f32
    %502 = vector.broadcast %cst_231 : f32 to vector<8x128xf32>
    %503 = arith.addf %502, %501 : vector<8x128xf32>
    %504 = arith.divf %502, %503 : vector<8x128xf32>
    %505 = vector.extract_strided_slice %461 {offsets = [0, 128], sizes = [8, 128], strides = [1, 1]} : vector<8x384xf32> to vector<8x128xf32>
    %506 = vector.extract_strided_slice %496 {offsets = [0, 128], sizes = [8, 128], strides = [1, 1]} : vector<8x384xf32> to vector<8x128xf32>
    %507 = arith.addf %505, %506 : vector<8x128xf32>
    %508 = arith.negf %507 : vector<8x128xf32>
    %509 = math.exp %508 : vector<8x128xf32>
    %cst_232 = arith.constant 1.000000e+00 : f32
    %510 = vector.broadcast %cst_232 : f32 to vector<8x128xf32>
    %511 = arith.addf %510, %509 : vector<8x128xf32>
    %512 = arith.divf %510, %511 : vector<8x128xf32>
    %513 = vector.extract_strided_slice %461 {offsets = [0, 256], sizes = [8, 128], strides = [1, 1]} : vector<8x384xf32> to vector<8x128xf32>
    %514 = vector.extract_strided_slice %496 {offsets = [0, 256], sizes = [8, 128], strides = [1, 1]} : vector<8x384xf32> to vector<8x128xf32>
    %515 = arith.addf %514, %24 : vector<8x128xf32>
    %516 = arith.mulf %504, %515 : vector<8x128xf32>
    %517 = arith.addf %513, %516 : vector<8x128xf32>
    %518 = math.tanh %517 : vector<8x128xf32>
    %cst_233 = arith.constant 1.000000e+00 : f32
    %519 = vector.broadcast %cst_233 : f32 to vector<8x128xf32>
    %520 = arith.subf %519, %512 : vector<8x128xf32>
    %521 = arith.mulf %520, %518 : vector<8x128xf32>
    %522 = arith.mulf %512, %494 : vector<8x128xf32>
    %523 = arith.addf %521, %522 : vector<8x128xf32>
    %c0_234 = arith.constant 0 : index
    %c0_235 = arith.constant 0 : index
    %c0_236 = arith.constant 0 : index
    %524 = vector.load %arg10[%c0_234, %c0_235, %c0_236] : memref<2x8x128xf32, #tpu.memory_space<vmem>>, vector<1x8x128xf32>
    %525 = vector.shape_cast %524 : vector<1x8x128xf32> to vector<8x128xf32>
    %526 = vector.shape_cast %492 : vector<8x128xf32> to vector<1x8x128xf32>
    tpu.vector_store %arg10[%c0_234, %c0_235, %c0_236], %526 {strides = array<i32>} : memref<2x8x128xf32, #tpu.memory_space<vmem>>, vector<1x8x128xf32>,
    %c1_237 = arith.constant 1 : index
    %c0_238 = arith.constant 0 : index
    %c0_239 = arith.constant 0 : index
    %527 = vector.load %arg10[%c1_237, %c0_238, %c0_239] : memref<2x8x128xf32, #tpu.memory_space<vmem>>, vector<1x8x128xf32>
    %528 = vector.shape_cast %527 : vector<1x8x128xf32> to vector<8x128xf32>
    %529 = vector.shape_cast %523 : vector<8x128xf32> to vector<1x8x128xf32>
    tpu.vector_store %arg10[%c1_237, %c0_238, %c0_239], %529 {strides = array<i32>} : memref<2x8x128xf32, #tpu.memory_space<vmem>>, vector<1x8x128xf32>,
    %530 = arith.index_cast %454 : i32 to index
    %c0_240 = arith.constant 0 : index
    %c0_241 = arith.constant 0 : index
    %531 = vector.load %arg7[%530, %c0_240, %c0_241] : memref<8x8x256xf32, #tpu.memory_space<vmem>>, vector<1x8x128xf32>
    %532 = vector.shape_cast %531 : vector<1x8x128xf32> to vector<8x128xf32>
    %533 = vector.shape_cast %492 : vector<8x128xf32> to vector<1x8x128xf32>
    tpu.vector_store %arg7[%530, %c0_240, %c0_241], %533 {strides = array<i32>} : memref<8x8x256xf32, #tpu.memory_space<vmem>>, vector<1x8x128xf32>,
    %534 = arith.index_cast %455 : i32 to index
    %c0_242 = arith.constant 0 : index
    %c128_243 = arith.constant 128 : index
    %535 = vector.load %arg7[%534, %c0_242, %c128_243] : memref<8x8x256xf32, #tpu.memory_space<vmem>>, vector<1x8x128xf32>
    %536 = vector.shape_cast %535 : vector<1x8x128xf32> to vector<8x128xf32>
    %537 = vector.shape_cast %523 : vector<8x128xf32> to vector<1x8x128xf32>
    tpu.vector_store %arg7[%534, %c0_242, %c128_243], %537 {strides = array<i32>} : memref<8x8x256xf32, #tpu.memory_space<vmem>>, vector<1x8x128xf32>,
    %c0_244 = arith.constant 0 : index
    %c0_245 = arith.constant 0 : index
    %c0_246 = arith.constant 0 : index
    %538 = vector.load %arg11[%c0_244, %c0_245, %c0_246] : memref<2x8x128xf32, #tpu.memory_space<vmem>>, vector<1x8x128xf32>
    %539 = vector.shape_cast %538 : vector<1x8x128xf32> to vector<8x128xf32>
    %540 = arith.index_cast %454 : i32 to index
    %c0_247 = arith.constant 0 : index
    %c0_248 = arith.constant 0 : index
    %541 = vector.load %arg2[%540, %c0_247, %c0_248] : memref<8x8x1xf32, #tpu.memory_space<vmem>>, vector<1x8x1xf32>
    %542 = vector.shape_cast %541 : vector<1x8x1xf32> to vector<8x1xf32>
    %543 = vector.broadcast %542 : vector<8x1xf32> to vector<8x128xf32>
    %544 = arith.addf %492, %543 : vector<8x128xf32>
    %545 = arith.maximumf %539, %544 : vector<8x128xf32>
    %c0_249 = arith.constant 0 : index
    %c0_250 = arith.constant 0 : index
    %c0_251 = arith.constant 0 : index
    %546 = vector.load %arg11[%c0_249, %c0_250, %c0_251] : memref<2x8x128xf32, #tpu.memory_space<vmem>>, vector<1x8x128xf32>
    %547 = vector.shape_cast %546 : vector<1x8x128xf32> to vector<8x128xf32>
    %548 = vector.shape_cast %545 : vector<8x128xf32> to vector<1x8x128xf32>
    tpu.vector_store %arg11[%c0_249, %c0_250, %c0_251], %548 {strides = array<i32>} : memref<2x8x128xf32, #tpu.memory_space<vmem>>, vector<1x8x128xf32>,
    %c1_252 = arith.constant 1 : index
    %c0_253 = arith.constant 0 : index
    %c0_254 = arith.constant 0 : index
    %549 = vector.load %arg11[%c1_252, %c0_253, %c0_254] : memref<2x8x128xf32, #tpu.memory_space<vmem>>, vector<1x8x128xf32>
    %550 = vector.shape_cast %549 : vector<1x8x128xf32> to vector<8x128xf32>
    %551 = arith.index_cast %455 : i32 to index
    %c0_255 = arith.constant 0 : index
    %c0_256 = arith.constant 0 : index
    %552 = vector.load %arg2[%551, %c0_255, %c0_256] : memref<8x8x1xf32, #tpu.memory_space<vmem>>, vector<1x8x1xf32>
    %553 = vector.shape_cast %552 : vector<1x8x1xf32> to vector<8x1xf32>
    %554 = vector.broadcast %553 : vector<8x1xf32> to vector<8x128xf32>
    %555 = arith.addf %523, %554 : vector<8x128xf32>
    %556 = arith.maximumf %550, %555 : vector<8x128xf32>
    %c1_257 = arith.constant 1 : index
    %c0_258 = arith.constant 0 : index
    %c0_259 = arith.constant 0 : index
    %557 = vector.load %arg11[%c1_257, %c0_258, %c0_259] : memref<2x8x128xf32, #tpu.memory_space<vmem>>, vector<1x8x128xf32>
    %558 = vector.shape_cast %557 : vector<1x8x128xf32> to vector<8x128xf32>
    %559 = vector.shape_cast %556 : vector<8x128xf32> to vector<1x8x128xf32>
    tpu.vector_store %arg11[%c1_257, %c0_258, %c0_259], %559 {strides = array<i32>} : memref<2x8x128xf32, #tpu.memory_space<vmem>>, vector<1x8x128xf32>,
    %c5_i32 = arith.constant 5 : i32
    %c1_i32_260 = arith.constant 1 : i32
    %560 = arith.muli %c5_i32, %c1_i32_260 : i32
    %c0_i32_261 = arith.constant 0 : i32
    %561 = arith.addi %c0_i32_261, %560 : i32
    %c7_i32_262 = arith.constant 7 : i32
    %562 = arith.subi %c7_i32_262, %561 : i32
    %563 = arith.index_cast %561 : i32 to index
    %c0_263 = arith.constant 0 : index
    %c0_264 = arith.constant 0 : index
    %564 = vector.load %arg9[%563, %c0_263, %c0_264] : memref<8x8x768xf32, #tpu.memory_space<vmem>>, vector<1x8x384xf32>
    %565 = vector.shape_cast %564 : vector<1x8x384xf32> to vector<8x384xf32>
    %566 = arith.index_cast %562 : i32 to index
    %c0_265 = arith.constant 0 : index
    %c384_266 = arith.constant 384 : index
    %567 = vector.load %arg9[%566, %c0_265, %c384_266] : memref<8x8x768xf32, #tpu.memory_space<vmem>>, vector<1x8x384xf32>
    %568 = vector.shape_cast %567 : vector<1x8x384xf32> to vector<8x384xf32>
    %c0_267 = arith.constant 0 : index
    %c0_268 = arith.constant 0 : index
    %c0_269 = arith.constant 0 : index
    %569 = vector.load %arg10[%c0_267, %c0_268, %c0_269] : memref<2x8x128xf32, #tpu.memory_space<vmem>>, vector<1x8x128xf32>
    %570 = vector.shape_cast %569 : vector<1x8x128xf32> to vector<8x128xf32>
    %571 = arith.truncf %570 : vector<8x128xf32> to vector<8x128xbf16>
    %cst_270 = arith.constant dense<0.000000e+00> : vector<8x384xf32>
    %572 = tpu.matmul %571, %14, %cst_270 {dimension_numbers = #tpu.dot_dimension_numbers<[1], [0], [0], [1], [0, 0, 1, 1], [], []>} : vector<8x128xbf16>, vector<128x384xbf16>, vector<8x384xf32> -> vector<8x384xf32>
    %573 = vector.extract_strided_slice %565 {offsets = [0, 0], sizes = [8, 128], strides = [1, 1]} : vector<8x384xf32> to vector<8x128xf32>
    %574 = vector.extract_strided_slice %572 {offsets = [0, 0], sizes = [8, 128], strides = [1, 1]} : vector<8x384xf32> to vector<8x128xf32>
    %575 = arith.addf %573, %574 : vector<8x128xf32>
    %576 = arith.negf %575 : vector<8x128xf32>
    %577 = math.exp %576 : vector<8x128xf32>
    %cst_271 = arith.constant 1.000000e+00 : f32
    %578 = vector.broadcast %cst_271 : f32 to vector<8x128xf32>
    %579 = arith.addf %578, %577 : vector<8x128xf32>
    %580 = arith.divf %578, %579 : vector<8x128xf32>
    %581 = vector.extract_strided_slice %565 {offsets = [0, 128], sizes = [8, 128], strides = [1, 1]} : vector<8x384xf32> to vector<8x128xf32>
    %582 = vector.extract_strided_slice %572 {offsets = [0, 128], sizes = [8, 128], strides = [1, 1]} : vector<8x384xf32> to vector<8x128xf32>
    %583 = arith.addf %581, %582 : vector<8x128xf32>
    %584 = arith.negf %583 : vector<8x128xf32>
    %585 = math.exp %584 : vector<8x128xf32>
    %cst_272 = arith.constant 1.000000e+00 : f32
    %586 = vector.broadcast %cst_272 : f32 to vector<8x128xf32>
    %587 = arith.addf %586, %585 : vector<8x128xf32>
    %588 = arith.divf %586, %587 : vector<8x128xf32>
    %589 = vector.extract_strided_slice %565 {offsets = [0, 256], sizes = [8, 128], strides = [1, 1]} : vector<8x384xf32> to vector<8x128xf32>
    %590 = vector.extract_strided_slice %572 {offsets = [0, 256], sizes = [8, 128], strides = [1, 1]} : vector<8x384xf32> to vector<8x128xf32>
    %591 = arith.addf %590, %20 : vector<8x128xf32>
    %592 = arith.mulf %580, %591 : vector<8x128xf32>
    %593 = arith.addf %589, %592 : vector<8x128xf32>
    %594 = math.tanh %593 : vector<8x128xf32>
    %cst_273 = arith.constant 1.000000e+00 : f32
    %595 = vector.broadcast %cst_273 : f32 to vector<8x128xf32>
    %596 = arith.subf %595, %588 : vector<8x128xf32>
    %597 = arith.mulf %596, %594 : vector<8x128xf32>
    %598 = arith.mulf %588, %570 : vector<8x128xf32>
    %599 = arith.addf %597, %598 : vector<8x128xf32>
    %c1_274 = arith.constant 1 : index
    %c0_275 = arith.constant 0 : index
    %c0_276 = arith.constant 0 : index
    %600 = vector.load %arg10[%c1_274, %c0_275, %c0_276] : memref<2x8x128xf32, #tpu.memory_space<vmem>>, vector<1x8x128xf32>
    %601 = vector.shape_cast %600 : vector<1x8x128xf32> to vector<8x128xf32>
    %602 = arith.truncf %601 : vector<8x128xf32> to vector<8x128xbf16>
    %cst_277 = arith.constant dense<0.000000e+00> : vector<8x384xf32>
    %603 = tpu.matmul %602, %16, %cst_277 {dimension_numbers = #tpu.dot_dimension_numbers<[1], [0], [0], [1], [0, 0, 1, 1], [], []>} : vector<8x128xbf16>, vector<128x384xbf16>, vector<8x384xf32> -> vector<8x384xf32>
    %604 = vector.extract_strided_slice %568 {offsets = [0, 0], sizes = [8, 128], strides = [1, 1]} : vector<8x384xf32> to vector<8x128xf32>
    %605 = vector.extract_strided_slice %603 {offsets = [0, 0], sizes = [8, 128], strides = [1, 1]} : vector<8x384xf32> to vector<8x128xf32>
    %606 = arith.addf %604, %605 : vector<8x128xf32>
    %607 = arith.negf %606 : vector<8x128xf32>
    %608 = math.exp %607 : vector<8x128xf32>
    %cst_278 = arith.constant 1.000000e+00 : f32
    %609 = vector.broadcast %cst_278 : f32 to vector<8x128xf32>
    %610 = arith.addf %609, %608 : vector<8x128xf32>
    %611 = arith.divf %609, %610 : vector<8x128xf32>
    %612 = vector.extract_strided_slice %568 {offsets = [0, 128], sizes = [8, 128], strides = [1, 1]} : vector<8x384xf32> to vector<8x128xf32>
    %613 = vector.extract_strided_slice %603 {offsets = [0, 128], sizes = [8, 128], strides = [1, 1]} : vector<8x384xf32> to vector<8x128xf32>
    %614 = arith.addf %612, %613 : vector<8x128xf32>
    %615 = arith.negf %614 : vector<8x128xf32>
    %616 = math.exp %615 : vector<8x128xf32>
    %cst_279 = arith.constant 1.000000e+00 : f32
    %617 = vector.broadcast %cst_279 : f32 to vector<8x128xf32>
    %618 = arith.addf %617, %616 : vector<8x128xf32>
    %619 = arith.divf %617, %618 : vector<8x128xf32>
    %620 = vector.extract_strided_slice %568 {offsets = [0, 256], sizes = [8, 128], strides = [1, 1]} : vector<8x384xf32> to vector<8x128xf32>
    %621 = vector.extract_strided_slice %603 {offsets = [0, 256], sizes = [8, 128], strides = [1, 1]} : vector<8x384xf32> to vector<8x128xf32>
    %622 = arith.addf %621, %24 : vector<8x128xf32>
    %623 = arith.mulf %611, %622 : vector<8x128xf32>
    %624 = arith.addf %620, %623 : vector<8x128xf32>
    %625 = math.tanh %624 : vector<8x128xf32>
    %cst_280 = arith.constant 1.000000e+00 : f32
    %626 = vector.broadcast %cst_280 : f32 to vector<8x128xf32>
    %627 = arith.subf %626, %619 : vector<8x128xf32>
    %628 = arith.mulf %627, %625 : vector<8x128xf32>
    %629 = arith.mulf %619, %601 : vector<8x128xf32>
    %630 = arith.addf %628, %629 : vector<8x128xf32>
    %c0_281 = arith.constant 0 : index
    %c0_282 = arith.constant 0 : index
    %c0_283 = arith.constant 0 : index
    %631 = vector.load %arg10[%c0_281, %c0_282, %c0_283] : memref<2x8x128xf32, #tpu.memory_space<vmem>>, vector<1x8x128xf32>
    %632 = vector.shape_cast %631 : vector<1x8x128xf32> to vector<8x128xf32>
    %633 = vector.shape_cast %599 : vector<8x128xf32> to vector<1x8x128xf32>
    tpu.vector_store %arg10[%c0_281, %c0_282, %c0_283], %633 {strides = array<i32>} : memref<2x8x128xf32, #tpu.memory_space<vmem>>, vector<1x8x128xf32>,
    %c1_284 = arith.constant 1 : index
    %c0_285 = arith.constant 0 : index
    %c0_286 = arith.constant 0 : index
    %634 = vector.load %arg10[%c1_284, %c0_285, %c0_286] : memref<2x8x128xf32, #tpu.memory_space<vmem>>, vector<1x8x128xf32>
    %635 = vector.shape_cast %634 : vector<1x8x128xf32> to vector<8x128xf32>
    %636 = vector.shape_cast %630 : vector<8x128xf32> to vector<1x8x128xf32>
    tpu.vector_store %arg10[%c1_284, %c0_285, %c0_286], %636 {strides = array<i32>} : memref<2x8x128xf32, #tpu.memory_space<vmem>>, vector<1x8x128xf32>,
    %637 = arith.index_cast %561 : i32 to index
    %c0_287 = arith.constant 0 : index
    %c0_288 = arith.constant 0 : index
    %638 = vector.load %arg7[%637, %c0_287, %c0_288] : memref<8x8x256xf32, #tpu.memory_space<vmem>>, vector<1x8x128xf32>
    %639 = vector.shape_cast %638 : vector<1x8x128xf32> to vector<8x128xf32>
    %640 = vector.shape_cast %599 : vector<8x128xf32> to vector<1x8x128xf32>
    tpu.vector_store %arg7[%637, %c0_287, %c0_288], %640 {strides = array<i32>} : memref<8x8x256xf32, #tpu.memory_space<vmem>>, vector<1x8x128xf32>,
    %641 = arith.index_cast %562 : i32 to index
    %c0_289 = arith.constant 0 : index
    %c128_290 = arith.constant 128 : index
    %642 = vector.load %arg7[%641, %c0_289, %c128_290] : memref<8x8x256xf32, #tpu.memory_space<vmem>>, vector<1x8x128xf32>
    %643 = vector.shape_cast %642 : vector<1x8x128xf32> to vector<8x128xf32>
    %644 = vector.shape_cast %630 : vector<8x128xf32> to vector<1x8x128xf32>
    tpu.vector_store %arg7[%641, %c0_289, %c128_290], %644 {strides = array<i32>} : memref<8x8x256xf32, #tpu.memory_space<vmem>>, vector<1x8x128xf32>,
    %c0_291 = arith.constant 0 : index
    %c0_292 = arith.constant 0 : index
    %c0_293 = arith.constant 0 : index
    %645 = vector.load %arg11[%c0_291, %c0_292, %c0_293] : memref<2x8x128xf32, #tpu.memory_space<vmem>>, vector<1x8x128xf32>
    %646 = vector.shape_cast %645 : vector<1x8x128xf32> to vector<8x128xf32>
    %647 = arith.index_cast %561 : i32 to index
    %c0_294 = arith.constant 0 : index
    %c0_295 = arith.constant 0 : index
    %648 = vector.load %arg2[%647, %c0_294, %c0_295] : memref<8x8x1xf32, #tpu.memory_space<vmem>>, vector<1x8x1xf32>
    %649 = vector.shape_cast %648 : vector<1x8x1xf32> to vector<8x1xf32>
    %650 = vector.broadcast %649 : vector<8x1xf32> to vector<8x128xf32>
    %651 = arith.addf %599, %650 : vector<8x128xf32>
    %652 = arith.maximumf %646, %651 : vector<8x128xf32>
    %c0_296 = arith.constant 0 : index
    %c0_297 = arith.constant 0 : index
    %c0_298 = arith.constant 0 : index
    %653 = vector.load %arg11[%c0_296, %c0_297, %c0_298] : memref<2x8x128xf32, #tpu.memory_space<vmem>>, vector<1x8x128xf32>
    %654 = vector.shape_cast %653 : vector<1x8x128xf32> to vector<8x128xf32>
    %655 = vector.shape_cast %652 : vector<8x128xf32> to vector<1x8x128xf32>
    tpu.vector_store %arg11[%c0_296, %c0_297, %c0_298], %655 {strides = array<i32>} : memref<2x8x128xf32, #tpu.memory_space<vmem>>, vector<1x8x128xf32>,
    %c1_299 = arith.constant 1 : index
    %c0_300 = arith.constant 0 : index
    %c0_301 = arith.constant 0 : index
    %656 = vector.load %arg11[%c1_299, %c0_300, %c0_301] : memref<2x8x128xf32, #tpu.memory_space<vmem>>, vector<1x8x128xf32>
    %657 = vector.shape_cast %656 : vector<1x8x128xf32> to vector<8x128xf32>
    %658 = arith.index_cast %562 : i32 to index
    %c0_302 = arith.constant 0 : index
    %c0_303 = arith.constant 0 : index
    %659 = vector.load %arg2[%658, %c0_302, %c0_303] : memref<8x8x1xf32, #tpu.memory_space<vmem>>, vector<1x8x1xf32>
    %660 = vector.shape_cast %659 : vector<1x8x1xf32> to vector<8x1xf32>
    %661 = vector.broadcast %660 : vector<8x1xf32> to vector<8x128xf32>
    %662 = arith.addf %630, %661 : vector<8x128xf32>
    %663 = arith.maximumf %657, %662 : vector<8x128xf32>
    %c1_304 = arith.constant 1 : index
    %c0_305 = arith.constant 0 : index
    %c0_306 = arith.constant 0 : index
    %664 = vector.load %arg11[%c1_304, %c0_305, %c0_306] : memref<2x8x128xf32, #tpu.memory_space<vmem>>, vector<1x8x128xf32>
    %665 = vector.shape_cast %664 : vector<1x8x128xf32> to vector<8x128xf32>
    %666 = vector.shape_cast %663 : vector<8x128xf32> to vector<1x8x128xf32>
    tpu.vector_store %arg11[%c1_304, %c0_305, %c0_306], %666 {strides = array<i32>} : memref<2x8x128xf32, #tpu.memory_space<vmem>>, vector<1x8x128xf32>,
    %c6_i32 = arith.constant 6 : i32
    %c1_i32_307 = arith.constant 1 : i32
    %667 = arith.muli %c6_i32, %c1_i32_307 : i32
    %c0_i32_308 = arith.constant 0 : i32
    %668 = arith.addi %c0_i32_308, %667 : i32
    %c7_i32_309 = arith.constant 7 : i32
    %669 = arith.subi %c7_i32_309, %668 : i32
    %670 = arith.index_cast %668 : i32 to index
    %c0_310 = arith.constant 0 : index
    %c0_311 = arith.constant 0 : index
    %671 = vector.load %arg9[%670, %c0_310, %c0_311] : memref<8x8x768xf32, #tpu.memory_space<vmem>>, vector<1x8x384xf32>
    %672 = vector.shape_cast %671 : vector<1x8x384xf32> to vector<8x384xf32>
    %673 = arith.index_cast %669 : i32 to index
    %c0_312 = arith.constant 0 : index
    %c384_313 = arith.constant 384 : index
    %674 = vector.load %arg9[%673, %c0_312, %c384_313] : memref<8x8x768xf32, #tpu.memory_space<vmem>>, vector<1x8x384xf32>
    %675 = vector.shape_cast %674 : vector<1x8x384xf32> to vector<8x384xf32>
    %c0_314 = arith.constant 0 : index
    %c0_315 = arith.constant 0 : index
    %c0_316 = arith.constant 0 : index
    %676 = vector.load %arg10[%c0_314, %c0_315, %c0_316] : memref<2x8x128xf32, #tpu.memory_space<vmem>>, vector<1x8x128xf32>
    %677 = vector.shape_cast %676 : vector<1x8x128xf32> to vector<8x128xf32>
    %678 = arith.truncf %677 : vector<8x128xf32> to vector<8x128xbf16>
    %cst_317 = arith.constant dense<0.000000e+00> : vector<8x384xf32>
    %679 = tpu.matmul %678, %14, %cst_317 {dimension_numbers = #tpu.dot_dimension_numbers<[1], [0], [0], [1], [0, 0, 1, 1], [], []>} : vector<8x128xbf16>, vector<128x384xbf16>, vector<8x384xf32> -> vector<8x384xf32>
    %680 = vector.extract_strided_slice %672 {offsets = [0, 0], sizes = [8, 128], strides = [1, 1]} : vector<8x384xf32> to vector<8x128xf32>
    %681 = vector.extract_strided_slice %679 {offsets = [0, 0], sizes = [8, 128], strides = [1, 1]} : vector<8x384xf32> to vector<8x128xf32>
    %682 = arith.addf %680, %681 : vector<8x128xf32>
    %683 = arith.negf %682 : vector<8x128xf32>
    %684 = math.exp %683 : vector<8x128xf32>
    %cst_318 = arith.constant 1.000000e+00 : f32
    %685 = vector.broadcast %cst_318 : f32 to vector<8x128xf32>
    %686 = arith.addf %685, %684 : vector<8x128xf32>
    %687 = arith.divf %685, %686 : vector<8x128xf32>
    %688 = vector.extract_strided_slice %672 {offsets = [0, 128], sizes = [8, 128], strides = [1, 1]} : vector<8x384xf32> to vector<8x128xf32>
    %689 = vector.extract_strided_slice %679 {offsets = [0, 128], sizes = [8, 128], strides = [1, 1]} : vector<8x384xf32> to vector<8x128xf32>
    %690 = arith.addf %688, %689 : vector<8x128xf32>
    %691 = arith.negf %690 : vector<8x128xf32>
    %692 = math.exp %691 : vector<8x128xf32>
    %cst_319 = arith.constant 1.000000e+00 : f32
    %693 = vector.broadcast %cst_319 : f32 to vector<8x128xf32>
    %694 = arith.addf %693, %692 : vector<8x128xf32>
    %695 = arith.divf %693, %694 : vector<8x128xf32>
    %696 = vector.extract_strided_slice %672 {offsets = [0, 256], sizes = [8, 128], strides = [1, 1]} : vector<8x384xf32> to vector<8x128xf32>
    %697 = vector.extract_strided_slice %679 {offsets = [0, 256], sizes = [8, 128], strides = [1, 1]} : vector<8x384xf32> to vector<8x128xf32>
    %698 = arith.addf %697, %20 : vector<8x128xf32>
    %699 = arith.mulf %687, %698 : vector<8x128xf32>
    %700 = arith.addf %696, %699 : vector<8x128xf32>
    %701 = math.tanh %700 : vector<8x128xf32>
    %cst_320 = arith.constant 1.000000e+00 : f32
    %702 = vector.broadcast %cst_320 : f32 to vector<8x128xf32>
    %703 = arith.subf %702, %695 : vector<8x128xf32>
    %704 = arith.mulf %703, %701 : vector<8x128xf32>
    %705 = arith.mulf %695, %677 : vector<8x128xf32>
    %706 = arith.addf %704, %705 : vector<8x128xf32>
    %c1_321 = arith.constant 1 : index
    %c0_322 = arith.constant 0 : index
    %c0_323 = arith.constant 0 : index
    %707 = vector.load %arg10[%c1_321, %c0_322, %c0_323] : memref<2x8x128xf32, #tpu.memory_space<vmem>>, vector<1x8x128xf32>
    %708 = vector.shape_cast %707 : vector<1x8x128xf32> to vector<8x128xf32>
    %709 = arith.truncf %708 : vector<8x128xf32> to vector<8x128xbf16>
    %cst_324 = arith.constant dense<0.000000e+00> : vector<8x384xf32>
    %710 = tpu.matmul %709, %16, %cst_324 {dimension_numbers = #tpu.dot_dimension_numbers<[1], [0], [0], [1], [0, 0, 1, 1], [], []>} : vector<8x128xbf16>, vector<128x384xbf16>, vector<8x384xf32> -> vector<8x384xf32>
    %711 = vector.extract_strided_slice %675 {offsets = [0, 0], sizes = [8, 128], strides = [1, 1]} : vector<8x384xf32> to vector<8x128xf32>
    %712 = vector.extract_strided_slice %710 {offsets = [0, 0], sizes = [8, 128], strides = [1, 1]} : vector<8x384xf32> to vector<8x128xf32>
    %713 = arith.addf %711, %712 : vector<8x128xf32>
    %714 = arith.negf %713 : vector<8x128xf32>
    %715 = math.exp %714 : vector<8x128xf32>
    %cst_325 = arith.constant 1.000000e+00 : f32
    %716 = vector.broadcast %cst_325 : f32 to vector<8x128xf32>
    %717 = arith.addf %716, %715 : vector<8x128xf32>
    %718 = arith.divf %716, %717 : vector<8x128xf32>
    %719 = vector.extract_strided_slice %675 {offsets = [0, 128], sizes = [8, 128], strides = [1, 1]} : vector<8x384xf32> to vector<8x128xf32>
    %720 = vector.extract_strided_slice %710 {offsets = [0, 128], sizes = [8, 128], strides = [1, 1]} : vector<8x384xf32> to vector<8x128xf32>
    %721 = arith.addf %719, %720 : vector<8x128xf32>
    %722 = arith.negf %721 : vector<8x128xf32>
    %723 = math.exp %722 : vector<8x128xf32>
    %cst_326 = arith.constant 1.000000e+00 : f32
    %724 = vector.broadcast %cst_326 : f32 to vector<8x128xf32>
    %725 = arith.addf %724, %723 : vector<8x128xf32>
    %726 = arith.divf %724, %725 : vector<8x128xf32>
    %727 = vector.extract_strided_slice %675 {offsets = [0, 256], sizes = [8, 128], strides = [1, 1]} : vector<8x384xf32> to vector<8x128xf32>
    %728 = vector.extract_strided_slice %710 {offsets = [0, 256], sizes = [8, 128], strides = [1, 1]} : vector<8x384xf32> to vector<8x128xf32>
    %729 = arith.addf %728, %24 : vector<8x128xf32>
    %730 = arith.mulf %718, %729 : vector<8x128xf32>
    %731 = arith.addf %727, %730 : vector<8x128xf32>
    %732 = math.tanh %731 : vector<8x128xf32>
    %cst_327 = arith.constant 1.000000e+00 : f32
    %733 = vector.broadcast %cst_327 : f32 to vector<8x128xf32>
    %734 = arith.subf %733, %726 : vector<8x128xf32>
    %735 = arith.mulf %734, %732 : vector<8x128xf32>
    %736 = arith.mulf %726, %708 : vector<8x128xf32>
    %737 = arith.addf %735, %736 : vector<8x128xf32>
    %c0_328 = arith.constant 0 : index
    %c0_329 = arith.constant 0 : index
    %c0_330 = arith.constant 0 : index
    %738 = vector.load %arg10[%c0_328, %c0_329, %c0_330] : memref<2x8x128xf32, #tpu.memory_space<vmem>>, vector<1x8x128xf32>
    %739 = vector.shape_cast %738 : vector<1x8x128xf32> to vector<8x128xf32>
    %740 = vector.shape_cast %706 : vector<8x128xf32> to vector<1x8x128xf32>
    tpu.vector_store %arg10[%c0_328, %c0_329, %c0_330], %740 {strides = array<i32>} : memref<2x8x128xf32, #tpu.memory_space<vmem>>, vector<1x8x128xf32>,
    %c1_331 = arith.constant 1 : index
    %c0_332 = arith.constant 0 : index
    %c0_333 = arith.constant 0 : index
    %741 = vector.load %arg10[%c1_331, %c0_332, %c0_333] : memref<2x8x128xf32, #tpu.memory_space<vmem>>, vector<1x8x128xf32>
    %742 = vector.shape_cast %741 : vector<1x8x128xf32> to vector<8x128xf32>
    %743 = vector.shape_cast %737 : vector<8x128xf32> to vector<1x8x128xf32>
    tpu.vector_store %arg10[%c1_331, %c0_332, %c0_333], %743 {strides = array<i32>} : memref<2x8x128xf32, #tpu.memory_space<vmem>>, vector<1x8x128xf32>,
    %744 = arith.index_cast %668 : i32 to index
    %c0_334 = arith.constant 0 : index
    %c0_335 = arith.constant 0 : index
    %745 = vector.load %arg7[%744, %c0_334, %c0_335] : memref<8x8x256xf32, #tpu.memory_space<vmem>>, vector<1x8x128xf32>
    %746 = vector.shape_cast %745 : vector<1x8x128xf32> to vector<8x128xf32>
    %747 = vector.shape_cast %706 : vector<8x128xf32> to vector<1x8x128xf32>
    tpu.vector_store %arg7[%744, %c0_334, %c0_335], %747 {strides = array<i32>} : memref<8x8x256xf32, #tpu.memory_space<vmem>>, vector<1x8x128xf32>,
    %748 = arith.index_cast %669 : i32 to index
    %c0_336 = arith.constant 0 : index
    %c128_337 = arith.constant 128 : index
    %749 = vector.load %arg7[%748, %c0_336, %c128_337] : memref<8x8x256xf32, #tpu.memory_space<vmem>>, vector<1x8x128xf32>
    %750 = vector.shape_cast %749 : vector<1x8x128xf32> to vector<8x128xf32>
    %751 = vector.shape_cast %737 : vector<8x128xf32> to vector<1x8x128xf32>
    tpu.vector_store %arg7[%748, %c0_336, %c128_337], %751 {strides = array<i32>} : memref<8x8x256xf32, #tpu.memory_space<vmem>>, vector<1x8x128xf32>,
    %c0_338 = arith.constant 0 : index
    %c0_339 = arith.constant 0 : index
    %c0_340 = arith.constant 0 : index
    %752 = vector.load %arg11[%c0_338, %c0_339, %c0_340] : memref<2x8x128xf32, #tpu.memory_space<vmem>>, vector<1x8x128xf32>
    %753 = vector.shape_cast %752 : vector<1x8x128xf32> to vector<8x128xf32>
    %754 = arith.index_cast %668 : i32 to index
    %c0_341 = arith.constant 0 : index
    %c0_342 = arith.constant 0 : index
    %755 = vector.load %arg2[%754, %c0_341, %c0_342] : memref<8x8x1xf32, #tpu.memory_space<vmem>>, vector<1x8x1xf32>
    %756 = vector.shape_cast %755 : vector<1x8x1xf32> to vector<8x1xf32>
    %757 = vector.broadcast %756 : vector<8x1xf32> to vector<8x128xf32>
    %758 = arith.addf %706, %757 : vector<8x128xf32>
    %759 = arith.maximumf %753, %758 : vector<8x128xf32>
    %c0_343 = arith.constant 0 : index
    %c0_344 = arith.constant 0 : index
    %c0_345 = arith.constant 0 : index
    %760 = vector.load %arg11[%c0_343, %c0_344, %c0_345] : memref<2x8x128xf32, #tpu.memory_space<vmem>>, vector<1x8x128xf32>
    %761 = vector.shape_cast %760 : vector<1x8x128xf32> to vector<8x128xf32>
    %762 = vector.shape_cast %759 : vector<8x128xf32> to vector<1x8x128xf32>
    tpu.vector_store %arg11[%c0_343, %c0_344, %c0_345], %762 {strides = array<i32>} : memref<2x8x128xf32, #tpu.memory_space<vmem>>, vector<1x8x128xf32>,
    %c1_346 = arith.constant 1 : index
    %c0_347 = arith.constant 0 : index
    %c0_348 = arith.constant 0 : index
    %763 = vector.load %arg11[%c1_346, %c0_347, %c0_348] : memref<2x8x128xf32, #tpu.memory_space<vmem>>, vector<1x8x128xf32>
    %764 = vector.shape_cast %763 : vector<1x8x128xf32> to vector<8x128xf32>
    %765 = arith.index_cast %669 : i32 to index
    %c0_349 = arith.constant 0 : index
    %c0_350 = arith.constant 0 : index
    %766 = vector.load %arg2[%765, %c0_349, %c0_350] : memref<8x8x1xf32, #tpu.memory_space<vmem>>, vector<1x8x1xf32>
    %767 = vector.shape_cast %766 : vector<1x8x1xf32> to vector<8x1xf32>
    %768 = vector.broadcast %767 : vector<8x1xf32> to vector<8x128xf32>
    %769 = arith.addf %737, %768 : vector<8x128xf32>
    %770 = arith.maximumf %764, %769 : vector<8x128xf32>
    %c1_351 = arith.constant 1 : index
    %c0_352 = arith.constant 0 : index
    %c0_353 = arith.constant 0 : index
    %771 = vector.load %arg11[%c1_351, %c0_352, %c0_353] : memref<2x8x128xf32, #tpu.memory_space<vmem>>, vector<1x8x128xf32>
    %772 = vector.shape_cast %771 : vector<1x8x128xf32> to vector<8x128xf32>
    %773 = vector.shape_cast %770 : vector<8x128xf32> to vector<1x8x128xf32>
    tpu.vector_store %arg11[%c1_351, %c0_352, %c0_353], %773 {strides = array<i32>} : memref<2x8x128xf32, #tpu.memory_space<vmem>>, vector<1x8x128xf32>,
    %c7_i32_354 = arith.constant 7 : i32
    %c1_i32_355 = arith.constant 1 : i32
    %774 = arith.muli %c7_i32_354, %c1_i32_355 : i32
    %c0_i32_356 = arith.constant 0 : i32
    %775 = arith.addi %c0_i32_356, %774 : i32
    %c7_i32_357 = arith.constant 7 : i32
    %776 = arith.subi %c7_i32_357, %775 : i32
    %777 = arith.index_cast %775 : i32 to index
    %c0_358 = arith.constant 0 : index
    %c0_359 = arith.constant 0 : index
    %778 = vector.load %arg9[%777, %c0_358, %c0_359] : memref<8x8x768xf32, #tpu.memory_space<vmem>>, vector<1x8x384xf32>
    %779 = vector.shape_cast %778 : vector<1x8x384xf32> to vector<8x384xf32>
    %780 = arith.index_cast %776 : i32 to index
    %c0_360 = arith.constant 0 : index
    %c384_361 = arith.constant 384 : index
    %781 = vector.load %arg9[%780, %c0_360, %c384_361] : memref<8x8x768xf32, #tpu.memory_space<vmem>>, vector<1x8x384xf32>
    %782 = vector.shape_cast %781 : vector<1x8x384xf32> to vector<8x384xf32>
    %c0_362 = arith.constant 0 : index
    %c0_363 = arith.constant 0 : index
    %c0_364 = arith.constant 0 : index
    %783 = vector.load %arg10[%c0_362, %c0_363, %c0_364] : memref<2x8x128xf32, #tpu.memory_space<vmem>>, vector<1x8x128xf32>
    %784 = vector.shape_cast %783 : vector<1x8x128xf32> to vector<8x128xf32>
    %785 = arith.truncf %784 : vector<8x128xf32> to vector<8x128xbf16>
    %cst_365 = arith.constant dense<0.000000e+00> : vector<8x384xf32>
    %786 = tpu.matmul %785, %14, %cst_365 {dimension_numbers = #tpu.dot_dimension_numbers<[1], [0], [0], [1], [0, 0, 1, 1], [], []>} : vector<8x128xbf16>, vector<128x384xbf16>, vector<8x384xf32> -> vector<8x384xf32>
    %787 = vector.extract_strided_slice %779 {offsets = [0, 0], sizes = [8, 128], strides = [1, 1]} : vector<8x384xf32> to vector<8x128xf32>
    %788 = vector.extract_strided_slice %786 {offsets = [0, 0], sizes = [8, 128], strides = [1, 1]} : vector<8x384xf32> to vector<8x128xf32>
    %789 = arith.addf %787, %788 : vector<8x128xf32>
    %790 = arith.negf %789 : vector<8x128xf32>
    %791 = math.exp %790 : vector<8x128xf32>
    %cst_366 = arith.constant 1.000000e+00 : f32
    %792 = vector.broadcast %cst_366 : f32 to vector<8x128xf32>
    %793 = arith.addf %792, %791 : vector<8x128xf32>
    %794 = arith.divf %792, %793 : vector<8x128xf32>
    %795 = vector.extract_strided_slice %779 {offsets = [0, 128], sizes = [8, 128], strides = [1, 1]} : vector<8x384xf32> to vector<8x128xf32>
    %796 = vector.extract_strided_slice %786 {offsets = [0, 128], sizes = [8, 128], strides = [1, 1]} : vector<8x384xf32> to vector<8x128xf32>
    %797 = arith.addf %795, %796 : vector<8x128xf32>
    %798 = arith.negf %797 : vector<8x128xf32>
    %799 = math.exp %798 : vector<8x128xf32>
    %cst_367 = arith.constant 1.000000e+00 : f32
    %800 = vector.broadcast %cst_367 : f32 to vector<8x128xf32>
    %801 = arith.addf %800, %799 : vector<8x128xf32>
    %802 = arith.divf %800, %801 : vector<8x128xf32>
    %803 = vector.extract_strided_slice %779 {offsets = [0, 256], sizes = [8, 128], strides = [1, 1]} : vector<8x384xf32> to vector<8x128xf32>
    %804 = vector.extract_strided_slice %786 {offsets = [0, 256], sizes = [8, 128], strides = [1, 1]} : vector<8x384xf32> to vector<8x128xf32>
    %805 = arith.addf %804, %20 : vector<8x128xf32>
    %806 = arith.mulf %794, %805 : vector<8x128xf32>
    %807 = arith.addf %803, %806 : vector<8x128xf32>
    %808 = math.tanh %807 : vector<8x128xf32>
    %cst_368 = arith.constant 1.000000e+00 : f32
    %809 = vector.broadcast %cst_368 : f32 to vector<8x128xf32>
    %810 = arith.subf %809, %802 : vector<8x128xf32>
    %811 = arith.mulf %810, %808 : vector<8x128xf32>
    %812 = arith.mulf %802, %784 : vector<8x128xf32>
    %813 = arith.addf %811, %812 : vector<8x128xf32>
    %c1_369 = arith.constant 1 : index
    %c0_370 = arith.constant 0 : index
    %c0_371 = arith.constant 0 : index
    %814 = vector.load %arg10[%c1_369, %c0_370, %c0_371] : memref<2x8x128xf32, #tpu.memory_space<vmem>>, vector<1x8x128xf32>
    %815 = vector.shape_cast %814 : vector<1x8x128xf32> to vector<8x128xf32>
    %816 = arith.truncf %815 : vector<8x128xf32> to vector<8x128xbf16>
    %cst_372 = arith.constant dense<0.000000e+00> : vector<8x384xf32>
    %817 = tpu.matmul %816, %16, %cst_372 {dimension_numbers = #tpu.dot_dimension_numbers<[1], [0], [0], [1], [0, 0, 1, 1], [], []>} : vector<8x128xbf16>, vector<128x384xbf16>, vector<8x384xf32> -> vector<8x384xf32>
    %818 = vector.extract_strided_slice %782 {offsets = [0, 0], sizes = [8, 128], strides = [1, 1]} : vector<8x384xf32> to vector<8x128xf32>
    %819 = vector.extract_strided_slice %817 {offsets = [0, 0], sizes = [8, 128], strides = [1, 1]} : vector<8x384xf32> to vector<8x128xf32>
    %820 = arith.addf %818, %819 : vector<8x128xf32>
    %821 = arith.negf %820 : vector<8x128xf32>
    %822 = math.exp %821 : vector<8x128xf32>
    %cst_373 = arith.constant 1.000000e+00 : f32
    %823 = vector.broadcast %cst_373 : f32 to vector<8x128xf32>
    %824 = arith.addf %823, %822 : vector<8x128xf32>
    %825 = arith.divf %823, %824 : vector<8x128xf32>
    %826 = vector.extract_strided_slice %782 {offsets = [0, 128], sizes = [8, 128], strides = [1, 1]} : vector<8x384xf32> to vector<8x128xf32>
    %827 = vector.extract_strided_slice %817 {offsets = [0, 128], sizes = [8, 128], strides = [1, 1]} : vector<8x384xf32> to vector<8x128xf32>
    %828 = arith.addf %826, %827 : vector<8x128xf32>
    %829 = arith.negf %828 : vector<8x128xf32>
    %830 = math.exp %829 : vector<8x128xf32>
    %cst_374 = arith.constant 1.000000e+00 : f32
    %831 = vector.broadcast %cst_374 : f32 to vector<8x128xf32>
    %832 = arith.addf %831, %830 : vector<8x128xf32>
    %833 = arith.divf %831, %832 : vector<8x128xf32>
    %834 = vector.extract_strided_slice %782 {offsets = [0, 256], sizes = [8, 128], strides = [1, 1]} : vector<8x384xf32> to vector<8x128xf32>
    %835 = vector.extract_strided_slice %817 {offsets = [0, 256], sizes = [8, 128], strides = [1, 1]} : vector<8x384xf32> to vector<8x128xf32>
    %836 = arith.addf %835, %24 : vector<8x128xf32>
    %837 = arith.mulf %825, %836 : vector<8x128xf32>
    %838 = arith.addf %834, %837 : vector<8x128xf32>
    %839 = math.tanh %838 : vector<8x128xf32>
    %cst_375 = arith.constant 1.000000e+00 : f32
    %840 = vector.broadcast %cst_375 : f32 to vector<8x128xf32>
    %841 = arith.subf %840, %833 : vector<8x128xf32>
    %842 = arith.mulf %841, %839 : vector<8x128xf32>
    %843 = arith.mulf %833, %815 : vector<8x128xf32>
    %844 = arith.addf %842, %843 : vector<8x128xf32>
    %c0_376 = arith.constant 0 : index
    %c0_377 = arith.constant 0 : index
    %c0_378 = arith.constant 0 : index
    %845 = vector.load %arg10[%c0_376, %c0_377, %c0_378] : memref<2x8x128xf32, #tpu.memory_space<vmem>>, vector<1x8x128xf32>
    %846 = vector.shape_cast %845 : vector<1x8x128xf32> to vector<8x128xf32>
    %847 = vector.shape_cast %813 : vector<8x128xf32> to vector<1x8x128xf32>
    tpu.vector_store %arg10[%c0_376, %c0_377, %c0_378], %847 {strides = array<i32>} : memref<2x8x128xf32, #tpu.memory_space<vmem>>, vector<1x8x128xf32>,
    %c1_379 = arith.constant 1 : index
    %c0_380 = arith.constant 0 : index
    %c0_381 = arith.constant 0 : index
    %848 = vector.load %arg10[%c1_379, %c0_380, %c0_381] : memref<2x8x128xf32, #tpu.memory_space<vmem>>, vector<1x8x128xf32>
    %849 = vector.shape_cast %848 : vector<1x8x128xf32> to vector<8x128xf32>
    %850 = vector.shape_cast %844 : vector<8x128xf32> to vector<1x8x128xf32>
    tpu.vector_store %arg10[%c1_379, %c0_380, %c0_381], %850 {strides = array<i32>} : memref<2x8x128xf32, #tpu.memory_space<vmem>>, vector<1x8x128xf32>,
    %851 = arith.index_cast %775 : i32 to index
    %c0_382 = arith.constant 0 : index
    %c0_383 = arith.constant 0 : index
    %852 = vector.load %arg7[%851, %c0_382, %c0_383] : memref<8x8x256xf32, #tpu.memory_space<vmem>>, vector<1x8x128xf32>
    %853 = vector.shape_cast %852 : vector<1x8x128xf32> to vector<8x128xf32>
    %854 = vector.shape_cast %813 : vector<8x128xf32> to vector<1x8x128xf32>
    tpu.vector_store %arg7[%851, %c0_382, %c0_383], %854 {strides = array<i32>} : memref<8x8x256xf32, #tpu.memory_space<vmem>>, vector<1x8x128xf32>,
    %855 = arith.index_cast %776 : i32 to index
    %c0_384 = arith.constant 0 : index
    %c128_385 = arith.constant 128 : index
    %856 = vector.load %arg7[%855, %c0_384, %c128_385] : memref<8x8x256xf32, #tpu.memory_space<vmem>>, vector<1x8x128xf32>
    %857 = vector.shape_cast %856 : vector<1x8x128xf32> to vector<8x128xf32>
    %858 = vector.shape_cast %844 : vector<8x128xf32> to vector<1x8x128xf32>
    tpu.vector_store %arg7[%855, %c0_384, %c128_385], %858 {strides = array<i32>} : memref<8x8x256xf32, #tpu.memory_space<vmem>>, vector<1x8x128xf32>,
    %c0_386 = arith.constant 0 : index
    %c0_387 = arith.constant 0 : index
    %c0_388 = arith.constant 0 : index
    %859 = vector.load %arg11[%c0_386, %c0_387, %c0_388] : memref<2x8x128xf32, #tpu.memory_space<vmem>>, vector<1x8x128xf32>
    %860 = vector.shape_cast %859 : vector<1x8x128xf32> to vector<8x128xf32>
    %861 = arith.index_cast %775 : i32 to index
    %c0_389 = arith.constant 0 : index
    %c0_390 = arith.constant 0 : index
    %862 = vector.load %arg2[%861, %c0_389, %c0_390] : memref<8x8x1xf32, #tpu.memory_space<vmem>>, vector<1x8x1xf32>
    %863 = vector.shape_cast %862 : vector<1x8x1xf32> to vector<8x1xf32>
    %864 = vector.broadcast %863 : vector<8x1xf32> to vector<8x128xf32>
    %865 = arith.addf %813, %864 : vector<8x128xf32>
    %866 = arith.maximumf %860, %865 : vector<8x128xf32>
    %c0_391 = arith.constant 0 : index
    %c0_392 = arith.constant 0 : index
    %c0_393 = arith.constant 0 : index
    %867 = vector.load %arg11[%c0_391, %c0_392, %c0_393] : memref<2x8x128xf32, #tpu.memory_space<vmem>>, vector<1x8x128xf32>
    %868 = vector.shape_cast %867 : vector<1x8x128xf32> to vector<8x128xf32>
    %869 = vector.shape_cast %866 : vector<8x128xf32> to vector<1x8x128xf32>
    tpu.vector_store %arg11[%c0_391, %c0_392, %c0_393], %869 {strides = array<i32>} : memref<2x8x128xf32, #tpu.memory_space<vmem>>, vector<1x8x128xf32>,
    %c1_394 = arith.constant 1 : index
    %c0_395 = arith.constant 0 : index
    %c0_396 = arith.constant 0 : index
    %870 = vector.load %arg11[%c1_394, %c0_395, %c0_396] : memref<2x8x128xf32, #tpu.memory_space<vmem>>, vector<1x8x128xf32>
    %871 = vector.shape_cast %870 : vector<1x8x128xf32> to vector<8x128xf32>
    %872 = arith.index_cast %776 : i32 to index
    %c0_397 = arith.constant 0 : index
    %c0_398 = arith.constant 0 : index
    %873 = vector.load %arg2[%872, %c0_397, %c0_398] : memref<8x8x1xf32, #tpu.memory_space<vmem>>, vector<1x8x1xf32>
    %874 = vector.shape_cast %873 : vector<1x8x1xf32> to vector<8x1xf32>
    %875 = vector.broadcast %874 : vector<8x1xf32> to vector<8x128xf32>
    %876 = arith.addf %844, %875 : vector<8x128xf32>
    %877 = arith.maximumf %871, %876 : vector<8x128xf32>
    %c1_399 = arith.constant 1 : index
    %c0_400 = arith.constant 0 : index
    %c0_401 = arith.constant 0 : index
    %878 = vector.load %arg11[%c1_399, %c0_400, %c0_401] : memref<2x8x128xf32, #tpu.memory_space<vmem>>, vector<1x8x128xf32>
    %879 = vector.shape_cast %878 : vector<1x8x128xf32> to vector<8x128xf32>
    %880 = vector.shape_cast %877 : vector<8x128xf32> to vector<1x8x128xf32>
    tpu.vector_store %arg11[%c1_399, %c0_400, %c0_401], %880 {strides = array<i32>} : memref<2x8x128xf32, #tpu.memory_space<vmem>>, vector<1x8x128xf32>,
    %c8_i32 = arith.constant 8 : i32
    %c0_402 = arith.constant 0 : index
    %c0_403 = arith.constant 0 : index
    %c0_404 = arith.constant 0 : index
    %881 = vector.load %arg11[%c0_402, %c0_403, %c0_404] : memref<2x8x128xf32, #tpu.memory_space<vmem>>, vector<1x8x128xf32>
    %882 = vector.shape_cast %881 : vector<1x8x128xf32> to vector<8x128xf32>
    %c1_405 = arith.constant 1 : index
    %c0_406 = arith.constant 0 : index
    %c0_407 = arith.constant 0 : index
    %883 = vector.load %arg11[%c1_405, %c0_406, %c0_407] : memref<2x8x128xf32, #tpu.memory_space<vmem>>, vector<1x8x128xf32>
    %884 = vector.shape_cast %883 : vector<1x8x128xf32> to vector<8x128xf32>
    %885 = tpu.concatenate %882, %884 in 1 : vector<8x128xf32>, vector<8x128xf32> -> vector<8x256xf32>
    %cst_408 = arith.constant -1.000000e+20 : f32
    %886 = vector.broadcast %cst_408 : f32 to vector<8x256xf32>
    %887 = arith.cmpf ogt, %885, %886 : vector<8x256xf32>
    %cst_409 = arith.constant 0.000000e+00 : f32
    %888 = vector.broadcast %cst_409 : f32 to vector<8x256xf32>
    %889 = arith.select %887, %885, %888 : vector<8x256xi1>, vector<8x256xf32>
    %890 = vector.shape_cast %889 : vector<8x256xf32> to vector<8x1x256xf32>
    %c0_410 = arith.constant 0 : index
    %c0_411 = arith.constant 0 : index
    %c0_412 = arith.constant 0 : index
    %891 = vector.load %arg8[%c0_410, %c0_411, %c0_412] : memref<8x1x256xf32, #tpu.memory_space<vmem>>, vector<8x1x256xf32>
    tpu.vector_store %arg8[%c0_410, %c0_411, %c0_412], %890 {strides = array<i32>} : memref<8x1x256xf32, #tpu.memory_space<vmem>>, vector<8x1x256xf32>,
    return
  }
  func.func @transform_0(%arg0: i32) -> (i32, i32, i32) {
    %c0_i32 = arith.constant 0 : i32
    %c0_i32_0 = arith.constant 0 : i32
    %c0_i32_1 = arith.constant 0 : i32
    return %c0_i32, %arg0, %c0_i32_0 : i32, i32, i32
  }
  func.func @transform_1(%arg0: i32) -> (i32, i32, i32) {
    %c0_i32 = arith.constant 0 : i32
    %c0_i32_0 = arith.constant 0 : i32
    %c0_i32_1 = arith.constant 0 : i32
    return %c0_i32, %arg0, %c0_i32_0 : i32, i32, i32
  }
  func.func @transform_2(%arg0: i32) -> (i32, i32) {
    %c0_i32 = arith.constant 0 : i32
    %c0_i32_0 = arith.constant 0 : i32
    %c0_i32_1 = arith.constant 0 : i32
    return %c0_i32, %c0_i32_0 : i32, i32
  }
  func.func @transform_3(%arg0: i32) -> (i32, i32) {
    %c0_i32 = arith.constant 0 : i32
    %c0_i32_0 = arith.constant 0 : i32
    %c0_i32_1 = arith.constant 0 : i32
    return %c0_i32, %c0_i32_0 : i32, i32
  }
  func.func @transform_4(%arg0: i32) -> (i32, i32, i32) {
    %c0_i32 = arith.constant 0 : i32
    %c0_i32_0 = arith.constant 0 : i32
    %c0_i32_1 = arith.constant 0 : i32
    %c0_i32_2 = arith.constant 0 : i32
    return %c0_i32, %c0_i32_0, %c0_i32_1 : i32, i32, i32
  }
  func.func @transform_5(%arg0: i32) -> (i32, i32, i32) {
    %c0_i32 = arith.constant 0 : i32
    %c0_i32_0 = arith.constant 0 : i32
    %c0_i32_1 = arith.constant 0 : i32
    %c0_i32_2 = arith.constant 0 : i32
    return %c0_i32, %c0_i32_0, %c0_i32_1 : i32, i32, i32
  }
  func.func @transform_6(%arg0: i32) -> (i32, i32, i32) {
    %c0_i32 = arith.constant 0 : i32
    %c0_i32_0 = arith.constant 0 : i32
    %c0_i32_1 = arith.constant 0 : i32
    return %c0_i32, %arg0, %c0_i32_0 : i32, i32, i32
  }
  func.func @transform_7(%arg0: i32) -> (i32, i32, i32) {
    %c0_i32 = arith.constant 0 : i32
    %c0_i32_0 = arith.constant 0 : i32
    %c0_i32_1 = arith.constant 0 : i32
    return %arg0, %c0_i32, %c0_i32_0 : i32, i32, i32
  }
}

</mosaic_0001>

<bundles_post_ra>
// kernel: lstm_forward.1
= control target key start
LH: loop header
LB: loop body
LE: loop exit
PB: predicated region body
PF: predicated region fallthrough
CT: control target
= control target key end

     0   :  { %s5103_s2 = inlined_call_operand.vmem [shape: bf16[128,768], index: 2, kind: input, shape index: {}]   ;;  %s5104_s0 = inlined_call_operand.vmem [shape: bf16[8,8,128], index: 0, kind: input, shape index: {}]   ;;  %s5105_s4 = inlined_call_operand.vmem [shape: bf16[2,128,384], index: 4, kind: input, shape index: {}]   ;;  %s5106_s1 = inlined_call_operand.vmem [shape: f32[8,8,1], index: 1, kind: input, shape index: {}]   ;;  %s5107_s5 = inlined_call_operand.vmem [shape: f32[2,1,128], index: 5, kind: input, shape index: {}]   ;;  %s5108_s3 = inlined_call_operand.vmem [shape: f32[1,768], index: 3, kind: input, shape index: {}]   ;;  %s5109_s6 = inlined_call_operand.vmem [shape: f32[8,8,256], index: 6, kind: output, shape index: {0}]   ;;  %s5110_s7 = inlined_call_operand.vmem [shape: f32[8,1,256], index: 7, kind: output, shape index: {1}]  }
   0x1   :  { %v2848_v0 = vld [vmem:[%s5103_s2 + $0x150] sm:$0xf]  ;;  %v3204_v1 = vld [vmem:[%s5103_s2 + $0x164] sm:$0xf0]  ;;  %v3201_v2 = vld [vmem:[%s5103_s2 + $0x154] sm:$0xf] }
   0x2   :  { %v2849_v3 = vor.u32 %v3204_v1, %v2848_v0  ;;  %v2850_v4 = vld [vmem:[%s5103_s2 + $0x168] sm:$0xf0]  ;;  %v2856_v5 = vld [vmem:[%s5103_s2 + $0x158] sm:$0xf]  ;;  %v3205_v6 = vld [vmem:[%s5103_s2 + $0x16c] sm:$0xf0] }
   0x3   :  { %v2853_v7 = vor.u32 %v3201_v2, %v2850_v4  ;;  %v2857_v8 = vor.u32 %v3205_v6, %v2856_v5  ;;  %v3202_v9 = vld [vmem:[%s5103_s2 + $0x15c] sm:$0xf]  ;;  %v2858_v10 = vld [vmem:[%s5103_s2 + $0x170] sm:$0xf0]  ;;  %v2824_v11 = vld [vmem:[%s5103_s2 + $0x120] sm:$0xf] }
   0x4   :  { %359 = vmatpush.bf16.msra.mxu0 %v2849_v3  ;;  %v2861_v12 = vor.u32 %v3202_v9, %v2858_v10  ;;  %v3198_v13 = vld [vmem:[%s5103_s2 + $0x134] sm:$0xf0]  ;;  %v3195_v14 = vld [vmem:[%s5103_s2 + $0x124] sm:$0xf]  ;;  %v2826_v15 = vld [vmem:[%s5103_s2 + $0x138] sm:$0xf0] }
   0x5   :  { %388 = vmatpush.bf16.msra.mxu1 %v2853_v7  ;;  %417 = vmatpush.bf16.msra.mxu2 %v2857_v8  ;;  %v2825_v16 = vor.u32 %v3198_v13, %v2824_v11  ;;  %v2829_v17 = vor.u32 %v3195_v14, %v2826_v15  ;;  %v2832_v18 = vld [vmem:[%s5103_s2 + $0x128] sm:$0xf]  ;;  %v3199_v19 = vld [vmem:[%s5103_s2 + $0x13c] sm:$0xf0]  ;;  %v3196_v20 = vld [vmem:[%s5103_s2 + $0x12c] sm:$0xf] }
   0x6   :  { %446 = vmatpush.bf16.msra.mxu3 %v2861_v12  ;;  %v2833_v21 = vor.u32 %v3199_v19, %v2832_v18  ;;  %v2834_v22 = vld [vmem:[%s5103_s2 + $0x140] sm:$0xf0]  ;;  %v2800_v23 = vld [vmem:[%s5103_s2 + $0xf0] sm:$0xf]  ;;  %v3192_v24 = vld [vmem:[%s5103_s2 + $0x104] sm:$0xf0] }
   0x7   :  { %v2837_v25 = vor.u32 %v3196_v20, %v2834_v22  ;;  %v3189_v26 = vld [vmem:[%s5103_s2 + $0xf4] sm:$0xf]  ;;  %v2802_v27 = vld [vmem:[%s5103_s2 + $0x108] sm:$0xf0]  ;;  %v2808_v28 = vld [vmem:[%s5103_s2 + $0xf8] sm:$0xf]  ;;  %v2801_v29 = vor.u32 %v3192_v24, %v2800_v23 }
   0x8   :  { %360 = vmatpush.bf16.msra.mxu0 %v2825_v16  ;;  %v3193_v30 = vld [vmem:[%s5103_s2 + $0x10c] sm:$0xf0]  ;;  %v3190_v31 = vld [vmem:[%s5103_s2 + $0xfc] sm:$0xf]  ;;  %v2810_v32 = vld [vmem:[%s5103_s2 + $0x110] sm:$0xf0]  ;;  %v2805_v33 = vor.u32 %v3189_v26, %v2802_v27 }
   0x9   :  { %389 = vmatpush.bf16.msra.mxu1 %v2829_v17  ;;  %418 = vmatpush.bf16.msra.mxu2 %v2833_v21  ;;  %v2809_v34 = vor.u32 %v3193_v30, %v2808_v28  ;;  %v2776_v35 = vld [vmem:[%s5103_s2 + $0xc0] sm:$0xf]  ;;  %v3186_v36 = vld [vmem:[%s5103_s2 + $0xd4] sm:$0xf0]  ;;  %v3183_v37 = vld [vmem:[%s5103_s2 + $0xc4] sm:$0xf]  ;;  %v2813_v38 = vor.u32 %v3190_v31, %v2810_v32 }
   0xa   :  { %447 = vmatpush.bf16.msra.mxu3 %v2837_v25  ;;  %v2778_v39 = vld [vmem:[%s5103_s2 + $0xd8] sm:$0xf0]  ;;  %v2784_v40 = vld [vmem:[%s5103_s2 + $0xc8] sm:$0xf]  ;;  %v3187_v41 = vld [vmem:[%s5103_s2 + $0xdc] sm:$0xf0]  ;;  %v2777_v44 = vor.u32 %v3186_v36, %v2776_v35 }
   0xb   :  { %v3184_v42 = vld [vmem:[%s5103_s2 + $0xcc] sm:$0xf]  ;;  %v2786_v43 = vld [vmem:[%s5103_s2 + $0xe0] sm:$0xf0]  ;;  %v2781_v45 = vor.u32 %v3183_v37, %v2778_v39  ;;  %v2785_v46 = vor.u32 %v3187_v41, %v2784_v40  ;;  %v2752_v47 = vld [vmem:[%s5103_s2 + $0x90] sm:$0xf] }
   0xc   :  { %361 = vmatpush.bf16.msra.mxu0 %v2801_v29  ;;  %v3180_v48 = vld [vmem:[%s5103_s2 + $0xa4] sm:$0xf0]  ;;  %v3177_v49 = vld [vmem:[%s5103_s2 + $0x94] sm:$0xf]  ;;  %v2789_v50 = vor.u32 %v3184_v42, %v2786_v43  ;;  %v2754_v51 = vld [vmem:[%s5103_s2 + $0xa8] sm:$0xf0] }
   0xd   :  { %390 = vmatpush.bf16.msra.mxu1 %v2805_v33  ;;  %419 = vmatpush.bf16.msra.mxu2 %v2809_v34  ;;  %v2760_v52 = vld [vmem:[%s5103_s2 + $0x98] sm:$0xf]  ;;  %v3181_v53 = vld [vmem:[%s5103_s2 + $0xac] sm:$0xf0]  ;;  %v3178_v54 = vld [vmem:[%s5103_s2 + $0x9c] sm:$0xf]  ;;  %v2753_v56 = vor.u32 %v3180_v48, %v2752_v47  ;;  %v2757_v57 = vor.u32 %v3177_v49, %v2754_v51 }
   0xe   :  { %448 = vmatpush.bf16.msra.mxu3 %v2813_v38  ;;  %v2762_v55 = vld [vmem:[%s5103_s2 + $0xb0] sm:$0xf0]  ;;  %v2761_v58 = vor.u32 %v3181_v53, %v2760_v52  ;;  %v2728_v59 = vld [vmem:[%s5103_s2 + $0x60] sm:$0xf]  ;;  %v3174_v60 = vld [vmem:[%s5103_s2 + $0x74] sm:$0xf0] }
   0xf   :  { %v3171_v61 = vld [vmem:[%s5103_s2 + $0x64] sm:$0xf]  ;;  %v2765_v62 = vor.u32 %v3178_v54, %v2762_v55  ;;  %v2730_v63 = vld [vmem:[%s5103_s2 + $0x78] sm:$0xf0]  ;;  %v2736_v0 = vld [vmem:[%s5103_s2 + $0x68] sm:$0xf]  ;;  %v2729_v4 = vor.u32 %v3174_v60, %v2728_v59 }
  0x10   :  { %362 = vmatpush.bf16.msra.mxu0 %v2777_v44  ;;  %v3175_v1 = vld [vmem:[%s5103_s2 + $0x7c] sm:$0xf0]  ;;  %v3172_v2 = vld [vmem:[%s5103_s2 + $0x6c] sm:$0xf]  ;;  %v2738_v3 = vld [vmem:[%s5103_s2 + $0x80] sm:$0xf0]  ;;  %v2733_v5 = vor.u32 %v3171_v61, %v2730_v63 }
  0x11   :  { %391 = vmatpush.bf16.msra.mxu1 %v2781_v45  ;;  %420 = vmatpush.bf16.msra.mxu2 %v2785_v46  ;;  %v2737_v6 = vor.u32 %v3175_v1, %v2736_v0  ;;  %v2704_v7 = vld [vmem:[%s5103_s2 + $0x30] sm:$0xf]  ;;  %v3168_v8 = vld [vmem:[%s5103_s2 + $0x44] sm:$0xf0]  ;;  %v3165_v9 = vld [vmem:[%s5103_s2 + $0x34] sm:$0xf]  ;;  %v2741_v10 = vor.u32 %v3172_v2, %v2738_v3 }
  0x12   :  { %449 = vmatpush.bf16.msra.mxu3 %v2789_v50  ;;  %v2706_v11 = vld [vmem:[%s5103_s2 + $0x48] sm:$0xf0]  ;;  %v2712_v12 = vld [vmem:[%s5103_s2 + $0x38] sm:$0xf]  ;;  %v3169_v13 = vld [vmem:[%s5103_s2 + $0x4c] sm:$0xf0]  ;;  %v2705_v16 = vor.u32 %v3168_v8, %v2704_v7 }
  0x13   :  { %v3166_v14 = vld [vmem:[%s5103_s2 + $0x3c] sm:$0xf]  ;;  %v2714_v15 = vld [vmem:[%s5103_s2 + $0x50] sm:$0xf0]  ;;  %v2680_v17 = vld [vmem:[%s5103_s2] sm:$0xf]  ;;  %v2709_v18 = vor.u32 %v3165_v9, %v2706_v11  ;;  %v2713_v19 = vor.u32 %v3169_v13, %v2712_v12 }
  0x14   :  { %363 = vmatpush.bf16.msra.mxu0 %v2753_v56  ;;  %v3162_v20 = vld [vmem:[%s5103_s2 + $0x14] sm:$0xf0]  ;;  %v3159_v21 = vld [vmem:[%s5103_s2 + $0x4] sm:$0xf]  ;;  %v2682_v22 = vld [vmem:[%s5103_s2 + $0x18] sm:$0xf0]  ;;  %v2717_v23 = vor.u32 %v3166_v14, %v2714_v15 }
  0x15   :  { %392 = vmatpush.bf16.msra.mxu1 %v2757_v57  ;;  %421 = vmatpush.bf16.msra.mxu2 %v2761_v58  ;;  %v2688_v24 = vld [vmem:[%s5103_s2 + $0x8] sm:$0xf]  ;;  %v3163_v25 = vld [vmem:[%s5103_s2 + $0x1c] sm:$0xf0]  ;;  %v3160_v26 = vld [vmem:[%s5103_s2 + $0xc] sm:$0xf]  ;;  %v2681_v30 = vor.u32 %v3162_v20, %v2680_v17  ;;  %v2685_v33 = vor.u32 %v3159_v21, %v2682_v22 }
  0x16   :  { %450 = vmatpush.bf16.msra.mxu3 %v2765_v62  ;;  %v2690_v27 = vld [vmem:[%s5103_s2 + $0x20] sm:$0xf0]  ;;  %v2864_v28 = vld [vmem:[%s5103_s2 + $0x160] sm:$0xf]  ;;  %v3206_v29 = vld [vmem:[%s5103_s2 + $0x174] sm:$0xf0]  ;;  %v2689_v34 = vor.u32 %v3163_v25, %v2688_v24 }
  0x17   :  { %v3203_v31 = vld [vmem:[%s5103_s2 + $0x164] sm:$0xf]  ;;  %v2866_v32 = vld [vmem:[%s5103_s2 + $0x178] sm:$0xf0]  ;;  %v2693_v35 = vor.u32 %v3160_v26, %v2690_v27  ;;  %v2865_v37 = vor.u32 %v3206_v29, %v2864_v28  ;;  %v2840_v38 = vld [vmem:[%s5103_s2 + $0x130] sm:$0xf] }
  0x18   :  { %364 = vmatpush.bf16.msra.mxu0 %v2729_v4  ;;  %v3684_v36 = vld [vmem:[%s5104_s0] sm:$0xff]  ;;  %v3200_v39 = vld [vmem:[%s5103_s2 + $0x144] sm:$0xf0]  ;;  %v2869_v40 = vor.u32 %v3203_v31, %v2866_v32  ;;  %v3228_v41 = vld [vmem:[%s5105_s4 + $0xac] sm:$0xf] }
  0x19   :  { %393 = vmatpush.bf16.msra.mxu1 %v2733_v5  ;;  %422 = vmatpush.bf16.msra.mxu2 %v2737_v6  ;;  %v2991_v42 = vld [vmem:[%s5105_s4 + $0xb4] sm:$0xf0]  ;;  %v3197_v43 = vld [vmem:[%s5103_s2 + $0x134] sm:$0xf]  ;;  %v2842_v44 = vld [vmem:[%s5103_s2 + $0x148] sm:$0xf0]  ;;  %v2841_v45 = vor.u32 %v3200_v39, %v2840_v38 }
  0x1a   :  { %451 = vmatpush.bf16.msra.mxu3 %v2741_v10  ;;  %v2816_v46 = vld [vmem:[%s5103_s2 + $0x100] sm:$0xf]  ;;  %v3707_v47 = vor.u32 %v3228_v41, %v2991_v42  ;;  %v2989_v48 = vld [vmem:[%s5105_s4 + $0xa8] sm:$0xf]  ;;  %v3229_v49 = vld [vmem:[%s5105_s4 + $0xb0] sm:$0xf0]  ;;  %v2845_v53 = vor.u32 %v3197_v43, %v2842_v44 }
  0x1b   :  { %v3194_v50 = vld [vmem:[%s5103_s2 + $0x114] sm:$0xf0]  ;;  %v3225_v51 = vld [vmem:[%s5105_s4 + $0x94] sm:$0xf]  ;;  %v2979_v52 = vld [vmem:[%s5105_s4 + $0x9c] sm:$0xf0]  ;;  %v3725_v54 = vor.u32 %v3229_v49, %v2989_v48 }
  0x1c   :  { %365 = vmatpush.bf16.msra.mxu0 %v2705_v16  ;;  %v2792_v55 = vld [vmem:[%s5103_s2 + $0xd0] sm:$0xf]  ;;  %v3191_v56 = vld [vmem:[%s5103_s2 + $0x104] sm:$0xf]  ;;  %v2817_v57 = vor.u32 %v3194_v50, %v2816_v46  ;;  %v3738_v58 = vor.u32 %v3225_v51, %v2979_v52  ;;  %v2818_v59 = vld [vmem:[%s5103_s2 + $0x118] sm:$0xf0] }
  0x1d   :  { %394 = vmatpush.bf16.msra.mxu1 %v2709_v18  ;;  %423 = vmatpush.bf16.msra.mxu2 %v2713_v19  ;;  %v2977_v60 = vld [vmem:[%s5105_s4 + $0x90] sm:$0xf]  ;;  %v3226_v61 = vld [vmem:[%s5105_s4 + $0x98] sm:$0xf0]  ;;  %v3188_v62 = vld [vmem:[%s5103_s2 + $0xe4] sm:$0xf0]  ;;  %v2821_v1 = vor.u32 %v3191_v56, %v2818_v59 }
  0x1e   :  { %452 = vmatpush.bf16.msra.mxu3 %v2717_v23  ;;  %v3222_v63 = vld [vmem:[%s5105_s4 + $0x7c] sm:$0xf]  ;;  %v2967_v0 = vld [vmem:[%s5105_s4 + $0x84] sm:$0xf0]  ;;  %v3758_v2 = vor.u32 %v3226_v61, %v2977_v60  ;;  %v2965_v3 = vld [vmem:[%s5105_s4 + $0x78] sm:$0xf]  ;;  %v2793_v8 = vor.u32 %v3188_v62, %v2792_v55 }
  0x1f   :  { %v3223_v4 = vld [vmem:[%s5105_s4 + $0x80] sm:$0xf0]  ;;  %v3185_v7 = vld [vmem:[%s5103_s2 + $0xd4] sm:$0xf]  ;;  %v3776_v9 = vor.u32 %v3222_v63, %v2967_v0  ;;  %v2794_v10 = vld [vmem:[%s5103_s2 + $0xe8] sm:$0xf0] }
  0x20   :  { %366 = vmatpush.bf16.msra.mxu0 %v2681_v30  ;;  %v3219_v5 = vld [vmem:[%s5105_s4 + $0x64] sm:$0xf]  ;;  %v3770_v6 = vor.u32 %v3223_v4, %v2965_v3  ;;  %v2953_v11 = vld [vmem:[%s5105_s4 + $0x60] sm:$0xf]  ;;  %v3220_v12 = vld [vmem:[%s5105_s4 + $0x68] sm:$0xf0]  ;;  %v2797_v16 = vor.u32 %v3185_v7, %v2794_v10 }
  0x21   :  { %395 = vmatpush.bf16.msra.mxu1 %v2685_v33  ;;  %424 = vmatpush.bf16.msra.mxu2 %v2689_v34  ;;  %v2768_v13 = vld [vmem:[%s5103_s2 + $0xa0] sm:$0xf]  ;;  %v3182_v14 = vld [vmem:[%s5103_s2 + $0xb4] sm:$0xf0]  ;;  %v2955_v15 = vld [vmem:[%s5105_s4 + $0x6c] sm:$0xf0]  ;;  %v3797_v17 = vor.u32 %v3220_v12, %v2953_v11 }
  0x22   :  { %453 = vmatpush.bf16.msra.mxu3 %v2693_v35  ;;  %v3802_v18 = vld [vmem:[%s5104_s0 + $0x8] sm:$0xff]  ;;  %v2769_v19 = vor.u32 %v3182_v14, %v2768_v13  ;;  %v3805_v20 = vor.u32 %v3219_v5, %v2955_v15  ;;  %v2943_v22 = vld [vmem:[%s5105_s4 + $0x54] sm:$0xf0]  ;;  %v2744_v23 = vld [vmem:[%s5103_s2 + $0x70] sm:$0xf] }
  0x23   :  { %367 = vmatmul.bf16.vlgmr.msra.gmra.mxu0 %v3684_v36  ;;  %v3216_v21 = vld [vmem:[%s5105_s4 + $0x4c] sm:$0xf]  ;;  %v3176_v24 = vld [vmem:[%s5103_s2 + $0x84] sm:$0xf0]  ;;  %v3213_v27 = vld [vmem:[%s5105_s4 + $0x34] sm:$0xf] }
  0x24   :  { %475 = vmatpush.bf16.msrb.mxu0 %v2865_v37  ;;  %396 = vmatmul.bf16.vlgmr.msra.gmra.mxu1 %v3684_v36  ;;  %v3821_v25 = vor.u32 %v3216_v21, %v2943_v22  ;;  %v2745_v26 = vor.u32 %v3176_v24, %v2744_v23  ;;  %v2941_v28 = vld [vmem:[%s5105_s4 + $0x48] sm:$0xf]  ;;  %v3217_v29 = vld [vmem:[%s5105_s4 + $0x50] sm:$0xf0]  ;;  %v2931_v30 = vld [vmem:[%s5105_s4 + $0x3c] sm:$0xf0] }
  0x25   :  { %504 = vmatpush.bf16.msrb.mxu1 %v2869_v40  ;;  %425 = vmatmul.bf16.vlgmr.msra.gmra.mxu2 %v3684_v36  ;;  %v3836_v31 = vor.u32 %v3217_v29, %v2941_v28  ;;  %v3179_v32 = vld [vmem:[%s5103_s2 + $0xa4] sm:$0xf]  ;;  %v2770_v33 = vld [vmem:[%s5103_s2 + $0xb8] sm:$0xf0]  ;;  %v2720_v35 = vld [vmem:[%s5103_s2 + $0x40] sm:$0xf]  ;;  %v3858_v39 = vor.u32 %v3213_v27, %v2931_v30 }
  0x26   :  { %454 = vmatmul.bf16.vlgmr.msra.gmra.mxu3 %v3684_v36  ;;  %796 = vmatpush.bf16.msrb.mxu2 %v3725_v54  ;;  %5148 = vst [vmem:[#allocation5_spill] sm:$0xff] %v3821_v25  ;;  %v2773_v34 = vor.u32 %v3179_v32, %v2770_v33  ;;  %v3170_v37 = vld [vmem:[%s5103_s2 + $0x54] sm:$0xf0]  ;;  %v2929_v38 = vld [vmem:[%s5105_s4 + $0x30] sm:$0xf] }
  0x27   :  { %809 = vmatpush.bf16.msrb.mxu3 %v3707_v47  ;;  %5149 = vst [vmem:[#allocation6_spill] sm:$0xff] %v3836_v31  ;;  %v2721_v40 = vor.u32 %v3170_v37, %v2720_v35  ;;  %v3214_v41 = vld [vmem:[%s5105_s4 + $0x38] sm:$0xf0]  ;;  %v3173_v42 = vld [vmem:[%s5103_s2 + $0x74] sm:$0xf] }
  0x28   :  { %476 = vmatpush.bf16.msrb.mxu0 %v2841_v45  ;;  %5150 = vst [vmem:[#allocation7_spill] sm:$0xff] %v3858_v39  ;;  %v2746_v43 = vld [vmem:[%s5103_s2 + $0x88] sm:$0xf0]  ;;  %v3210_v44 = vld [vmem:[%s5105_s4 + $0x1c] sm:$0xf]  ;;  %v3875_v46 = vor.u32 %v3214_v41, %v2929_v38  ;;  %v3942_v13 = vld [vmem:[%s5104_s0 + $0x10] sm:$0xff] }
  0x29   :  { %505 = vmatpush.bf16.msrb.mxu1 %v2845_v53  ;;  %v2919_v45 = vld [vmem:[%s5105_s4 + $0x24] sm:$0xf0]  ;;  %v2749_v48 = vor.u32 %v3173_v42, %v2746_v43  ;;  %v2696_v49 = vld [vmem:[%s5103_s2 + $0x10] sm:$0xf]  ;;  %v2917_v51 = vld [vmem:[%s5105_s4 + $0x18] sm:$0xf] }
  0x2a   :  { %797 = vmatpush.bf16.msrb.mxu2 %v3758_v2  ;;  %5151 = vst [vmem:[#allocation8_spill] sm:$0xff] %v3875_v46  ;;  %v3164_v50 = vld [vmem:[%s5103_s2 + $0x24] sm:$0xf0]  ;;  %v3211_v52 = vld [vmem:[%s5105_s4 + $0x20] sm:$0xf0] }
  0x2b   :  { %810 = vmatpush.bf16.msrb.mxu3 %v3738_v58  ;;  %v3890_v53 = vor.u32 %v3211_v52, %v2917_v51  ;;  %v3167_v55 = vld [vmem:[%s5103_s2 + $0x44] sm:$0xf]  ;;  %v2722_v56 = vld [vmem:[%s5103_s2 + $0x58] sm:$0xf0]  ;;  %v2697_v59 = vor.u32 %v3164_v50, %v2696_v49  ;;  %v2905_v60 = vld [vmem:[%s5105_s4] sm:$0xf] }
  0x2c   :  { %477 = vmatpush.bf16.msrb.mxu0 %v2817_v57  ;;  %v3899_v57 = vor.u32 %v3210_v44, %v2919_v45  ;;  %v3208_v61 = vld [vmem:[%s5105_s4 + $0x8] sm:$0xf0]  ;;  %v3207_v62 = vld [vmem:[%s5105_s4 + $0x4] sm:$0xf]  ;;  %v2907_v63 = vld [vmem:[%s5105_s4 + $0xc] sm:$0xf0]  ;;  %v2725_v0 = vor.u32 %v3167_v55, %v2722_v56 }
  0x2d   :  { %506 = vmatpush.bf16.msrb.mxu1 %v2821_v1  ;;  %5152 = vst [vmem:[#allocation9_spill] sm:$0xff] %v3890_v53  ;;  %v2997_v1 = vld [vmem:[%s5105_s4 + $0xb0] sm:$0xf]  ;;  %v3087_v3 = vld [vmem:[%s5105_s4 + $0x168] sm:$0xf]  ;;  %v3926_v7 = vor.u32 %v3208_v61, %v2905_v60  ;;  %v4042_v56 = vld [vmem:[%s5104_s0 + $0x18] sm:$0xff] }
  0x2e   :  { %798 = vmatpush.bf16.msrb.mxu2 %v3770_v6  ;;  %5153 = vst [vmem:[#allocation10_spill] sm:$0xff] %v3899_v57  ;;  %v3253_v4 = vld [vmem:[%s5105_s4 + $0x170] sm:$0xf0]  ;;  %v3230_v5 = vld [vmem:[%s5105_s4 + $0xb8] sm:$0xf0] }
  0x2f   :  { %811 = vmatpush.bf16.msrb.mxu3 %v3776_v9  ;;  %5154 = vst [vmem:[#allocation11_spill] sm:$0xff] %v3926_v7  ;;  %v3161_v10 = vld [vmem:[%s5103_s2 + $0x14] sm:$0xf]  ;;  %v2698_v11 = vld [vmem:[%s5103_s2 + $0x28] sm:$0xf0]  ;;  %v3937_v12 = vor.u32 %v3230_v5, %v2997_v1  ;;  %v3944_v14 = vor.u32 %v3253_v4, %v3087_v3 }
  0x30   :  { %478 = vmatpush.bf16.msrb.mxu0 %v2793_v8  ;;  %v3929_v8 = vor.u32 %v3207_v62, %v2907_v63  ;;  %v3075_v15 = vld [vmem:[%s5105_s4 + $0x150] sm:$0xf]  ;;  %v2985_v22 = vld [vmem:[%s5105_s4 + $0x98] sm:$0xf]  ;;  %v3227_v23 = vld [vmem:[%s5105_s4 + $0xa0] sm:$0xf0] }
  0x31   :  { %507 = vmatpush.bf16.msrb.mxu1 %v2797_v16  ;;  %v3250_v16 = vld [vmem:[%s5105_s4 + $0x158] sm:$0xf0]  ;;  %v3063_v24 = vld [vmem:[%s5105_s4 + $0x138] sm:$0xf]  ;;  %v3973_v27 = vor.u32 %v3227_v23, %v2985_v22  ;;  %v3252_v28 = vld [vmem:[%s5105_s4 + $0x16c] sm:$0xf] }
  0x32   :  { %799 = vmatpush.bf16.msrb.mxu2 %v3797_v17  ;;  %5155 = vst [vmem:[#allocation12_spill] sm:$0xff] %v3929_v8  ;;  %v3957_v21 = vor.u32 %v3250_v16, %v3075_v15  ;;  %v3089_v29 = vld [vmem:[%s5105_s4 + $0x174] sm:$0xf0]  ;;  %v2973_v30 = vld [vmem:[%s5105_s4 + $0x80] sm:$0xf] }
  0x33   :  { %812 = vmatpush.bf16.msrb.mxu3 %v3805_v20  ;;  %372 = vmatmul.bf16.gmra.mxu0 %v3802_v18  ;;  %v3985_v32 = vor.u32 %v3252_v28, %v3089_v29  ;;  %v3224_v33 = vld [vmem:[%s5105_s4 + $0x88] sm:$0xf0]  ;;  %v3249_v37 = vld [vmem:[%s5105_s4 + $0x154] sm:$0xf]  ;;  %v3077_v38 = vld [vmem:[%s5105_s4 + $0x15c] sm:$0xf0] }
  0x34   :  { %479 = vmatpush.bf16.msrb.mxu0 %v2769_v19  ;;  %401 = vmatmul.bf16.gmra.mxu1 %v3802_v18  ;;  %v2701_v19 = vor.u32 %v3161_v10, %v2698_v11  ;;  %v3994_v35 = vor.u32 %v3224_v33, %v2973_v30  ;;  %v3051_v41 = vld [vmem:[%s5105_s4 + $0x120] sm:$0xf]  ;;  %v3244_v42 = vld [vmem:[%s5105_s4 + $0x128] sm:$0xf0]  ;;  %v4012_v43 = vor.u32 %v3249_v37, %v3077_v38  ;;  %v3221_v44 = vld [vmem:[%s5105_s4 + $0x70] sm:$0xf0] }
  0x35   :  { %430 = vmatmul.bf16.gmra.mxu2 %v3802_v18  ;;  %508 = vmatpush.bf16.msrb.mxu1 %v2773_v34  ;;  %v2949_v49 = vld [vmem:[%s5105_s4 + $0x50] sm:$0xf]  ;;  %v3218_v50 = vld [vmem:[%s5105_s4 + $0x58] sm:$0xf0]  ;;  %v3039_v51 = vld [vmem:[%s5105_s4 + $0x108] sm:$0xf] }
  0x36   :  { %459 = vmatmul.bf16.gmra.mxu3 %v3802_v18  ;;  %800 = vmatpush.bf16.msrb.mxu2 %v3836_v31  ;;  %v3241_v52 = vld [vmem:[%s5105_s4 + $0x110] sm:$0xf0]  ;;  %v4037_v55 = vor.u32 %v3218_v50, %v2949_v49  ;;  %v3027_v60 = vld [vmem:[%s5105_s4 + $0xf0] sm:$0xf]  ;;  %v3238_v61 = vld [vmem:[%s5105_s4 + $0xf8] sm:$0xf0] }
  0x37   :  { %813 = vmatpush.bf16.msrb.mxu3 %v3821_v25  ;;  %v4056_v62 = vor.u32 %v3238_v61, %v3027_v60  ;;  %v2937_v63 = vld [vmem:[%s5105_s4 + $0x38] sm:$0xf]  ;;  %v3235_v3 = vld [vmem:[%s5105_s4 + $0xe0] sm:$0xf0]  ;;  %v3246_v5 = vld [vmem:[%s5105_s4 + $0x13c] sm:$0xf] }
  0x38   :  { %480 = vmatpush.bf16.msrb.mxu0 %v2745_v26  ;;  %v3247_v26 = vld [vmem:[%s5105_s4 + $0x140] sm:$0xf0]  ;;  %v3015_v1 = vld [vmem:[%s5105_s4 + $0xd8] sm:$0xf]  ;;  %v3065_v10 = vld [vmem:[%s5105_s4 + $0x144] sm:$0xf0] }
  0x39   :  { %509 = vmatpush.bf16.msrb.mxu1 %v2749_v48  ;;  %v3992_v34 = vor.u32 %v3247_v26, %v3063_v24  ;;  %v4021_v48 = vor.u32 %v3244_v42, %v3051_v41  ;;  %v3095_v11 = vld [vmem:[%s5105_s4 + $0x170] sm:$0xf]  ;;  %v3003_v15 = vld [vmem:[%s5105_s4 + $0xc0] sm:$0xf]  ;;  %v3232_v16 = vld [vmem:[%s5105_s4 + $0xc8] sm:$0xf0]  ;;  %v4103_v26 = vor.u32 %v3235_v3, %v3015_v1 }
  0x3a   :  { %801 = vmatpush.bf16.msrb.mxu2 %v3875_v46  ;;  %v3254_v22 = vld [vmem:[%s5105_s4 + $0x178] sm:$0xf0]  ;;  %v2925_v23 = vld [vmem:[%s5105_s4 + $0x20] sm:$0xf]  ;;  %v3212_v24 = vld [vmem:[%s5105_s4 + $0x28] sm:$0xf0]  ;;  %v4137_v50 = vor.u32 %v3232_v16, %v3003_v15 }
  0x3b   :  { %814 = vmatpush.bf16.msrb.mxu3 %v3858_v39  ;;  %v4105_v28 = vor.u32 %v3254_v22, %v3095_v11  ;;  %v4107_v29 = vor.u32 %v3212_v24, %v2925_v23  ;;  %v3243_v30 = vld [vmem:[%s5105_s4 + $0x124] sm:$0xf]  ;;  %v3053_v33 = vld [vmem:[%s5105_s4 + $0x12c] sm:$0xf0]  ;;  %v2913_v37 = vld [vmem:[%s5105_s4 + $0x8] sm:$0xf] }
  0x3c   :  { %481 = vmatpush.bf16.msrb.mxu0 %v2721_v40  ;;  %v2961_v40 = vld [vmem:[%s5105_s4 + $0x68] sm:$0xf]  ;;  %v4119_v38 = vor.u32 %v3243_v30, %v3053_v33  ;;  %v3083_v41 = vld [vmem:[%s5105_s4 + $0x158] sm:$0xf]  ;;  %v3251_v42 = vld [vmem:[%s5105_s4 + $0x160] sm:$0xf0] }
  0x3d   :  { %510 = vmatpush.bf16.msrb.mxu1 %v2725_v0  ;;  %v4018_v45 = vor.u32 %v3221_v44, %v2961_v40  ;;  %v3215_v0 = vld [vmem:[%s5105_s4 + $0x40] sm:$0xf0]  ;;  %v3209_v40 = vld [vmem:[%s5105_s4 + $0x10] sm:$0xf0]  ;;  %v4131_v44 = vor.u32 %v3251_v42, %v3083_v41  ;;  %v3041_v60 = vld [vmem:[%s5105_s4 + $0x114] sm:$0xf0] }
  0x3e   :  { %802 = vmatpush.bf16.msrb.mxu2 %v3890_v53  ;;  %v4072_v4 = vor.u32 %v3215_v0, %v2937_v63  ;;  %v4134_v49 = vor.u32 %v3209_v40, %v2913_v37  ;;  %v3071_v61 = vld [vmem:[%s5105_s4 + $0x140] sm:$0xf]  ;;  %v3237_v0 = vld [vmem:[%s5105_s4 + $0xf4] sm:$0xf]  ;;  %v3047_v16 = vld [vmem:[%s5105_s4 + $0x110] sm:$0xf] }
  0x3f   :  { %815 = vmatpush.bf16.msrb.mxu3 %v3899_v57  ;;  %v3029_v1 = vld [vmem:[%s5105_s4 + $0xfc] sm:$0xf0]  ;;  %v3242_v22 = vld [vmem:[%s5105_s4 + $0x118] sm:$0xf0]  ;;  %v3017_v24 = vld [vmem:[%s5105_s4 + $0xe4] sm:$0xf0] }
  0x40   :  { %482 = vmatpush.bf16.msrb.mxu0 %v2697_v59  ;;  %v4045_v59 = vor.u32 %v3241_v52, %v3039_v51  ;;  %v3435_v51 = vmov 0.0|0.0   ;;  %v3240_v52 = vld [vmem:[%s5105_s4 + $0x10c] sm:$0xf]  ;;  %v4178_v11 = vor.u32 %v3237_v0, %v3029_v1  ;;  %v3234_v23 = vld [vmem:[%s5105_s4 + $0xdc] sm:$0xf]  ;;  %v4206_v30 = vor.u32 %v3242_v22, %v3047_v16  ;;  %v1107_v16 = vld [vmem:[%s5106_s1] sm:$0xff] }
  0x41   :  { %511 = vmatpush.bf16.msrb.mxu1 %v2701_v19  ;;  %v4090_v19 = vor.u32 %v3246_v5, %v3065_v10  ;;  %v4156_v63 = vor.u32 %v3240_v52, %v3041_v60  ;;  %v3059_v5 = vld [vmem:[%s5105_s4 + $0x128] sm:$0xf]  ;;  %v3245_v10 = vld [vmem:[%s5105_s4 + $0x130] sm:$0xf0]  ;;  %v3035_v33 = vld [vmem:[%s5105_s4 + $0xf8] sm:$0xf]  ;;  %v4212_v37 = vor.u32 %v3234_v23, %v3017_v24 }
  0x42   :  { %803 = vmatpush.bf16.msrb.mxu2 %v3926_v7  ;;  %v4181_v15 = vor.u32 %v3245_v10, %v3059_v5  ;;  %5156 = vst [vmem:[#allocation13_spill] sm:$0xff] %v4206_v30  ;;  %v3231_v40 = vld [vmem:[%s5105_s4 + $0xc4] sm:$0xf]  ;;  %v3005_v41 = vld [vmem:[%s5105_s4 + $0xcc] sm:$0xf0] }
  0x43   :  { %816 = vmatpush.bf16.msrb.mxu3 %v3929_v8  ;;  %377 = vmatmul.bf16.gmra.mxu0 %v3942_v13  ;;  %v4229_v52 = vor.u32 %v3231_v40, %v3005_v41  ;;  %v3023_v60 = vld [vmem:[%s5105_s4 + $0xe0] sm:$0xf]  ;;  %v3011_v1 = vld [vmem:[%s5105_s4 + $0xc8] sm:$0xf]  ;;  %v3233_v5 = vld [vmem:[%s5105_s4 + $0xd0] sm:$0xf0] }
  0x44   :  { %406 = vmatmul.bf16.gmra.mxu1 %v3942_v13  ;;  %1027 = vmatpush.bf16.msra.mxu0 %v3985_v32  ;;  %v4253_v10 = vor.u32 %v3233_v5, %v3011_v1  ;;  %v4304_v22 = vld [vmem:[%s5108_s3] sm:$0x3f] }
  0x45   :  { %435 = vmatmul.bf16.gmra.mxu2 %v3942_v13  ;;  %1040 = vmatpush.bf16.msra.mxu1 %v4105_v28  ;;  %v4309_v23 = vperm.slane %v4304_v22, 3 }
  0x46   :  { %822 = vmatpush.bf16.msra.mxu2 %v3937_v12  ;;  %464 = vmatmul.bf16.gmra.mxu3 %v3942_v13  ;;  %5159 = vst [vmem:[#allocation16_spill] sm:$0xff] %v4253_v10 }
  0x47   :  { %1014 = vmatpush.bf16.msra.mxu3 %v3944_v14  ;;  %5160 = vst [vmem:[#allocation17_spill] sm:$0xff] %v4309_v23 }
  0x48   :  { %1028 = vmatpush.bf16.msra.mxu0 %v4012_v43 }
  0x49   :  { %1041 = vmatpush.bf16.msra.mxu1 %v4131_v44 }
  0x4a   :  { %823 = vmatpush.bf16.msra.mxu2 %v3973_v27 }
  0x4b   :  { %1015 = vmatpush.bf16.msra.mxu3 %v3957_v21 }
  0x4c   :  { %1029 = vmatpush.bf16.msra.mxu0 %v4090_v19 }
  0x4e   :  { %824 = vmatpush.bf16.msra.mxu2 %v3994_v35 }
  0x4f   :  { %1016 = vmatpush.bf16.msra.mxu3 %v3992_v34 }
  0x50   :  { %1030 = vmatpush.bf16.msra.mxu0 %v4119_v38 }
  0x52   :  { %825 = vmatpush.bf16.msra.mxu2 %v4018_v45 }
  0x53   :  { %1017 = vmatpush.bf16.msra.mxu3 %v4021_v48  ;;  %382 = vmatmul.bf16.gmra.mxu0 %v4042_v56 }
  0x54   :  { %411 = vmatmul.bf16.gmra.mxu1 %v4042_v56  ;;  %1031 = vmatpush.bf16.msra.mxu0 %v4156_v63 }
  0x55   :  { %440 = vmatmul.bf16.gmra.mxu2 %v4042_v56 }
  0x56   :  { %826 = vmatpush.bf16.msra.mxu2 %v4037_v55  ;;  %469 = vmatmul.bf16.gmra.mxu3 %v4042_v56 }
  0x57   :  { %1018 = vmatpush.bf16.msra.mxu3 %v4045_v59 }
  0x58   :  { %1032 = vmatpush.bf16.msra.mxu0 %v4178_v11 }
  0x5a   :  { %827 = vmatpush.bf16.msra.mxu2 %v4072_v4 }
  0x5b   :  { %1019 = vmatpush.bf16.msra.mxu3 %v4056_v62 }
  0x5c   :  { %1033 = vmatpush.bf16.msra.mxu0 %v4212_v37 }
  0x5e   :  { %828 = vmatpush.bf16.msra.mxu2 %v4107_v29 }
  0x5f   :  { %1020 = vmatpush.bf16.msra.mxu3 %v4103_v26 }
  0x60   :  { %1034 = vmatpush.bf16.msra.mxu0 %v4229_v52 }
  0x62   :  { %829 = vmatpush.bf16.msra.mxu2 %v4134_v49 }
  0x63   :  { %1021 = vmatpush.bf16.msra.mxu3 %v4137_v50  ;;  %483 = vmatmul.bf16.vlgmr.msrb.gmra.mxu0 %v3684_v36 }
  0x64   :  { %512 = vmatmul.bf16.vlgmr.msrb.gmra.mxu1 %v3684_v36  ;;  %v3248_v36 = vld [vmem:[%s5105_s4 + $0x148] sm:$0xf0]  ;;  %1164 = vmatpush.bf16.msrb.mxu0 %v3937_v12 }
  0x65   :  { %804 = vmatmul.bf16.vlgmr.msrb.gmra.mxu2 %v3435_v51  ;;  %v4168_v3 = vor.u32 %v3248_v36, %v3071_v61  ;;  %v3236_v61 = vld [vmem:[%s5105_s4 + $0xe8] sm:$0xf0]  ;;  %v3436_v36 = vmov 0  }
  0x66   :  { %817 = vmatmul.bf16.vlgmr.msrb.gmra.mxu3 %v3435_v51  ;;  %1138 = vmatpush.bf16.msrb.mxu2 %v3725_v54  ;;  %v4239_v0 = vor.u32 %v3236_v61, %v3023_v60  ;;  %v4331_v61 = vperm.slane %v4304_v22, 1 }
  0x67   :  { %1151 = vmatpush.bf16.msrb.mxu3 %v3707_v47  ;;  %1042 = vmatpush.bf16.msra.mxu1 %v4168_v3 }
  0x68   :  { %3257 = vset.pattern.permute.xlu0 %v3436_v36  ;;  %3258 = vset.pattern.permute.xlu1 %v3436_v36  ;;  %5158 = vst [vmem:[#allocation15_spill] sm:$0xff] %v4239_v0 }
  0x69   :  { %3259 = vset.pattern.permute.xlu2 %v3436_v36  ;;  %1165 = vmatpush.bf16.msrb.mxu0 %v3973_v27  ;;  %5166 = vst [vmem:[#allocation23_spill] sm:$0xff] %v4331_v61 }
  0x6a   :  { %1139 = vmatpush.bf16.msrb.mxu2 %v3758_v2  ;;  %1110 = vperm.xlu0 %3257, %v1107_v16  }
  0x6b   :  { %1152 = vmatpush.bf16.msrb.mxu3 %v3738_v58  ;;  %1043 = vmatpush.bf16.msra.mxu1 %v4181_v15 }
  0x6d   :  { %1166 = vmatpush.bf16.msrb.mxu0 %v3994_v35 }
  0x6e   :  { %1140 = vmatpush.bf16.msrb.mxu2 %v3770_v6 }
  0x6f   :  { %1153 = vmatpush.bf16.msrb.mxu3 %v3776_v9  ;;  %1044 = vmatpush.bf16.msra.mxu1 %v4206_v30 }
  0x71   :  { %1167 = vmatpush.bf16.msrb.mxu0 %v4018_v45 }
  0x72   :  { %1141 = vmatpush.bf16.msrb.mxu2 %v3797_v17 }
  0x73   :  { %1154 = vmatpush.bf16.msrb.mxu3 %v3805_v20  ;;  %488 = vmatmul.bf16.gmra.mxu0 %v3802_v18 }
  0x74   :  { %517 = vmatmul.bf16.gmra.mxu1 %v3802_v18  ;;  %v3239_v18 = vld [vmem:[%s5105_s4 + $0x100] sm:$0xf0] }
  0x75   :  { %830 = vmatmul.bf16.vlgmr.msra.gmra.mxu2 %v3435_v51  ;;  %v4225_v42 = vor.u32 %v3239_v18, %v3035_v33  ;;  %1168 = vmatpush.bf16.msrb.mxu0 %v4037_v55 }
  0x76   :  { %1022 = vmatmul.bf16.vlgmr.msra.gmra.mxu3 %v3435_v51  ;;  %1142 = vmatpush.bf16.msrb.mxu2 %v3836_v31 }
  0x77   :  { %5157 = vst [vmem:[#allocation14_spill] sm:$0xff] %v4225_v42  ;;  %1155 = vmatpush.bf16.msrb.mxu3 %v3821_v25  ;;  %1045 = vmatpush.bf16.msra.mxu1 %v4225_v42 }
  0x79   :  { %1169 = vmatpush.bf16.msrb.mxu0 %v4072_v4 }
  0x7a   :  { %1143 = vmatpush.bf16.msrb.mxu2 %v3875_v46 }
  0x7b   :  { %1156 = vmatpush.bf16.msrb.mxu3 %v3858_v39  ;;  %1046 = vmatpush.bf16.msra.mxu1 %v4239_v0 }
  0x7d   :  { %1170 = vmatpush.bf16.msrb.mxu0 %v4107_v29 }
  0x7e   :  { %1144 = vmatpush.bf16.msrb.mxu2 %v3890_v53 }
  0x7f   :  { %1157 = vmatpush.bf16.msrb.mxu3 %v3899_v57  ;;  %1047 = vmatpush.bf16.msra.mxu1 %v4253_v10 }
  0x81   :  { %1171 = vmatpush.bf16.msrb.mxu0 %v4134_v49 }
  0x82   :  { %1145 = vmatpush.bf16.msrb.mxu2 %v3926_v7 }
  0x83   :  { %1158 = vmatpush.bf16.msrb.mxu3 %v3929_v8  ;;  %493 = vmatmul.bf16.gmra.mxu0 %v3942_v13 }
  0x84   :  { %522 = vmatmul.bf16.gmra.mxu1 %v3942_v13 }
  0x85   :  { %1227 = vmatpush.bf16.msrb.mxu1 %v3944_v14 }
  0x86   :  { %1240 = vmatpush.bf16.msra.mxu2 %v3985_v32 }
  0x87   :  { %1253 = vmatpush.bf16.msra.mxu3 %v4105_v28 }
  0x89   :  { %1228 = vmatpush.bf16.msrb.mxu1 %v3957_v21 }
  0x8a   :  { %1241 = vmatpush.bf16.msra.mxu2 %v4012_v43 }
  0x8b   :  { %1254 = vmatpush.bf16.msra.mxu3 %v4131_v44 }
  0x8d   :  { %1229 = vmatpush.bf16.msrb.mxu1 %v3992_v34 }
  0x8e   :  { %1242 = vmatpush.bf16.msra.mxu2 %v4090_v19 }
  0x8f   :  { %1255 = vmatpush.bf16.msra.mxu3 %v4168_v3 }
  0x91   :  { %1230 = vmatpush.bf16.msrb.mxu1 %v4021_v48 }
  0x92   :  { %1243 = vmatpush.bf16.msra.mxu2 %v4119_v38 }
  0x93   :  { %1256 = vmatpush.bf16.msra.mxu3 %v4181_v15  ;;  %498 = vmatmul.bf16.gmra.mxu0 %v4042_v56 }
  0x94   :  { %527 = vmatmul.bf16.gmra.mxu1 %v4042_v56 }
  0x95   :  { %1231 = vmatpush.bf16.msrb.mxu1 %v4045_v59 }
  0x96   :  { %1244 = vmatpush.bf16.msra.mxu2 %v4156_v63 }
  0x97   :  { %1257 = vmatpush.bf16.msra.mxu3 %v4206_v30 }
  0x99   :  { %1232 = vmatpush.bf16.msrb.mxu1 %v4056_v62 }
  0x9a   :  { %1245 = vmatpush.bf16.msra.mxu2 %v4178_v11 }
  0x9b   :  { %1258 = vmatpush.bf16.msra.mxu3 %v4225_v42 }
  0x9d   :  { %1233 = vmatpush.bf16.msrb.mxu1 %v4103_v26 }
  0x9e   :  { %1246 = vmatpush.bf16.msra.mxu2 %v4212_v37 }
  0x9f   :  { %1259 = vmatpush.bf16.msra.mxu3 %v4239_v0 }
  0xa0   :  { %v4293_v13 = vpop.f32.mrf.mxu0 }
  0xa1   :  { %v4295_v56 = vpop.f32.mrf.mxu1  ;;  %1234 = vmatpush.bf16.msrb.mxu1 %v4137_v50 }
  0xa2   :  { %1247 = vmatpush.bf16.msra.mxu2 %v4229_v52 }
  0xa3   :  { %1260 = vmatpush.bf16.msra.mxu3 %v4253_v10  ;;  %1035 = vmatmul.bf16.vlgmr.msra.gmra.mxu0 %v3435_v51 }
  0xa4   :  { %1048 = vmatmul.bf16.vlgmr.msra.gmra.mxu1 %v3435_v51  ;;  %1352 = vmatpush.bf16.msra.mxu0 %v3725_v54  ;;  %v4326_v51 = vperm.slane %v4304_v22, 0 }
  0xa5   :  { %1365 = vmatpush.bf16.msra.mxu1 %v3707_v47 }
  0xa6   :  { %5164 = vst [vmem:[#allocation21_spill] sm:$0xff] %v4326_v51 }
  0xa8   :  { %v4312_v24 = vpop.f32.mrf.mxu2  ;;  %v4314_v18 = vpop.f32.mrf.mxu0  ;;  %1353 = vmatpush.bf16.msra.mxu0 %v3758_v2 }
  0xa9   :  { %v455_v33 = vpop.f32.mrf.mxu3  ;;  %5161 = vst [vmem:[#allocation18_spill] sm:$0xff] %v4314_v18  ;;  %v4320_v41 = vpop.f32.mrf.mxu1  ;;  %1366 = vmatpush.bf16.msra.mxu1 %v3738_v58 }
  0xaa   :  { %v4318_v40 = vadd.f32 %v455_v33, %v4309_v23  ;;  %5163 = vst [vmem:[#allocation20_spill] sm:$0xff] %v4320_v41 }
  0xac   :  { %5162 = vst [vmem:[#allocation19_spill] sm:$0xff] %v4318_v40  ;;  %1354 = vmatpush.bf16.msra.mxu0 %v3770_v6  ;;  %v3100_v40 = vld [vmem:[%s5106_s1 + $0x38] sm:$0xff] }
  0xad   :  { %1367 = vmatpush.bf16.msra.mxu1 %v3776_v9  ;;  %1122 = vperm.xlu0 %3257, %v3100_v40  }
  0xb0   :  { %v4328_v60 = vpop.f32.mrf.mxu2  ;;  %v373_v1 = vpop.f32.mrf.mxu0  ;;  %1355 = vmatpush.bf16.msra.mxu0 %v3797_v17 }
  0xb1   :  { %5165 = vst [vmem:[#allocation22_spill] sm:$0xff] %v4328_v60  ;;  %v4333_v36 = vpop.f32.mrf.mxu3  ;;  %v4337_v5 = vadd.f32 %v373_v1, %v4326_v51  ;;  %v402_v16 = vpop.f32.mrf.mxu1  ;;  %1368 = vmatpush.bf16.msra.mxu1 %v3805_v20 }
  0xb2   :  { %5167 = vst [vmem:[#allocation24_spill] sm:$0xff] %v4333_v36  ;;  %v4341_v33 = vadd.f32 %v402_v16, %v4331_v61  ;;  %v4349_v36 = vperm.slane %v4304_v22, 2 }
  0xb3   :  { %5168 = vst [vmem:[#allocation25_spill] sm:$0xff] %v4337_v5 }
  0xb4   :  { %5169 = vst [vmem:[#allocation26_spill] sm:$0xff] %v4341_v33  ;;  %1356 = vmatpush.bf16.msra.mxu0 %v3836_v31 }
  0xb5   :  { %1369 = vmatpush.bf16.msra.mxu1 %v3821_v25  ;;  %5170 = vst [vmem:[#allocation27_spill] sm:$0xff] %v4349_v36 }
  0xb8   :  { %v431_v1 = vpop.f32.mrf.mxu2  ;;  %v4354_v41 = vpop.f32.mrf.mxu0  ;;  %1357 = vmatpush.bf16.msra.mxu0 %v3875_v46 }
  0xb9   :  { %v4352_v5 = vadd.f32 %v431_v1, %v4349_v36  ;;  %v460_v60 = vpop.f32.mrf.mxu3  ;;  %5172 = vst [vmem:[#allocation29_spill] sm:$0xff] %v4354_v41  ;;  %v4360_v40 = vpop.f32.mrf.mxu1  ;;  %1370 = vmatpush.bf16.msra.mxu1 %v3858_v39 }
  0xba   :  { %v4358_v16 = vadd.f32 %v460_v60, %v4309_v23  ;;  %5174 = vst [vmem:[#allocation31_spill] sm:$0xff] %v4360_v40 }
  0xbb   :  { %5171 = vst [vmem:[#allocation28_spill] sm:$0xff] %v4352_v5 }
  0xbc   :  { %5173 = vst [vmem:[#allocation30_spill] sm:$0xff] %v4358_v16  ;;  %1358 = vmatpush.bf16.msra.mxu0 %v3890_v53 }
  0xbd   :  { %1371 = vmatpush.bf16.msra.mxu1 %v3899_v57 }
  0xc0   :  { %v4365_v33 = vpop.f32.mrf.mxu2  ;;  %v378_v5 = vpop.f32.mrf.mxu0  ;;  %1359 = vmatpush.bf16.msra.mxu0 %v3926_v7 }
  0xc1   :  { %5175 = vst [vmem:[#allocation32_spill] sm:$0xff] %v4365_v33  ;;  %v4367_v1 = vpop.f32.mrf.mxu3  ;;  %v4371_v41 = vadd.f32 %v378_v5, %v4326_v51  ;;  %v407_v60 = vpop.f32.mrf.mxu1  ;;  %1372 = vmatpush.bf16.msra.mxu1 %v3929_v8 }
  0xc2   :  { %5176 = vst [vmem:[#allocation33_spill] sm:$0xff] %v4367_v1  ;;  %v4375_v16 = vadd.f32 %v407_v60, %v4331_v61 }
  0xc3   :  { %5177 = vst [vmem:[#allocation34_spill] sm:$0xff] %v4371_v41 }
  0xc4   :  { %5178 = vst [vmem:[#allocation35_spill] sm:$0xff] %v4375_v16 }
  0xc8   :  { %v436_v40 = vpop.f32.mrf.mxu2  ;;  %v4380_v33 = vpop.f32.mrf.mxu0 }
  0xc9   :  { %v4378_v18 = vadd.f32 %v436_v40, %v4349_v36  ;;  %v465_v10 = vpop.f32.mrf.mxu3  ;;  %5180 = vst [vmem:[#allocation37_spill] sm:$0xff] %v4380_v33  ;;  %v4385_v7 = vpop.f32.mrf.mxu1 }
  0xca   :  { %v4383_v1 = vadd.f32 %v465_v10, %v4309_v23  ;;  %5182 = vst [vmem:[#allocation39_spill] sm:$0xff] %v4385_v7 }
  0xcb   :  { %5179 = vst [vmem:[#allocation36_spill] sm:$0xff] %v4378_v18 }
  0xcc   :  { %5181 = vst [vmem:[#allocation38_spill] sm:$0xff] %v4383_v1 }
  0xd0   :  { %v4387_v5 = vpop.f32.mrf.mxu2  ;;  %v383_v8 = vpop.f32.mrf.mxu0 }
  0xd1   :  { %5183 = vst [vmem:[#allocation40_spill] sm:$0xff] %v4387_v5  ;;  %v4389_v41 = vpop.f32.mrf.mxu3  ;;  %v4392_v60 = vadd.f32 %v383_v8, %v4326_v51  ;;  %v412_v16 = vpop.f32.mrf.mxu1  ;;  %v4411_v8 = vperm.slane %v4304_v22, 5 }
  0xd2   :  { %5184 = vst [vmem:[#allocation41_spill] sm:$0xff] %v4389_v41  ;;  %v4395_v40 = vadd.f32 %v412_v16, %v4331_v61  ;;  %v4408_v41 = vperm.slane %v4304_v22, 4 }
  0xd3   :  { %5185 = vst [vmem:[#allocation42_spill] sm:$0xff] %v4392_v60 }
  0xd4   :  { %5186 = vst [vmem:[#allocation43_spill] sm:$0xff] %v4395_v40 }
  0xd5   :  { %5191 = vst [vmem:[#allocation48_spill] sm:$0xff] %v4408_v41 }
  0xd6   :  { %5192 = vst [vmem:[#allocation49_spill] sm:$0xff] %v4411_v8 }
  0xd8   :  { %v441_v18 = vpop.f32.mrf.mxu2  ;;  %v4400_v1 = vpop.f32.mrf.mxu0 }
  0xd9   :  { %v4398_v33 = vadd.f32 %v441_v18, %v4349_v36  ;;  %v470_v10 = vpop.f32.mrf.mxu3  ;;  %5188 = vst [vmem:[#allocation45_spill] sm:$0xff] %v4400_v1  ;;  %v4405_v5 = vpop.f32.mrf.mxu1 }
  0xda   :  { %v4403_v7 = vadd.f32 %v470_v10, %v4309_v23  ;;  %5190 = vst [vmem:[#allocation47_spill] sm:$0xff] %v4405_v5  ;;  %v369_v10 = vadd.f32 %v4293_v13, %v4326_v51  ;;  %v398_v5 = vadd.f32 %v4295_v56, %v4331_v61 }
  0xdb   :  { %5187 = vst [vmem:[#allocation44_spill] sm:$0xff] %v4398_v33 }
  0xdc   :  { %5189 = vst [vmem:[#allocation46_spill] sm:$0xff] %v4403_v7 }
  0xe0   :  { %v4413_v16 = vpop.f32.mrf.mxu2  ;;  %v484_v60 = vpop.f32.mrf.mxu0 }
  0xe1   :  { %5193 = vst [vmem:[#allocation50_spill] sm:$0xff] %v4413_v16  ;;  %v472_v40 = vpop.f32.mrf.mxu3  ;;  %v4416_v18 = vadd.f32 %v484_v60, %v4408_v41  ;;  %v513_v33 = vpop.f32.mrf.mxu1 }
  0xe2   :  { %v4419_v1 = vadd.f32 %v513_v33, %v4411_v8 }
  0xe3   :  { %5194 = vst [vmem:[#allocation51_spill] sm:$0xff] %v4416_v18 }
  0xe4   :  { %5195 = vst [vmem:[#allocation52_spill] sm:$0xff] %v4419_v1 }
  0xe8   :  { %v805_v7 = vpop.f32.mrf.mxu2  ;;  %v4425_v53 = vpop.f32.mrf.mxu0 }
  0xe9   :  { %v835_v22 = vadd.f32 %v805_v7, %v369_v10  ;;  %v818_v57 = vpop.f32.mrf.mxu3  ;;  %5196 = vst [vmem:[#allocation53_spill] sm:$0xff] %v4425_v53  ;;  %v4427_v0 = vpop.f32.mrf.mxu1 }
  0xea   :  { %v855_v16 = vadd.f32 %v818_v57, %v398_v5  ;;  %5197 = vst [vmem:[#allocation54_spill] sm:$0xff] %v4427_v0 }
  0xeb   :  { %v2999_v60 = vmul.f32 -1.442695, %v835_v22 }
  0xec   :  { %v3000_v18 = vmul.f32 -1.442695, %v855_v16 }
  0xed   :  { %3262 = vpow2.f32 %v2999_v60 }
  0xee   :  { %3264 = vpow2.f32 %v3000_v18 }
  0xf0   :  { %v807_v33 = vpop.f32.mrf.mxu2  ;;  %v489_v39 = vpop.f32.mrf.mxu0 }
  0xf1   :  { %v820_v1 = vpop.f32.mrf.mxu3  ;;  %v4430_v13 = vadd.f32 %v489_v39, %v4408_v41  ;;  %v518_v51 = vpop.f32.mrf.mxu1  ;;  %v473_v39 = vadd.f32 %v472_v40, %v4309_v23 }
  0xf2   :  { %v4433_v7 = vadd.f32 %v518_v51, %v4411_v8  ;;  %v4443_v51 = vld [vmem:[%s5107_s5] ss:$0 sm:$0xff] }
  0xf3   :  { %5198 = vst [vmem:[#allocation55_spill] sm:$0xff] %v4430_v13  ;;  %v3263_v56 = vpop.eup %3262 }
  0xf4   :  { %5199 = vst [vmem:[#allocation56_spill] sm:$0xff] %v4433_v7  ;;  %v3265_v10 = vpop.eup %3264  ;;  %v839_v53 = vadd.f32 1.0, %v3263_v56 }
  0xf5   :  { %v859_v57 = vadd.f32 1.0, %v3265_v10 }
  0xf6   :  { %3266 = vrcp.f32 %v839_v53  ;;  %v851_v7 = vand.u32 2147483648, %v839_v53  ;;  %vm845_vm1 = vweird.f32 %v839_v53 }
  0xf7   :  { %3268 = vrcp.f32 %v859_v57  ;;  %vm865_vm5 = vweird.f32 %v859_v57 }
  0xf8   :  { %v831_v5 = vpop.f32.mrf.mxu2  ;;  %v4435_v22 = vpop.f32.mrf.mxu0 }
  0xf9   :  { %v1023_v16 = vpop.f32.mrf.mxu3  ;;  %5200 = vst [vmem:[#allocation57_spill] sm:$0xff] %v4435_v22  ;;  %v4437_v18 = vpop.f32.mrf.mxu1 }
  0xfa   :  { %5201 = vst [vmem:[#allocation58_spill] sm:$0xff] %v4437_v18  ;;  %v1053_v61 = vadd.f32 %v1023_v16, %v473_v39  ;;  %v849_v18 = vand.u32 2147483647, %v839_v53 }
  0xfc   :  { %v3267_v1 = vpop.eup %3266  ;;  %v3097_v16 = vmul.f32 -1.442695, %v1053_v61  ;;  %vm850_vm3 = vcmp.eq.f32.partialorder %v849_v18, 8.507059e+37 }
  0xfd   :  { %v3269_v60 = vpop.eup %3268  ;;  %v841_v33 = vmul.f32 %v3267_v1, %v839_v53  ;;  %vm846_vm0 = vweird.f32 %v3267_v1 }
  0xfe   :  { %v861_v0 = vmul.f32 %v3269_v60, %v859_v57  ;;  %vm847_vm2 = vmor %vm845_vm1, %vm846_vm0  ;;  %vm866_vm4 = vweird.f32 %v3269_v60  ;;  %3270 = vpow2.f32 %v3097_v16 }
  0xff   :  { %v842_v56 = vsub.f32 1.0, %v841_v33  ;;  %vm867_vm6 = vmor %vm865_vm5, %vm866_vm4 }
 0x100   :  { %v862_v10 = vsub.f32 1.0, %v861_v0  ;;  %v833_v13 = vpop.f32.mrf.mxu2  ;;  %v494_v46 = vpop.f32.mrf.mxu0  ;;  %v875_v0 = vadd.f32 %v4443_v51, %v831_v5 }
 0x101   :  { %v843_v22 = vmul.f32 %v3267_v1, %v842_v56  ;;  %v1025_v42 = vpop.f32.mrf.mxu3  ;;  %v4446_v40 = vadd.f32 %v494_v46, %v4408_v41  ;;  %v523_v23 = vpop.f32.mrf.mxu1  ;;  %v852_v13 = vor.u32 1.1754944e-38, %v851_v7  ;;  %v427_v46 = vadd.f32 %v4312_v24, %v4349_v36 }
 0x102   :  { %v863_v25 = vmul.f32 %v3269_v60, %v862_v10  ;;  %v4449_v31 = vadd.f32 %v523_v23, %v4411_v8  ;;  %v871_v42 = vand.u32 2147483648, %v859_v57  ;;  %v869_v23 = vand.u32 2147483647, %v859_v57 }
 0x103   :  { %5202 = vst [vmem:[#allocation59_spill] sm:$0xff] %v4446_v40  ;;  %v844_v30 = vadd.f32 %v3267_v1, %v843_v22 }
 0x104   :  { %5203 = vst [vmem:[#allocation60_spill] sm:$0xff] %v4449_v31  ;;  %v864_v56 = vadd.f32 %v3269_v60, %v863_v25  ;;  %vm870_vm7 = vcmp.eq.f32.partialorder %v869_v23, 8.507059e+37  ;;  %v3271_v7 = vpop.eup %3270 }
 0x105   :  { %v848_v39 = vsel %vm847_vm2, %v3267_v1, %v844_v30  ;;  %v872_v30 = vor.u32 1.1754944e-38, %v871_v42 }
 0x106   :  { %v853_v33 = vsel %vm850_vm3, %v852_v13, %v848_v39  ;;  %v868_v61 = vsel %vm867_vm6, %v3269_v60, %v864_v56  ;;  %v1057_v13 = vadd.f32 1.0, %v3271_v7 }
 0x107   :  { %v876_v10 = vmul.f32 %v875_v0, %v853_v33  ;;  %v873_v25 = vsel %vm870_vm7, %v872_v30, %v868_v61 }
 0x108   :  { %v4454_v53 = vpop.f32.mrf.mxu0  ;;  %v879_v18 = vsub.f32 1.0, %v873_v25  ;;  %v881_v39 = vmul.f32 0.0, %v873_v25  ;;  %vm1063_vm9 = vweird.f32 %v1057_v13 }
 0x109   :  { %v877_v22 = vadd.f32 %v876_v10, %v427_v46  ;;  %5204 = vst [vmem:[#allocation61_spill] sm:$0xff] %v4454_v53  ;;  %v4456_v5 = vpop.f32.mrf.mxu1 }
 0x10a   :  { %5205 = vst [vmem:[#allocation62_spill] sm:$0xff] %v4456_v5  ;;  %v5221_v5 = vld [vmem:[#allocation20_spill] sm:$0xff] }
 0x10b   :  { %3272 = vtanh.f32 %v877_v22 }
 0x10c   :  { %3274 = vrcp.f32 %v1057_v13 }
 0x110   :  { %v499_v24 = vpop.f32.mrf.mxu0 }
 0x111   :  { %v3273_v1 = vpop.eup %3272  ;;  %v4459_v0 = vadd.f32 %v499_v24, %v4408_v41  ;;  %v528_v57 = vpop.f32.mrf.mxu1 }
 0x112   :  { %v880_v16 = vmul.f32 %v3273_v1, %v879_v18  ;;  %v4462_v33 = vadd.f32 %v528_v57, %v4411_v8  ;;  %v3275_v10 = vpop.eup %3274  ;;  %v3107_v57 = vld [vmem:[%s5106_s1 + $0x8] sm:$0xff] }
 0x113   :  { %v1059_v23 = vmul.f32 %v3275_v10, %v1057_v13  ;;  %1325 = vperm.xlu1 %3258, %v3107_v57   ;;  %vm1064_vm8 = vweird.f32 %v3275_v10 }
 0x114   :  { %v4464_v46 = vadd.f32 %v881_v39, %v880_v16  ;;  %v4493_v39 = vld [vmem:[%s5107_s5 + $0x1] ss:$0 sm:$0xff]  ;;  %vm1065_vm10 = vmor %vm1063_vm9, %vm1064_vm8 }
 0x115   :  { %v1060_v7 = vsub.f32 1.0, %v1059_v23  ;;  %v1069_v23 = vand.u32 2147483648, %v1057_v13 }
 0x116   :  { %1103 = vst [vmem:[%s5109_s6] sm:$0xff] %v4464_v46  ;;  %v1137_v60 = vpack.c.bf16 %v4464_v46, %v4464_v46 }
 0x117   :  { %v1061_v1 = vmul.f32 %v3275_v10, %v1060_v7 }
 0x118   :  { %1146 = vmatmul.bf16.vlgmr.msrb.gmra.mxu2 %v1137_v60  ;;  %1159 = vmatmul.bf16.vlgmr.msrb.gmra.mxu3 %v1137_v60  ;;  %v501_v56 = vpop.f32.mrf.mxu0 }
 0x119   :  { %1172 = vmatmul.bf16.vlgmr.msrb.gmra.mxu0 %v1137_v60  ;;  %1378 = vmatpush.bf16.msrb.mxu2 %v3937_v12  ;;  %v530_v42 = vpop.f32.mrf.mxu1  ;;  %v502_v22 = vadd.f32 %v501_v56, %v4408_v41  ;;  %v1062_v60 = vadd.f32 %v3275_v10, %v1061_v1  ;;  %v1070_v1 = vor.u32 1.1754944e-38, %v1069_v23 }
 0x11a   :  { %1441 = vmatpush.bf16.msrb.mxu3 %v3944_v14  ;;  %1454 = vmatpush.bf16.msrb.mxu0 %v3985_v32 }
 0x11d   :  { %1379 = vmatpush.bf16.msrb.mxu2 %v3973_v27 }
 0x11e   :  { %1442 = vmatpush.bf16.msrb.mxu3 %v3957_v21  ;;  %1455 = vmatpush.bf16.msrb.mxu0 %v4012_v43 }
 0x120   :  { %v1036_v61 = vpop.f32.mrf.mxu0 }
 0x121   :  { %1380 = vmatpush.bf16.msrb.mxu2 %v3994_v35  ;;  %v1073_v30 = vadd.f32 %v1036_v61, %v502_v22  ;;  %v1049_v25 = vpop.f32.mrf.mxu1  ;;  %v1067_v61 = vand.u32 2147483647, %v1057_v13 }
 0x122   :  { %1443 = vmatpush.bf16.msrb.mxu3 %v3992_v34  ;;  %1456 = vmatpush.bf16.msrb.mxu0 %v4090_v19  ;;  %v1093_v7 = vadd.f32 %v4493_v39, %v1049_v25 }
 0x123   :  { %v3098_v18 = vmul.f32 -1.442695, %v1073_v30  ;;  %v1066_v30 = vsel %vm1065_vm10, %v3275_v10, %v1062_v60  ;;  %vm1068_vm11 = vcmp.eq.f32.partialorder %v1067_v61, 8.507059e+37 }
 0x124   :  { %v1071_v13 = vsel %vm1068_vm11, %v1070_v1, %v1066_v30 }
 0x125   :  { %1381 = vmatpush.bf16.msrb.mxu2 %v4018_v45  ;;  %3276 = vpow2.f32 %v3098_v18  ;;  %v3108_v18 = vld [vmem:[%s5106_s1 + $0x30] sm:$0xff]  ;;  %v1094_v57 = vmul.f32 %v1093_v7, %v1071_v13 }
 0x126   :  { %1444 = vmatpush.bf16.msrb.mxu3 %v4021_v48  ;;  %1457 = vmatpush.bf16.msrb.mxu0 %v4119_v38 }
 0x127   :  { %1336 = vperm.xlu1 %3258, %v3108_v18  }
 0x128   :  { %v1038_v24 = vpop.f32.mrf.mxu0 }
 0x129   :  { %1382 = vmatpush.bf16.msrb.mxu2 %v4037_v55  ;;  %v1051_v16 = vpop.f32.mrf.mxu1  ;;  %v531_v24 = vadd.f32 %v530_v42, %v4411_v8 }
 0x12a   :  { %1445 = vmatpush.bf16.msrb.mxu3 %v4045_v59  ;;  %1458 = vmatpush.bf16.msrb.mxu0 %v4156_v63 }
 0x12b   :  { %v3277_v56 = vpop.eup %3276  ;;  %v1095_v16 = vadd.f32 %v1094_v57, %v531_v24  ;;  %v5208_v57 = vld [vmem:[#allocation5_spill] sm:$0xff] }
 0x12c   :  { %v1077_v22 = vadd.f32 1.0, %v3277_v56 }
 0x12d   :  { %1383 = vmatpush.bf16.msrb.mxu2 %v4072_v4 }
 0x12e   :  { %1446 = vmatpush.bf16.msrb.mxu3 %v4056_v62  ;;  %3278 = vrcp.f32 %v1077_v22  ;;  %1459 = vmatpush.bf16.msrb.mxu0 %v4178_v11  ;;  %v1089_v56 = vand.u32 2147483648, %v1077_v22  ;;  %v1087_v61 = vand.u32 2147483647, %v1077_v22  ;;  %vm1083_vm13 = vweird.f32 %v1077_v22 }
 0x12f   :  { %3280 = vtanh.f32 %v1095_v16  ;;  %v5211_v16 = vld [vmem:[#allocation7_spill] sm:$0xff] }
 0x130   :  { %v1090_v30 = vor.u32 1.1754944e-38, %v1089_v56  ;;  %vm1088_vm15 = vcmp.eq.f32.partialorder %v1087_v61, 8.507059e+37  ;;  %v5213_v56 = vld [vmem:[#allocation9_spill] sm:$0xff]  ;;  %v5215_v61 = vld [vmem:[#allocation16_spill] sm:$0xff] }
 0x131   :  { %1384 = vmatpush.bf16.msrb.mxu2 %v4107_v29 }
 0x132   :  { %1447 = vmatpush.bf16.msrb.mxu3 %v4103_v26  ;;  %1460 = vmatpush.bf16.msrb.mxu0 %v4212_v37 }
 0x134   :  { %v3279_v10 = vpop.eup %3278 }
 0x135   :  { %1385 = vmatpush.bf16.msrb.mxu2 %v4134_v49  ;;  %v1079_v25 = vmul.f32 %v3279_v10, %v1077_v22  ;;  %vm1084_vm12 = vweird.f32 %v3279_v10  ;;  %v3281_v13 = vpop.eup %3280 }
 0x136   :  { %1448 = vmatpush.bf16.msrb.mxu3 %v4137_v50  ;;  %1461 = vmatpush.bf16.msrb.mxu0 %v4229_v52  ;;  %vm1085_vm14 = vmor %vm1083_vm13, %vm1084_vm12 }
 0x137   :  { %v1080_v60 = vsub.f32 1.0, %v1079_v25  ;;  %v5210_v25 = vld [vmem:[#allocation8_spill] sm:$0xff] }
 0x139   :  { %v1081_v23 = vmul.f32 %v3279_v10, %v1080_v60  ;;  %v5212_v60 = vld [vmem:[#allocation15_spill] sm:$0xff] }
 0x13b   :  { %v1082_v42 = vadd.f32 %v3279_v10, %v1081_v23  ;;  %v5214_v23 = vld [vmem:[#allocation10_spill] sm:$0xff] }
 0x13d   :  { %v1086_v7 = vsel %vm1085_vm14, %v3279_v10, %v1082_v42  ;;  %v5209_v10 = vld [vmem:[#allocation14_spill] sm:$0xff]  ;;  %v5216_v42 = vld [vmem:[#allocation11_spill] sm:$0xff] }
 0x13e   :  { %v1091_v18 = vsel %vm1088_vm15, %v1090_v30, %v1086_v7  ;;  %v5217_v30 = vld [vmem:[#allocation12_spill] sm:$0xff] }
 0x13f   :  { %v1097_v1 = vsub.f32 1.0, %v1091_v18  ;;  %v1099_v40 = vmul.f32 0.0, %v1091_v18  ;;  %v5218_v18 = vld [vmem:[#allocation21_spill] sm:$0xff] }
 0x141   :  { %v1098_v31 = vmul.f32 %v3281_v13, %v1097_v1  ;;  %v5219_v1 = vld [vmem:[#allocation18_spill] sm:$0xff] }
 0x142   :  { %v371_v13 = vadd.f32 %v5219_v1, %v5218_v18 }
 0x143   :  { %v4510_v24 = vadd.f32 %v1099_v40, %v1098_v31  ;;  %v5206_v31 = vld [vmem:[#allocation13_spill] sm:$0xff]  ;;  %v5207_v40 = vld [vmem:[#allocation6_spill] sm:$0xff] }
 0x145   :  { %3099 = vst [vmem:[%s5109_s6 + $0x78] sm:$0xff] %v4510_v24  ;;  %v1226_v22 = vpack.c.bf16 %v4510_v24, %v4510_v24 }
 0x147   :  { %1235 = vmatmul.bf16.vlgmr.msrb.gmra.mxu1 %v1226_v22  ;;  %1248 = vmatmul.bf16.vlgmr.msra.gmra.mxu2 %v1226_v22 }
 0x148   :  { %1261 = vmatmul.bf16.vlgmr.msra.gmra.mxu3 %v1226_v22  ;;  %1467 = vmatpush.bf16.msrb.mxu1 %v4105_v28  ;;  %v5220_v22 = vld [vmem:[#allocation23_spill] sm:$0xff] }
 0x149   :  { %1566 = vmatpush.bf16.msra.mxu2 %v3725_v54  ;;  %1579 = vmatpush.bf16.msra.mxu3 %v3707_v47  ;;  %v400_v8 = vadd.f32 %v5221_v5, %v5220_v22 }
 0x14c   :  { %1468 = vmatpush.bf16.msrb.mxu1 %v4131_v44 }
 0x14d   :  { %1567 = vmatpush.bf16.msra.mxu2 %v3758_v2  ;;  %1580 = vmatpush.bf16.msra.mxu3 %v3738_v58 }
 0x150   :  { %1469 = vmatpush.bf16.msrb.mxu1 %v4168_v3 }
 0x151   :  { %1568 = vmatpush.bf16.msra.mxu2 %v3770_v6  ;;  %1581 = vmatpush.bf16.msra.mxu3 %v3776_v9 }
 0x154   :  { %1470 = vmatpush.bf16.msrb.mxu1 %v4181_v15 }
 0x155   :  { %1569 = vmatpush.bf16.msra.mxu2 %v3797_v17  ;;  %1582 = vmatpush.bf16.msra.mxu3 %v3805_v20 }
 0x158   :  { %1471 = vmatpush.bf16.msrb.mxu1 %v5206_v31 }
 0x159   :  { %1570 = vmatpush.bf16.msra.mxu2 %v5207_v40  ;;  %1583 = vmatpush.bf16.msra.mxu3 %v5208_v57 }
 0x15c   :  { %1472 = vmatpush.bf16.msrb.mxu1 %v5209_v10 }
 0x15d   :  { %1571 = vmatpush.bf16.msra.mxu2 %v5210_v25  ;;  %1584 = vmatpush.bf16.msra.mxu3 %v5211_v16 }
 0x160   :  { %1473 = vmatpush.bf16.msrb.mxu1 %v5212_v60 }
 0x161   :  { %1572 = vmatpush.bf16.msra.mxu2 %v5213_v56  ;;  %1585 = vmatpush.bf16.msra.mxu3 %v5214_v23 }
 0x164   :  { %1474 = vmatpush.bf16.msrb.mxu1 %v5215_v61 }
 0x165   :  { %1573 = vmatpush.bf16.msra.mxu2 %v5216_v42  ;;  %1586 = vmatpush.bf16.msra.mxu3 %v5217_v30 }
 0x196   :  { %v1173_v7 = vpop.f32.mrf.mxu0 }
 0x19b   :  { %v1147_v53 = vpop.f32.mrf.mxu2  ;;  %v1160_v41 = vpop.f32.mrf.mxu3 }
 0x19c   :  { %v1177_v60 = vadd.f32 %v1147_v53, %v371_v13  ;;  %v1197_v16 = vadd.f32 %v1160_v41, %v400_v8 }
 0x19e   :  { %v3101_v56 = vmul.f32 -1.442695, %v1177_v60  ;;  %v3102_v25 = vmul.f32 -1.442695, %v1197_v16  ;;  %v1175_v23 = vpop.f32.mrf.mxu0 }
 0x1a0   :  { %3282 = vpow2.f32 %v3101_v56 }
 0x1a1   :  { %3284 = vpow2.f32 %v3102_v25 }
 0x1a3   :  { %v1149_v61 = vpop.f32.mrf.mxu2  ;;  %v1162_v42 = vpop.f32.mrf.mxu3 }
 0x1a6   :  { %v3283_v10 = vpop.eup %3282 }
 0x1a7   :  { %v3285_v30 = vpop.eup %3284  ;;  %v1181_v57 = vadd.f32 1.0, %v3283_v10  ;;  %v1217_v10 = vadd.f32 %v4443_v51, %v1173_v7 }
 0x1a8   :  { %v1201_v40 = vadd.f32 1.0, %v3285_v30  ;;  %v5222_v30 = vld [vmem:[#allocation22_spill] sm:$0xff] }
 0x1a9   :  { %3286 = vrcp.f32 %v1181_v57  ;;  %v1193_v53 = vand.u32 2147483648, %v1181_v57  ;;  %v1191_v16 = vand.u32 2147483647, %v1181_v57  ;;  %vm1187_vm1 = vweird.f32 %v1181_v57 }
 0x1aa   :  { %3288 = vrcp.f32 %v1201_v40  ;;  %v429_v13 = vadd.f32 %v5222_v30, %v4349_v36  ;;  %vm1207_vm5 = vweird.f32 %v1201_v40 }
 0x1ab   :  { %v1194_v56 = vor.u32 1.1754944e-38, %v1193_v53  ;;  %vm1192_vm3 = vcmp.eq.f32.partialorder %v1191_v16, 8.507059e+37 }
 0x1af   :  { %v3287_v1 = vpop.eup %3286 }
 0x1b0   :  { %v3289_v18 = vpop.eup %3288  ;;  %v1183_v5 = vmul.f32 %v3287_v1, %v1181_v57  ;;  %vm1188_vm0 = vweird.f32 %v3287_v1 }
 0x1b1   :  { %v1203_v22 = vmul.f32 %v3289_v18, %v1201_v40  ;;  %vm1189_vm2 = vmor %vm1187_vm1, %vm1188_vm0  ;;  %vm1208_vm4 = vweird.f32 %v3289_v18 }
 0x1b2   :  { %v1184_v31 = vsub.f32 1.0, %v1183_v5  ;;  %vm1209_vm6 = vmor %vm1207_vm5, %vm1208_vm4 }
 0x1b3   :  { %v1204_v41 = vsub.f32 1.0, %v1203_v22  ;;  %v1213_v22 = vand.u32 2147483648, %v1201_v40 }
 0x1b4   :  { %v1185_v8 = vmul.f32 %v3287_v1, %v1184_v31  ;;  %v1211_v31 = vand.u32 2147483647, %v1201_v40 }
 0x1b5   :  { %v1205_v60 = vmul.f32 %v3289_v18, %v1204_v41  ;;  %v1214_v57 = vor.u32 1.1754944e-38, %v1213_v22 }
 0x1b6   :  { %v1186_v25 = vadd.f32 %v3287_v1, %v1185_v8  ;;  %vm1212_vm7 = vcmp.eq.f32.partialorder %v1211_v31, 8.507059e+37 }
 0x1b7   :  { %v1206_v42 = vadd.f32 %v3289_v18, %v1205_v60 }
 0x1b8   :  { %v1190_v23 = vsel %vm1189_vm2, %v3287_v1, %v1186_v25 }
 0x1b9   :  { %v1195_v61 = vsel %vm1192_vm3, %v1194_v56, %v1190_v23  ;;  %v1210_v8 = vsel %vm1209_vm6, %v3289_v18, %v1206_v42  ;;  %v5223_v56 = vld [vmem:[#allocation46_spill] sm:$0xff] }
 0x1ba   :  { %v1218_v5 = vmul.f32 %v1217_v10, %v1195_v61  ;;  %v1215_v53 = vsel %vm1212_vm7, %v1214_v57, %v1210_v8  ;;  %v4572_v8 = vld [vmem:[%s5106_s1 + $0x10] sm:$0xff] }
 0x1bb   :  { %v1221_v7 = vsub.f32 1.0, %v1215_v53  ;;  %v1223_v60 = vmul.f32 %v1215_v53, %v4464_v46  ;;  %1539 = vperm.xlu2 %3259, %v4572_v8  }
 0x1bc   :  { %v1219_v41 = vadd.f32 %v1218_v5, %v429_v13 }
 0x1be   :  { %3290 = vtanh.f32 %v1219_v41 }
 0x1c4   :  { %v3291_v1 = vpop.eup %3290  ;;  %v1236_v16 = vpop.f32.mrf.mxu1 }
 0x1c5   :  { %v1222_v25 = vmul.f32 %v3291_v1, %v1221_v7  ;;  %v1266_v23 = vadd.f32 %v1236_v16, %v5223_v56 }
 0x1c7   :  { %v4551_v30 = vadd.f32 %v1223_v60, %v1222_v25  ;;  %v3103_v10 = vmul.f32 -1.442695, %v1266_v23 }
 0x1c9   :  { %3105 = vst [vmem:[%s5109_s6 + $0x10] sm:$0xff] %v4551_v30  ;;  %v1351_v40 = vpack.c.bf16 %v4551_v30, %v4551_v30  ;;  %3292 = vpow2.f32 %v3103_v10 }
 0x1ca   :  { %v1249_v18 = vpop.f32.mrf.mxu2 }
 0x1cb   :  { %1360 = vmatmul.bf16.vlgmr.msra.gmra.mxu0 %v1351_v40  ;;  %1373 = vmatmul.bf16.vlgmr.msra.gmra.mxu1 %v1351_v40  ;;  %v1286_v46 = vadd.f32 %v1249_v18, %v4459_v0  ;;  %v1262_v61 = vpop.f32.mrf.mxu3 }
 0x1cc   :  { %1386 = vmatmul.bf16.vlgmr.msrb.gmra.mxu2 %v1351_v40  ;;  %1592 = vmatpush.bf16.msra.mxu0 %v3937_v12  ;;  %v1238_v42 = vpop.f32.mrf.mxu1 }
 0x1cd   :  { %1655 = vmatpush.bf16.msra.mxu1 %v3944_v14  ;;  %1668 = vmatpush.bf16.msrb.mxu2 %v3985_v32  ;;  %v3104_v13 = vmul.f32 -1.442695, %v1286_v46  ;;  %v1306_v42 = vadd.f32 %v4493_v39, %v1262_v61 }
 0x1cf   :  { %v3293_v5 = vpop.eup %3292  ;;  %3294 = vpow2.f32 %v3104_v13 }
 0x1d0   :  { %1593 = vmatpush.bf16.msra.mxu0 %v3973_v27  ;;  %v1270_v22 = vadd.f32 1.0, %v3293_v5 }
 0x1d1   :  { %1656 = vmatpush.bf16.msra.mxu1 %v3957_v21  ;;  %1669 = vmatpush.bf16.msrb.mxu2 %v4012_v43 }
 0x1d2   :  { %3296 = vrcp.f32 %v1270_v22  ;;  %v1251_v0 = vpop.f32.mrf.mxu2  ;;  %v1282_v16 = vand.u32 2147483648, %v1270_v22  ;;  %v1280_v60 = vand.u32 2147483647, %v1270_v22  ;;  %vm1276_vm9 = vweird.f32 %v1270_v22 }
 0x1d3   :  { %v1264_v31 = vpop.f32.mrf.mxu3 }
 0x1d4   :  { %1594 = vmatpush.bf16.msra.mxu0 %v3994_v35  ;;  %v1283_v40 = vor.u32 1.1754944e-38, %v1282_v16  ;;  %vm1281_vm11 = vcmp.eq.f32.partialorder %v1280_v60, 8.507059e+37 }
 0x1d5   :  { %1657 = vmatpush.bf16.msra.mxu1 %v3992_v34  ;;  %1670 = vmatpush.bf16.msrb.mxu2 %v4090_v19  ;;  %v3295_v41 = vpop.eup %3294 }
 0x1d6   :  { %v1290_v57 = vadd.f32 1.0, %v3295_v41 }
 0x1d8   :  { %1595 = vmatpush.bf16.msra.mxu0 %v4018_v45  ;;  %v3297_v53 = vpop.eup %3296  ;;  %3298 = vrcp.f32 %v1290_v57  ;;  %v1302_v0 = vand.u32 2147483648, %v1290_v57  ;;  %vm1296_vm13 = vweird.f32 %v1290_v57 }
 0x1d9   :  { %1658 = vmatpush.bf16.msra.mxu1 %v4021_v48  ;;  %1671 = vmatpush.bf16.msrb.mxu2 %v4119_v38  ;;  %v1272_v7 = vmul.f32 %v3297_v53, %v1270_v22  ;;  %vm1277_vm8 = vweird.f32 %v3297_v53  ;;  %v1300_v22 = vand.u32 2147483647, %v1290_v57 }
 0x1da   :  { %vm1278_vm10 = vmor %vm1276_vm9, %vm1277_vm8  ;;  %v1303_v61 = vor.u32 1.1754944e-38, %v1302_v0  ;;  %v5233_v0 = vld [vmem:[#allocation16_spill] sm:$0xff] }
 0x1db   :  { %v1273_v1 = vsub.f32 1.0, %v1272_v7  ;;  %vm1301_vm15 = vcmp.eq.f32.partialorder %v1300_v22, 8.507059e+37  ;;  %v5235_v22 = vld [vmem:[#allocation12_spill] sm:$0xff] }
 0x1dc   :  { %1596 = vmatpush.bf16.msra.mxu0 %v4037_v55 }
 0x1dd   :  { %1659 = vmatpush.bf16.msra.mxu1 %v4045_v59  ;;  %1672 = vmatpush.bf16.msrb.mxu2 %v4156_v63  ;;  %v1274_v25 = vmul.f32 %v3297_v53, %v1273_v1 }
 0x1de   :  { %v3299_v56 = vpop.eup %3298 }
 0x1df   :  { %v1292_v23 = vmul.f32 %v3299_v56, %v1290_v57  ;;  %v1275_v10 = vadd.f32 %v3297_v53, %v1274_v25  ;;  %vm1297_vm12 = vweird.f32 %v3299_v56 }
 0x1e0   :  { %1597 = vmatpush.bf16.msra.mxu0 %v4072_v4  ;;  %vm1298_vm14 = vmor %vm1296_vm13, %vm1297_vm12 }
 0x1e1   :  { %1660 = vmatpush.bf16.msra.mxu1 %v4056_v62  ;;  %1673 = vmatpush.bf16.msrb.mxu2 %v4178_v11  ;;  %v1293_v18 = vsub.f32 1.0, %v1292_v23  ;;  %v1279_v46 = vsel %vm1278_vm10, %v3297_v53, %v1275_v10  ;;  %v5226_v10 = vld [vmem:[#allocation5_spill] sm:$0xff] }
 0x1e2   :  { %v1284_v13 = vsel %vm1281_vm11, %v1283_v40, %v1279_v46  ;;  %v5227_v40 = vld [vmem:[#allocation14_spill] sm:$0xff]  ;;  %v5229_v46 = vld [vmem:[#allocation7_spill] sm:$0xff] }
 0x1e3   :  { %v1294_v5 = vmul.f32 %v3299_v56, %v1293_v18  ;;  %v1307_v31 = vmul.f32 %v1306_v42, %v1284_v13  ;;  %v5228_v18 = vld [vmem:[#allocation8_spill] sm:$0xff]  ;;  %v5230_v42 = vld [vmem:[#allocation15_spill] sm:$0xff]  ;;  %v5231_v13 = vld [vmem:[#allocation9_spill] sm:$0xff] }
 0x1e4   :  { %1598 = vmatpush.bf16.msra.mxu0 %v4107_v29 }
 0x1e5   :  { %1661 = vmatpush.bf16.msra.mxu1 %v4103_v26  ;;  %1674 = vmatpush.bf16.msrb.mxu2 %v4212_v37  ;;  %v1308_v41 = vadd.f32 %v1307_v31, %v4462_v33  ;;  %v1295_v7 = vadd.f32 %v3299_v56, %v1294_v5  ;;  %v5232_v5 = vld [vmem:[#allocation10_spill] sm:$0xff]  ;;  %v5234_v31 = vld [vmem:[#allocation11_spill] sm:$0xff] }
 0x1e7   :  { %3300 = vtanh.f32 %v1308_v41  ;;  %v1299_v53 = vsel %vm1298_vm14, %v3299_v56, %v1295_v7  ;;  %v5225_v56 = vld [vmem:[#allocation6_spill] sm:$0xff] }
 0x1e8   :  { %1599 = vmatpush.bf16.msra.mxu0 %v4134_v49  ;;  %v1304_v1 = vsel %vm1301_vm15, %v1303_v61, %v1299_v53  ;;  %v4628_v41 = vld [vmem:[%s5106_s1 + $0x28] sm:$0xff]  ;;  %v5236_v61 = vld [vmem:[#allocation25_spill] sm:$0xff] }
 0x1e9   :  { %1662 = vmatpush.bf16.msra.mxu1 %v4137_v50  ;;  %1675 = vmatpush.bf16.msrb.mxu2 %v4229_v52  ;;  %v1310_v16 = vsub.f32 1.0, %v1304_v1  ;;  %v1312_v57 = vmul.f32 %v1304_v1, %v4510_v24  ;;  %v5224_v24 = vld [vmem:[#allocation13_spill] sm:$0xff] }
 0x1ea   :  { %1550 = vperm.xlu2 %3259, %v4628_v41  }
 0x1ed   :  { %v3301_v25 = vpop.eup %3300 }
 0x1ee   :  { %v1311_v60 = vmul.f32 %v3301_v25, %v1310_v16  ;;  %v5237_v16 = vld [vmem:[#allocation26_spill] sm:$0xff] }
 0x1f0   :  { %v4593_v23 = vadd.f32 %v1312_v57, %v1311_v60 }
 0x1f2   :  { %3106 = vst [vmem:[%s5109_s6 + $0x68] sm:$0xff] %v4593_v23  ;;  %v1440_v33 = vpack.c.bf16 %v4593_v23, %v4593_v23 }
 0x1f4   :  { %1449 = vmatmul.bf16.vlgmr.msrb.gmra.mxu3 %v1440_v33  ;;  %1462 = vmatmul.bf16.vlgmr.msrb.gmra.mxu0 %v1440_v33 }
 0x1f5   :  { %1475 = vmatmul.bf16.vlgmr.msrb.gmra.mxu1 %v1440_v33  ;;  %1681 = vmatpush.bf16.msrb.mxu3 %v4105_v28 }
 0x1f6   :  { %1778 = vmatpush.bf16.msrb.mxu0 %v3725_v54  ;;  %1791 = vmatpush.bf16.msrb.mxu1 %v3707_v47 }
 0x1f9   :  { %1682 = vmatpush.bf16.msrb.mxu3 %v4131_v44 }
 0x1fa   :  { %1779 = vmatpush.bf16.msrb.mxu0 %v3758_v2  ;;  %1792 = vmatpush.bf16.msrb.mxu1 %v3738_v58 }
 0x1fd   :  { %1683 = vmatpush.bf16.msrb.mxu3 %v4168_v3 }
 0x1fe   :  { %1780 = vmatpush.bf16.msrb.mxu0 %v3770_v6  ;;  %1793 = vmatpush.bf16.msrb.mxu1 %v3776_v9 }
 0x201   :  { %1684 = vmatpush.bf16.msrb.mxu3 %v4181_v15 }
 0x202   :  { %1781 = vmatpush.bf16.msrb.mxu0 %v3797_v17  ;;  %1794 = vmatpush.bf16.msrb.mxu1 %v3805_v20 }
 0x205   :  { %1685 = vmatpush.bf16.msrb.mxu3 %v5224_v24 }
 0x206   :  { %1782 = vmatpush.bf16.msrb.mxu0 %v5225_v56  ;;  %1795 = vmatpush.bf16.msrb.mxu1 %v5226_v10 }
 0x209   :  { %1686 = vmatpush.bf16.msrb.mxu3 %v5227_v40 }
 0x20a   :  { %1783 = vmatpush.bf16.msrb.mxu0 %v5228_v18  ;;  %1796 = vmatpush.bf16.msrb.mxu1 %v5229_v46 }
 0x20d   :  { %1687 = vmatpush.bf16.msrb.mxu3 %v5230_v42 }
 0x20e   :  { %1784 = vmatpush.bf16.msrb.mxu0 %v5231_v13  ;;  %1797 = vmatpush.bf16.msrb.mxu1 %v5232_v5 }
 0x211   :  { %1688 = vmatpush.bf16.msrb.mxu3 %v5233_v0 }
 0x212   :  { %1785 = vmatpush.bf16.msrb.mxu0 %v5234_v31  ;;  %1798 = vmatpush.bf16.msrb.mxu1 %v5235_v22 }
 0x248   :  { %v1361_v7 = vpop.f32.mrf.mxu0  ;;  %v1374_v53 = vpop.f32.mrf.mxu1 }
 0x249   :  { %v1391_v1 = vadd.f32 %v1361_v7, %v5236_v61  ;;  %v1411_v25 = vadd.f32 %v1374_v53, %v5237_v16 }
 0x24b   :  { %v3109_v60 = vmul.f32 -1.442695, %v1391_v1  ;;  %v3110_v57 = vmul.f32 -1.442695, %v1411_v25 }
 0x24d   :  { %3302 = vpow2.f32 %v3109_v60 }
 0x24e   :  { %3304 = vpow2.f32 %v3110_v57 }
 0x24f   :  { %v1387_v33 = vpop.f32.mrf.mxu2 }
 0x250   :  { %v1363_v36 = vpop.f32.mrf.mxu0  ;;  %v1376_v22 = vpop.f32.mrf.mxu1 }
 0x253   :  { %v3303_v31 = vpop.eup %3302 }
 0x254   :  { %v3305_v0 = vpop.eup %3304  ;;  %v1395_v5 = vadd.f32 1.0, %v3303_v31 }
 0x255   :  { %v1415_v13 = vadd.f32 1.0, %v3305_v0  ;;  %v1431_v0 = vadd.f32 %v4443_v51, %v1387_v33 }
 0x256   :  { %3306 = vrcp.f32 %v1395_v5  ;;  %v1407_v1 = vand.u32 2147483648, %v1395_v5  ;;  %v1405_v25 = vand.u32 2147483647, %v1395_v5  ;;  %vm1401_vm1 = vweird.f32 %v1395_v5 }
 0x257   :  { %3308 = vrcp.f32 %v1415_v13  ;;  %v1389_v42 = vpop.f32.mrf.mxu2  ;;  %v1427_v10 = vand.u32 2147483648, %v1415_v13  ;;  %vm1421_vm5 = vweird.f32 %v1415_v13 }
 0x258   :  { %v1408_v22 = vor.u32 1.1754944e-38, %v1407_v1  ;;  %vm1406_vm3 = vcmp.eq.f32.partialorder %v1405_v25, 8.507059e+37  ;;  %v5240_v25 = vld [vmem:[#allocation61_spill] sm:$0xff] }
 0x25c   :  { %v3307_v46 = vpop.eup %3306 }
 0x25d   :  { %v3309_v18 = vpop.eup %3308  ;;  %v1397_v40 = vmul.f32 %v3307_v46, %v1395_v5  ;;  %vm1402_vm0 = vweird.f32 %v3307_v46 }
 0x25e   :  { %v1417_v7 = vmul.f32 %v3309_v18, %v1415_v13  ;;  %vm1403_vm2 = vmor %vm1401_vm1, %vm1402_vm0  ;;  %vm1422_vm4 = vweird.f32 %v3309_v18 }
 0x25f   :  { %v1398_v61 = vsub.f32 1.0, %v1397_v40  ;;  %v1425_v40 = vand.u32 2147483647, %v1415_v13  ;;  %vm1423_vm6 = vmor %vm1421_vm5, %vm1422_vm4 }
 0x260   :  { %v1418_v53 = vsub.f32 1.0, %v1417_v7  ;;  %v5238_v7 = vld [vmem:[#allocation28_spill] sm:$0xff] }
 0x261   :  { %v1399_v16 = vmul.f32 %v3307_v46, %v1398_v61  ;;  %vm1426_vm7 = vcmp.eq.f32.partialorder %v1425_v40, 8.507059e+37 }
 0x262   :  { %v1419_v60 = vmul.f32 %v3309_v18, %v1418_v53  ;;  %v1428_v53 = vor.u32 1.1754944e-38, %v1427_v10  ;;  %v5241_v10 = vld [vmem:[#allocation17_spill] sm:$0xff] }
 0x263   :  { %v1400_v36 = vadd.f32 %v3307_v46, %v1399_v16  ;;  %v5239_v16 = vld [vmem:[#allocation48_spill] sm:$0xff] }
 0x264   :  { %v1420_v57 = vadd.f32 %v3309_v18, %v1419_v60  ;;  %v497_v51 = vadd.f32 %v5240_v25, %v5239_v16 }
 0x265   :  { %v1404_v31 = vsel %vm1403_vm2, %v3307_v46, %v1400_v36 }
 0x266   :  { %v1409_v42 = vsel %vm1406_vm3, %v1408_v22, %v1404_v31  ;;  %v1424_v24 = vsel %vm1423_vm6, %v3309_v18, %v1420_v57  ;;  %v5242_v18 = vld [vmem:[#allocation41_spill] sm:$0xff] }
 0x267   :  { %v1432_v56 = vmul.f32 %v1431_v0, %v1409_v42  ;;  %v1429_v5 = vsel %vm1426_vm7, %v1428_v53, %v1424_v24  ;;  %v468_v0 = vadd.f32 %v5242_v18, %v5241_v10 }
 0x268   :  { %v1435_v1 = vsub.f32 1.0, %v1429_v5  ;;  %v1437_v36 = vmul.f32 %v1429_v5, %v4551_v30 }
 0x269   :  { %v1433_v61 = vadd.f32 %v1432_v56, %v5238_v7 }
 0x26b   :  { %3310 = vtanh.f32 %v1433_v61 }
 0x271   :  { %v3311_v46 = vpop.eup %3310  ;;  %v1463_v33 = vpop.f32.mrf.mxu0 }
 0x272   :  { %v1436_v60 = vmul.f32 %v3311_v46, %v1435_v1  ;;  %v1500_v22 = vadd.f32 %v1463_v33, %v497_v51  ;;  %v4638_v31 = vpop.f32.mrf.mxu1  ;;  %v3123_v51 = vld [vmem:[%s5106_s1 + $0x18] sm:$0xff]  ;;  %v3124_v33 = vld [vmem:[%s5106_s1 + $0x20] sm:$0xff] }
 0x273   :  { %1753 = vperm.xlu0 %3257, %v3123_v51   ;;  %1764 = vperm.xlu1 %3258, %v3124_v33  }
 0x274   :  { %v4640_v13 = vadd.f32 %v1437_v36, %v1436_v60  ;;  %v3112_v56 = vmul.f32 -1.442695, %v1500_v22  ;;  %1972 = vperm.xlu2 %3259, %v3123_v51  }
 0x276   :  { %3113 = vst [vmem:[%s5109_s6 + $0x20] sm:$0xff] %v4640_v13  ;;  %v1565_v24 = vpack.c.bf16 %v4640_v13, %v4640_v13  ;;  %3312 = vpow2.f32 %v3112_v56 }
 0x277   :  { %v1450_v30 = vpop.f32.mrf.mxu3 }
 0x278   :  { %1574 = vmatmul.bf16.vlgmr.msra.gmra.mxu2 %v1565_v24  ;;  %1587 = vmatmul.bf16.vlgmr.msra.gmra.mxu3 %v1565_v24  ;;  %v1480_v42 = vadd.f32 %v1450_v30, %v468_v0 }
 0x279   :  { %1600 = vmatmul.bf16.vlgmr.msra.gmra.mxu0 %v1565_v24  ;;  %1804 = vmatpush.bf16.msra.mxu2 %v3937_v12  ;;  %v1465_v57 = vpop.f32.mrf.mxu0 }
 0x27a   :  { %1867 = vmatpush.bf16.msra.mxu3 %v3944_v14  ;;  %1880 = vmatpush.bf16.msra.mxu0 %v3985_v32  ;;  %v3111_v40 = vmul.f32 -1.442695, %v1480_v42  ;;  %v1478_v7 = vpop.f32.mrf.mxu1 }
 0x27b   :  { %1962 = vperm.xlu0 %3257, %v3124_v33   ;;  %2180 = vperm.xlu1 %3258, %v4572_v8   ;;  %v1520_v7 = vadd.f32 %v4493_v39, %v4638_v31  ;;  %v5243_v8 = vld [vmem:[#allocation49_spill] sm:$0xff] }
 0x27c   :  { %v3313_v61 = vpop.eup %3312  ;;  %3314 = vpow2.f32 %v3111_v40  ;;  %2170 = vperm.xlu2 %3259, %v4628_v41  }
 0x27d   :  { %1805 = vmatpush.bf16.msra.mxu2 %v3973_v27  ;;  %v4654_v53 = vadd.f32 1.0, %v3313_v61 }
 0x27e   :  { %1868 = vmatpush.bf16.msra.mxu3 %v3957_v21  ;;  %1881 = vmatpush.bf16.msra.mxu0 %v4012_v43 }
 0x27f   :  { %v1452_v5 = vpop.f32.mrf.mxu3  ;;  %3316 = vrcp.f32 %v4654_v53  ;;  %v1516_v33 = vand.u32 2147483648, %v4654_v53  ;;  %vm1510_vm13 = vweird.f32 %v4654_v53  ;;  %v1514_v39 = vand.u32 2147483647, %v4654_v53 }
 0x281   :  { %1806 = vmatpush.bf16.msra.mxu2 %v3994_v35  ;;  %vm1515_vm15 = vcmp.eq.f32.partialorder %v1514_v39, 8.507059e+37  ;;  %v5257_v39 = vld [vmem:[#allocation21_spill] sm:$0xff] }
 0x282   :  { %1869 = vmatpush.bf16.msra.mxu3 %v3992_v34  ;;  %1882 = vmatpush.bf16.msra.mxu0 %v4090_v19  ;;  %v3315_v1 = vpop.eup %3314 }
 0x283   :  { %v1484_v46 = vadd.f32 1.0, %v3315_v1 }
 0x285   :  { %1807 = vmatpush.bf16.msra.mxu2 %v4018_v45  ;;  %3318 = vrcp.f32 %v1484_v46  ;;  %v3317_v25 = vpop.eup %3316  ;;  %v1496_v18 = vand.u32 2147483648, %v1484_v46  ;;  %v1494_v30 = vand.u32 2147483647, %v1484_v46  ;;  %vm1490_vm9 = vweird.f32 %v1484_v46 }
 0x286   :  { %1870 = vmatpush.bf16.msra.mxu3 %v4021_v48  ;;  %1883 = vmatpush.bf16.msra.mxu0 %v4119_v38  ;;  %v1506_v60 = vmul.f32 %v3317_v25, %v4654_v53  ;;  %vm1511_vm12 = vweird.f32 %v3317_v25 }
 0x287   :  { %v1497_v40 = vor.u32 1.1754944e-38, %v1496_v18  ;;  %vm1495_vm11 = vcmp.eq.f32.partialorder %v1494_v30, 8.507059e+37  ;;  %vm1512_vm14 = vmor %vm1510_vm13, %vm1511_vm12 }
 0x288   :  { %v1507_v56 = vsub.f32 1.0, %v1506_v60 }
 0x289   :  { %1808 = vmatpush.bf16.msra.mxu2 %v4037_v55 }
 0x28a   :  { %1871 = vmatpush.bf16.msra.mxu3 %v4045_v59  ;;  %1884 = vmatpush.bf16.msra.mxu0 %v4156_v63  ;;  %v1508_v42 = vmul.f32 %v3317_v25, %v1507_v56 }
 0x28b   :  { %v3319_v36 = vpop.eup %3318 }
 0x28c   :  { %v1486_v22 = vmul.f32 %v3319_v36, %v1484_v46  ;;  %vm1491_vm8 = vweird.f32 %v3319_v36  ;;  %v1509_v1 = vadd.f32 %v3317_v25, %v1508_v42  ;;  %v5244_v46 = vld [vmem:[#allocation62_spill] sm:$0xff]  ;;  %v5247_v42 = vld [vmem:[#allocation5_spill] sm:$0xff] }
 0x28d   :  { %1809 = vmatpush.bf16.msra.mxu2 %v4072_v4  ;;  %vm1492_vm10 = vmor %vm1490_vm9, %vm1491_vm8  ;;  %v526_v51 = vadd.f32 %v5244_v46, %v5243_v8  ;;  %v5254_v46 = vld [vmem:[#allocation16_spill] sm:$0xff] }
 0x28e   :  { %v1487_v24 = vsub.f32 1.0, %v1486_v22  ;;  %1872 = vmatpush.bf16.msra.mxu3 %v4056_v62  ;;  %1885 = vmatpush.bf16.msra.mxu0 %v4178_v11  ;;  %v1513_v31 = vsel %vm1512_vm14, %v3317_v25, %v1509_v1  ;;  %v5246_v25 = vld [vmem:[#allocation6_spill] sm:$0xff] }
 0x28f   :  { %v5253_v1 = vld [vmem:[#allocation10_spill] sm:$0xff] }
 0x290   :  { %v1488_v0 = vmul.f32 %v3319_v36, %v1487_v24 }
 0x291   :  { %1810 = vmatpush.bf16.msra.mxu2 %v4107_v29 }
 0x292   :  { %v1489_v57 = vadd.f32 %v3319_v36, %v1488_v0  ;;  %1873 = vmatpush.bf16.msra.mxu3 %v4103_v26  ;;  %1886 = vmatpush.bf16.msra.mxu0 %v4212_v37 }
 0x294   :  { %v1493_v61 = vsel %vm1492_vm10, %v3319_v36, %v1489_v57  ;;  %v1517_v36 = vor.u32 1.1754944e-38, %v1516_v33  ;;  %v5248_v57 = vld [vmem:[#allocation14_spill] sm:$0xff]  ;;  %v5256_v33 = vld [vmem:[#allocation12_spill] sm:$0xff] }
 0x295   :  { %1811 = vmatpush.bf16.msra.mxu2 %v4134_v49  ;;  %v1498_v5 = vsel %vm1495_vm11, %v1497_v40, %v1493_v61  ;;  %v5249_v40 = vld [vmem:[#allocation8_spill] sm:$0xff]  ;;  %v5251_v61 = vld [vmem:[#allocation15_spill] sm:$0xff] }
 0x296   :  { %v1521_v60 = vmul.f32 %v1520_v7, %v1498_v5  ;;  %1874 = vmatpush.bf16.msra.mxu3 %v4137_v50  ;;  %1887 = vmatpush.bf16.msra.mxu0 %v4229_v52  ;;  %v1518_v22 = vsel %vm1515_vm15, %v1517_v36, %v1513_v31  ;;  %v5250_v7 = vld [vmem:[#allocation7_spill] sm:$0xff]  ;;  %v5252_v5 = vld [vmem:[#allocation9_spill] sm:$0xff] }
 0x297   :  { %v1524_v56 = vsub.f32 1.0, %v1518_v22  ;;  %v1526_v0 = vmul.f32 %v1518_v22, %v4593_v23  ;;  %v5245_v23 = vld [vmem:[#allocation13_spill] sm:$0xff]  ;;  %v5259_v36 = vld [vmem:[#allocation23_spill] sm:$0xff] }
 0x298   :  { %v1522_v41 = vadd.f32 %v1521_v60, %v526_v51  ;;  %v5255_v51 = vld [vmem:[#allocation11_spill] sm:$0xff] }
 0x299   :  { %v5260_v22 = vld [vmem:[#allocation31_spill] sm:$0xff] }
 0x29a   :  { %3320 = vtanh.f32 %v1522_v41  ;;  %v5258_v41 = vld [vmem:[#allocation29_spill] sm:$0xff] }
 0x29b   :  { %v376_v31 = vadd.f32 %v5258_v41, %v5257_v39 }
 0x2a0   :  { %v3321_v24 = vpop.eup %3320 }
 0x2a1   :  { %v1525_v18 = vmul.f32 %v3321_v24, %v1524_v56  ;;  %v405_v56 = vadd.f32 %v5260_v22, %v5259_v36 }
 0x2a3   :  { %v4694_v30 = vadd.f32 %v1526_v0, %v1525_v18 }
 0x2a5   :  { %3114 = vst [vmem:[%s5109_s6 + $0x58] sm:$0xff] %v4694_v30  ;;  %v1654_v53 = vpack.c.bf16 %v4694_v30, %v4694_v30 }
 0x2a7   :  { %1663 = vmatmul.bf16.vlgmr.msra.gmra.mxu1 %v1654_v53  ;;  %1676 = vmatmul.bf16.vlgmr.msrb.gmra.mxu2 %v1654_v53 }
 0x2a8   :  { %1689 = vmatmul.bf16.vlgmr.msrb.gmra.mxu3 %v1654_v53  ;;  %1893 = vmatpush.bf16.msra.mxu1 %v4105_v28 }
 0x2a9   :  { %1986 = vmatpush.bf16.msrb.mxu2 %v3725_v54  ;;  %1999 = vmatpush.bf16.msrb.mxu3 %v3707_v47 }
 0x2ac   :  { %1894 = vmatpush.bf16.msra.mxu1 %v4131_v44 }
 0x2ad   :  { %1987 = vmatpush.bf16.msrb.mxu2 %v3758_v2  ;;  %2000 = vmatpush.bf16.msrb.mxu3 %v3738_v58 }
 0x2b0   :  { %1895 = vmatpush.bf16.msra.mxu1 %v4168_v3 }
 0x2b1   :  { %1988 = vmatpush.bf16.msrb.mxu2 %v3770_v6  ;;  %2001 = vmatpush.bf16.msrb.mxu3 %v3776_v9 }
 0x2b4   :  { %1896 = vmatpush.bf16.msra.mxu1 %v4181_v15 }
 0x2b5   :  { %1989 = vmatpush.bf16.msrb.mxu2 %v3797_v17  ;;  %2002 = vmatpush.bf16.msrb.mxu3 %v3805_v20 }
 0x2b8   :  { %1897 = vmatpush.bf16.msra.mxu1 %v5245_v23 }
 0x2b9   :  { %1990 = vmatpush.bf16.msrb.mxu2 %v5246_v25  ;;  %2003 = vmatpush.bf16.msrb.mxu3 %v5247_v42 }
 0x2bc   :  { %1898 = vmatpush.bf16.msra.mxu1 %v5248_v57 }
 0x2bd   :  { %1991 = vmatpush.bf16.msrb.mxu2 %v5249_v40  ;;  %2004 = vmatpush.bf16.msrb.mxu3 %v5250_v7 }
 0x2c0   :  { %1899 = vmatpush.bf16.msra.mxu1 %v5251_v61 }
 0x2c1   :  { %1992 = vmatpush.bf16.msrb.mxu2 %v5252_v5  ;;  %2005 = vmatpush.bf16.msrb.mxu3 %v5253_v1 }
 0x2c4   :  { %1900 = vmatpush.bf16.msra.mxu1 %v5254_v46 }
 0x2c5   :  { %1993 = vmatpush.bf16.msrb.mxu2 %v5255_v51  ;;  %2006 = vmatpush.bf16.msrb.mxu3 %v5256_v33 }
 0x2f6   :  { %v1601_v60 = vpop.f32.mrf.mxu0 }
 0x2fb   :  { %v1575_v24 = vpop.f32.mrf.mxu2  ;;  %v1588_v18 = vpop.f32.mrf.mxu3 }
 0x2fc   :  { %v1605_v0 = vadd.f32 %v1575_v24, %v376_v31  ;;  %v1625_v53 = vadd.f32 %v1588_v18, %v405_v56 }
 0x2fe   :  { %v3117_v8 = vmul.f32 -1.442695, %v1605_v0  ;;  %v3118_v10 = vmul.f32 -1.442695, %v1625_v53  ;;  %v1603_v16 = vpop.f32.mrf.mxu0 }
 0x300   :  { %3322 = vpow2.f32 %v3117_v8 }
 0x301   :  { %3324 = vpow2.f32 %v3118_v10 }
 0x303   :  { %v1577_v46 = vpop.f32.mrf.mxu2  ;;  %v1590_v51 = vpop.f32.mrf.mxu3 }
 0x306   :  { %v3323_v1 = vpop.eup %3322 }
 0x307   :  { %v3325_v33 = vpop.eup %3324  ;;  %v1609_v5 = vadd.f32 1.0, %v3323_v1  ;;  %v4733_v1 = vld [vmem:[%s5107_s5] ss:$0 sm:$0xff] }
 0x308   :  { %v1629_v61 = vadd.f32 1.0, %v3325_v33  ;;  %v1645_v51 = vadd.f32 %v4733_v1, %v1601_v60 }
 0x309   :  { %3326 = vrcp.f32 %v1609_v5  ;;  %v1621_v31 = vand.u32 2147483648, %v1609_v5  ;;  %v1619_v16 = vand.u32 2147483647, %v1609_v5  ;;  %vm1615_vm1 = vweird.f32 %v1609_v5 }
 0x30a   :  { %3328 = vrcp.f32 %v1629_v61  ;;  %vm1635_vm5 = vweird.f32 %v1629_v61 }
 0x30b   :  { %v1622_v46 = vor.u32 1.1754944e-38, %v1621_v31  ;;  %vm1620_vm3 = vcmp.eq.f32.partialorder %v1619_v16, 8.507059e+37 }
 0x30f   :  { %v3327_v41 = vpop.eup %3326 }
 0x310   :  { %v3329_v39 = vpop.eup %3328  ;;  %v1611_v22 = vmul.f32 %v3327_v41, %v1609_v5  ;;  %vm1616_vm0 = vweird.f32 %v3327_v41  ;;  %v1639_v5 = vand.u32 2147483647, %v1629_v61 }
 0x311   :  { %v1631_v36 = vmul.f32 %v3329_v39, %v1629_v61  ;;  %vm1617_vm2 = vmor %vm1615_vm1, %vm1616_vm0  ;;  %vm1636_vm4 = vweird.f32 %v3329_v39 }
 0x312   :  { %v1612_v7 = vsub.f32 1.0, %v1611_v22  ;;  %vm1637_vm6 = vmor %vm1635_vm5, %vm1636_vm4  ;;  %vm1640_vm7 = vcmp.eq.f32.partialorder %v1639_v5, 8.507059e+37 }
 0x313   :  { %v1632_v56 = vsub.f32 1.0, %v1631_v36  ;;  %v5262_v36 = vld [vmem:[#allocation32_spill] sm:$0xff] }
 0x314   :  { %v1613_v24 = vmul.f32 %v3327_v41, %v1612_v7  ;;  %v5261_v7 = vld [vmem:[#allocation27_spill] sm:$0xff] }
 0x315   :  { %v1633_v8 = vmul.f32 %v3329_v39, %v1632_v56  ;;  %v434_v53 = vadd.f32 %v5262_v36, %v5261_v7  ;;  %v1641_v56 = vand.u32 2147483648, %v1629_v61 }
 0x316   :  { %v1614_v10 = vadd.f32 %v3327_v41, %v1613_v24 }
 0x317   :  { %v1634_v0 = vadd.f32 %v3329_v39, %v1633_v8  ;;  %v1642_v40 = vor.u32 1.1754944e-38, %v1641_v56 }
 0x318   :  { %v1618_v33 = vsel %vm1617_vm2, %v3327_v41, %v1614_v10 }
 0x319   :  { %v1623_v18 = vsel %vm1620_vm3, %v1622_v46, %v1618_v33  ;;  %v1638_v24 = vsel %vm1637_vm6, %v3329_v39, %v1634_v0  ;;  %v5263_v46 = vld [vmem:[#allocation38_spill] sm:$0xff]  ;;  %v5264_v39 = vld [vmem:[#allocation59_spill] sm:$0xff] }
 0x31a   :  { %v1646_v22 = vmul.f32 %v1645_v51, %v1623_v18  ;;  %v1643_v57 = vsel %vm1640_vm7, %v1642_v40, %v1638_v24 }
 0x31b   :  { %v1649_v60 = vsub.f32 1.0, %v1643_v57  ;;  %v1651_v8 = vmul.f32 %v1643_v57, %v4640_v13 }
 0x31c   :  { %v1647_v31 = vadd.f32 %v1646_v22, %v434_v53 }
 0x31e   :  { %3330 = vtanh.f32 %v1647_v31 }
 0x324   :  { %v3331_v41 = vpop.eup %3330  ;;  %v1664_v16 = vpop.f32.mrf.mxu1 }
 0x325   :  { %v1650_v10 = vmul.f32 %v3331_v41, %v1649_v60  ;;  %v1694_v33 = vadd.f32 %v1664_v16, %v5263_v46 }
 0x327   :  { %v4740_v36 = vadd.f32 %v1651_v8, %v1650_v10  ;;  %v3119_v51 = vmul.f32 -1.442695, %v1694_v33 }
 0x329   :  { %3121 = vst [vmem:[%s5109_s6 + $0x30] sm:$0xff] %v4740_v36  ;;  %v1777_v61 = vpack.c.bf16 %v4740_v36, %v4740_v36  ;;  %3332 = vpow2.f32 %v3119_v51 }
 0x32a   :  { %v1677_v40 = vpop.f32.mrf.mxu2 }
 0x32b   :  { %1786 = vmatmul.bf16.vlgmr.msrb.gmra.mxu0 %v1777_v61  ;;  %1799 = vmatmul.bf16.vlgmr.msrb.gmra.mxu1 %v1777_v61  ;;  %v1714_v13 = vadd.f32 %v1677_v40, %v5264_v39  ;;  %v1690_v57 = vpop.f32.mrf.mxu3 }
 0x32c   :  { %1812 = vmatmul.bf16.vlgmr.msra.gmra.mxu2 %v1777_v61  ;;  %2012 = vmatpush.bf16.msrb.mxu0 %v3937_v12  ;;  %v1666_v18 = vpop.f32.mrf.mxu1 }
 0x32d   :  { %2075 = vmatpush.bf16.msrb.mxu1 %v3944_v14  ;;  %2088 = vmatpush.bf16.msra.mxu2 %v3985_v32  ;;  %v3120_v0 = vmul.f32 -1.442695, %v1714_v13  ;;  %v4770_v18 = vld [vmem:[%s5107_s5 + $0x1] ss:$0 sm:$0xff] }
 0x32f   :  { %v3333_v53 = vpop.eup %3332  ;;  %3334 = vpow2.f32 %v3120_v0  ;;  %v1734_v0 = vadd.f32 %v4770_v18, %v1690_v57 }
 0x330   :  { %2013 = vmatpush.bf16.msrb.mxu0 %v3973_v27  ;;  %v1698_v22 = vadd.f32 1.0, %v3333_v53 }
 0x331   :  { %2076 = vmatpush.bf16.msrb.mxu1 %v3957_v21  ;;  %2089 = vmatpush.bf16.msra.mxu2 %v4012_v43 }
 0x332   :  { %3336 = vrcp.f32 %v1698_v22  ;;  %v1679_v56 = vpop.f32.mrf.mxu2  ;;  %v1710_v10 = vand.u32 2147483648, %v1698_v22  ;;  %v1708_v46 = vand.u32 2147483647, %v1698_v22  ;;  %vm1704_vm9 = vweird.f32 %v1698_v22 }
 0x333   :  { %v1692_v5 = vpop.f32.mrf.mxu3 }
 0x334   :  { %2014 = vmatpush.bf16.msrb.mxu0 %v3994_v35  ;;  %v1711_v40 = vor.u32 1.1754944e-38, %v1710_v10  ;;  %vm1709_vm11 = vcmp.eq.f32.partialorder %v1708_v46, 8.507059e+37 }
 0x335   :  { %2077 = vmatpush.bf16.msrb.mxu1 %v3992_v34  ;;  %2090 = vmatpush.bf16.msra.mxu2 %v4090_v19  ;;  %v3335_v31 = vpop.eup %3334 }
 0x336   :  { %v1718_v24 = vadd.f32 1.0, %v3335_v31 }
 0x338   :  { %2015 = vmatpush.bf16.msrb.mxu0 %v4018_v45  ;;  %v3337_v60 = vpop.eup %3336  ;;  %3338 = vrcp.f32 %v1718_v24  ;;  %v1730_v56 = vand.u32 2147483648, %v1718_v24  ;;  %v1728_v31 = vand.u32 2147483647, %v1718_v24  ;;  %vm1724_vm13 = vweird.f32 %v1718_v24 }
 0x339   :  { %2078 = vmatpush.bf16.msrb.mxu1 %v4021_v48  ;;  %2091 = vmatpush.bf16.msra.mxu2 %v4119_v38  ;;  %v1700_v41 = vmul.f32 %v3337_v60, %v1698_v22  ;;  %vm1705_vm8 = vweird.f32 %v3337_v60 }
 0x33a   :  { %vm1706_vm10 = vmor %vm1704_vm9, %vm1705_vm8  ;;  %v1731_v57 = vor.u32 1.1754944e-38, %v1730_v56  ;;  %vm1729_vm15 = vcmp.eq.f32.partialorder %v1728_v31, 8.507059e+37  ;;  %v5272_v56 = vld [vmem:[#allocation16_spill] sm:$0xff] }
 0x33b   :  { %v1701_v16 = vsub.f32 1.0, %v1700_v41  ;;  %v5274_v31 = vld [vmem:[#allocation12_spill] sm:$0xff] }
 0x33c   :  { %2016 = vmatpush.bf16.msrb.mxu0 %v4037_v55 }
 0x33d   :  { %2079 = vmatpush.bf16.msrb.mxu1 %v4045_v59  ;;  %2092 = vmatpush.bf16.msra.mxu2 %v4156_v63  ;;  %v1702_v8 = vmul.f32 %v3337_v60, %v1701_v16 }
 0x33e   :  { %v3339_v33 = vpop.eup %3338 }
 0x33f   :  { %v1720_v51 = vmul.f32 %v3339_v33, %v1718_v24  ;;  %v1703_v61 = vadd.f32 %v3337_v60, %v1702_v8  ;;  %vm1725_vm12 = vweird.f32 %v3339_v33 }
 0x340   :  { %2017 = vmatpush.bf16.msrb.mxu0 %v4072_v4  ;;  %vm1726_vm14 = vmor %vm1724_vm13, %vm1725_vm12 }
 0x341   :  { %2080 = vmatpush.bf16.msrb.mxu1 %v4056_v62  ;;  %2093 = vmatpush.bf16.msra.mxu2 %v4178_v11  ;;  %v1721_v39 = vsub.f32 1.0, %v1720_v51  ;;  %v1707_v13 = vsel %vm1706_vm10, %v3337_v60, %v1703_v61  ;;  %v5265_v60 = vld [vmem:[#allocation60_spill] sm:$0xff] }
 0x342   :  { %v1712_v53 = vsel %vm1709_vm11, %v1711_v40, %v1707_v13  ;;  %v5268_v13 = vld [vmem:[#allocation7_spill] sm:$0xff] }
 0x343   :  { %v1722_v22 = vmul.f32 %v3339_v33, %v1721_v39  ;;  %v1735_v5 = vmul.f32 %v1734_v0, %v1712_v53  ;;  %v5267_v39 = vld [vmem:[#allocation8_spill] sm:$0xff]  ;;  %v5269_v0 = vld [vmem:[#allocation15_spill] sm:$0xff]  ;;  %v5270_v53 = vld [vmem:[#allocation9_spill] sm:$0xff] }
 0x344   :  { %2018 = vmatpush.bf16.msrb.mxu0 %v4107_v29 }
 0x345   :  { %2081 = vmatpush.bf16.msrb.mxu1 %v4103_v26  ;;  %2094 = vmatpush.bf16.msra.mxu2 %v4212_v37  ;;  %v1736_v41 = vadd.f32 %v1735_v5, %v5265_v60  ;;  %v1723_v16 = vadd.f32 %v3339_v33, %v1722_v22  ;;  %v5271_v22 = vld [vmem:[#allocation10_spill] sm:$0xff]  ;;  %v5273_v5 = vld [vmem:[#allocation11_spill] sm:$0xff] }
 0x347   :  { %3340 = vtanh.f32 %v1736_v41  ;;  %v1727_v10 = vsel %vm1726_vm14, %v3339_v33, %v1723_v16  ;;  %v5275_v16 = vld [vmem:[#allocation34_spill] sm:$0xff] }
 0x348   :  { %2019 = vmatpush.bf16.msrb.mxu0 %v4134_v49  ;;  %v1732_v8 = vsel %vm1729_vm15, %v1731_v57, %v1727_v10  ;;  %v5276_v57 = vld [vmem:[#allocation35_spill] sm:$0xff] }
 0x349   :  { %2082 = vmatpush.bf16.msrb.mxu1 %v4137_v50  ;;  %2095 = vmatpush.bf16.msra.mxu2 %v4229_v52  ;;  %v1738_v46 = vsub.f32 1.0, %v1732_v8  ;;  %v1740_v24 = vmul.f32 %v1732_v8, %v4694_v30  ;;  %v5266_v30 = vld [vmem:[#allocation14_spill] sm:$0xff] }
 0x34d   :  { %v3341_v51 = vpop.eup %3340 }
 0x34e   :  { %v1739_v61 = vmul.f32 %v3341_v51, %v1738_v46 }
 0x350   :  { %v4781_v40 = vadd.f32 %v1740_v24, %v1739_v61 }
 0x352   :  { %3122 = vst [vmem:[%s5109_s6 + $0x48] sm:$0xff] %v4781_v40  ;;  %v1866_v33 = vpack.c.bf16 %v4781_v40, %v4781_v40 }
 0x354   :  { %1875 = vmatmul.bf16.vlgmr.msra.gmra.mxu3 %v1866_v33  ;;  %1888 = vmatmul.bf16.vlgmr.msra.gmra.mxu0 %v1866_v33 }
 0x355   :  { %1901 = vmatmul.bf16.vlgmr.msra.gmra.mxu1 %v1866_v33  ;;  %2101 = vmatpush.bf16.msra.mxu3 %v4105_v28 }
 0x356   :  { %2194 = vmatpush.bf16.msra.mxu0 %v3725_v54  ;;  %2207 = vmatpush.bf16.msra.mxu1 %v3707_v47 }
 0x359   :  { %2102 = vmatpush.bf16.msra.mxu3 %v4131_v44 }
 0x35a   :  { %2195 = vmatpush.bf16.msra.mxu0 %v3758_v2  ;;  %2208 = vmatpush.bf16.msra.mxu1 %v3738_v58 }
 0x35d   :  { %2103 = vmatpush.bf16.msra.mxu3 %v4168_v3 }
 0x35e   :  { %2196 = vmatpush.bf16.msra.mxu0 %v3770_v6  ;;  %2209 = vmatpush.bf16.msra.mxu1 %v3776_v9 }
 0x361   :  { %2104 = vmatpush.bf16.msra.mxu3 %v4181_v15 }
 0x362   :  { %2197 = vmatpush.bf16.msra.mxu0 %v3797_v17  ;;  %2210 = vmatpush.bf16.msra.mxu1 %v3805_v20 }
 0x365   :  { %2105 = vmatpush.bf16.msra.mxu3 %v5245_v23 }
 0x366   :  { %2198 = vmatpush.bf16.msra.mxu0 %v5246_v25  ;;  %2211 = vmatpush.bf16.msra.mxu1 %v5247_v42 }
 0x369   :  { %2106 = vmatpush.bf16.msra.mxu3 %v5266_v30 }
 0x36a   :  { %2199 = vmatpush.bf16.msra.mxu0 %v5267_v39  ;;  %2212 = vmatpush.bf16.msra.mxu1 %v5268_v13 }
 0x36d   :  { %2107 = vmatpush.bf16.msra.mxu3 %v5269_v0 }
 0x36e   :  { %2200 = vmatpush.bf16.msra.mxu0 %v5270_v53  ;;  %2213 = vmatpush.bf16.msra.mxu1 %v5271_v22 }
 0x371   :  { %2108 = vmatpush.bf16.msra.mxu3 %v5272_v56 }
 0x372   :  { %2201 = vmatpush.bf16.msra.mxu0 %v5273_v5  ;;  %2214 = vmatpush.bf16.msra.mxu1 %v5274_v31 }
 0x3a8   :  { %v1787_v60 = vpop.f32.mrf.mxu0  ;;  %v1800_v41 = vpop.f32.mrf.mxu1 }
 0x3a9   :  { %v1817_v10 = vadd.f32 %v1787_v60, %v5275_v16  ;;  %v1837_v8 = vadd.f32 %v1800_v41, %v5276_v57 }
 0x3ab   :  { %v3125_v46 = vmul.f32 -1.442695, %v1817_v10  ;;  %v3126_v51 = vmul.f32 -1.442695, %v1837_v8 }
 0x3ad   :  { %3342 = vpow2.f32 %v3125_v46 }
 0x3ae   :  { %3344 = vpow2.f32 %v3126_v51 }
 0x3af   :  { %v1813_v61 = vpop.f32.mrf.mxu2 }
 0x3b0   :  { %v1789_v24 = vpop.f32.mrf.mxu0  ;;  %v1802_v33 = vpop.f32.mrf.mxu1 }
 0x3b3   :  { %v3343_v7 = vpop.eup %3342 }
 0x3b4   :  { %v3345_v22 = vpop.eup %3344  ;;  %v1821_v56 = vadd.f32 1.0, %v3343_v7 }
 0x3b5   :  { %v1841_v53 = vadd.f32 1.0, %v3345_v22  ;;  %v1857_v22 = vadd.f32 %v4733_v1, %v1813_v61 }
 0x3b6   :  { %3346 = vrcp.f32 %v1821_v56  ;;  %v1833_v10 = vand.u32 2147483648, %v1821_v56  ;;  %v1831_v8 = vand.u32 2147483647, %v1821_v56  ;;  %vm1827_vm1 = vweird.f32 %v1821_v56 }
 0x3b7   :  { %3348 = vrcp.f32 %v1841_v53  ;;  %v1815_v31 = vpop.f32.mrf.mxu2  ;;  %v1853_v39 = vand.u32 2147483648, %v1841_v53  ;;  %vm1847_vm5 = vweird.f32 %v1841_v53 }
 0x3b8   :  { %v1834_v24 = vor.u32 1.1754944e-38, %v1833_v10  ;;  %vm1832_vm3 = vcmp.eq.f32.partialorder %v1831_v8, 8.507059e+37  ;;  %v5279_v8 = vld [vmem:[#allocation57_spill] sm:$0xff] }
 0x3bc   :  { %v3347_v5 = vpop.eup %3346 }
 0x3bd   :  { %v3349_v0 = vpop.eup %3348  ;;  %v1823_v13 = vmul.f32 %v3347_v5, %v1821_v56  ;;  %vm1828_vm0 = vweird.f32 %v3347_v5 }
 0x3be   :  { %v1843_v60 = vmul.f32 %v3349_v0, %v1841_v53  ;;  %vm1829_vm2 = vmor %vm1827_vm1, %vm1828_vm0  ;;  %vm1848_vm4 = vweird.f32 %v3349_v0 }
 0x3bf   :  { %v1824_v16 = vsub.f32 1.0, %v1823_v13  ;;  %v1851_v13 = vand.u32 2147483647, %v1841_v53  ;;  %vm1849_vm6 = vmor %vm1847_vm5, %vm1848_vm4 }
 0x3c0   :  { %v1844_v41 = vsub.f32 1.0, %v1843_v60  ;;  %v5277_v60 = vld [vmem:[#allocation36_spill] sm:$0xff] }
 0x3c1   :  { %v1825_v57 = vmul.f32 %v3347_v5, %v1824_v16  ;;  %vm1852_vm7 = vcmp.eq.f32.partialorder %v1851_v13, 8.507059e+37 }
 0x3c2   :  { %v1845_v46 = vmul.f32 %v3349_v0, %v1844_v41  ;;  %v1854_v41 = vor.u32 1.1754944e-38, %v1853_v39  ;;  %v5280_v39 = vld [vmem:[#allocation17_spill] sm:$0xff] }
 0x3c3   :  { %v1826_v51 = vadd.f32 %v3347_v5, %v1825_v57  ;;  %v5278_v57 = vld [vmem:[#allocation48_spill] sm:$0xff] }
 0x3c4   :  { %v1846_v33 = vadd.f32 %v3349_v0, %v1845_v46  ;;  %v492_v61 = vadd.f32 %v5279_v8, %v5278_v57 }
 0x3c5   :  { %v1830_v7 = vsel %vm1829_vm2, %v3347_v5, %v1826_v51 }
 0x3c6   :  { %v1835_v31 = vsel %vm1832_vm3, %v1834_v24, %v1830_v7  ;;  %v1850_v42 = vsel %vm1849_vm6, %v3349_v0, %v1846_v33  ;;  %v5281_v0 = vld [vmem:[#allocation33_spill] sm:$0xff] }
 0x3c7   :  { %v1858_v30 = vmul.f32 %v1857_v22, %v1835_v31  ;;  %v1855_v56 = vsel %vm1852_vm7, %v1854_v41, %v1850_v42  ;;  %v463_v31 = vadd.f32 %v5281_v0, %v5280_v39 }
 0x3c8   :  { %v1861_v10 = vsub.f32 1.0, %v1855_v56  ;;  %v1863_v24 = vmul.f32 %v1855_v56, %v4740_v36 }
 0x3c9   :  { %v1859_v16 = vadd.f32 %v1858_v30, %v5277_v60 }
 0x3cb   :  { %3350 = vtanh.f32 %v1859_v16 }
 0x3d1   :  { %v3351_v5 = vpop.eup %3350  ;;  %v1889_v51 = vpop.f32.mrf.mxu0 }
 0x3d2   :  { %v1862_v46 = vmul.f32 %v3351_v5, %v1861_v10  ;;  %v1926_v7 = vadd.f32 %v1889_v51, %v492_v61  ;;  %v1902_v22 = vpop.f32.mrf.mxu1 }
 0x3d4   :  { %v4820_v53 = vadd.f32 %v1863_v24, %v1862_v46  ;;  %v3128_v30 = vmul.f32 -1.442695, %v1926_v7 }
 0x3d6   :  { %3129 = vst [vmem:[%s5109_s6 + $0x40] sm:$0xff] %v4820_v53  ;;  %v1985_v42 = vpack.c.bf16 %v4820_v53, %v4820_v53  ;;  %3352 = vpow2.f32 %v3128_v30 }
 0x3d7   :  { %v1876_v36 = vpop.f32.mrf.mxu3 }
 0x3d8   :  { %1994 = vmatmul.bf16.vlgmr.msrb.gmra.mxu2 %v1985_v42  ;;  %2007 = vmatmul.bf16.vlgmr.msrb.gmra.mxu3 %v1985_v42  ;;  %v1906_v33 = vadd.f32 %v1876_v36, %v463_v31 }
 0x3d9   :  { %2020 = vmatmul.bf16.vlgmr.msrb.gmra.mxu0 %v1985_v42  ;;  %2220 = vmatpush.bf16.msrb.mxu2 %v3937_v12  ;;  %v1891_v13 = vpop.f32.mrf.mxu0 }
 0x3da   :  { %2283 = vmatpush.bf16.msrb.mxu3 %v3944_v14  ;;  %2296 = vmatpush.bf16.msrb.mxu0 %v3985_v32  ;;  %v3127_v60 = vmul.f32 -1.442695, %v1906_v33  ;;  %v1904_v16 = vpop.f32.mrf.mxu1 }
 0x3dc   :  { %v3353_v41 = vpop.eup %3352  ;;  %3354 = vpow2.f32 %v3127_v60  ;;  %v1946_v60 = vadd.f32 %v4770_v18, %v1902_v22 }
 0x3dd   :  { %2221 = vmatpush.bf16.msrb.mxu2 %v3973_v27  ;;  %v1930_v56 = vadd.f32 1.0, %v3353_v41 }
 0x3de   :  { %2284 = vmatpush.bf16.msrb.mxu3 %v3957_v21  ;;  %2297 = vmatpush.bf16.msrb.mxu0 %v4012_v43 }
 0x3df   :  { %v1878_v10 = vpop.f32.mrf.mxu3  ;;  %3356 = vrcp.f32 %v1930_v56  ;;  %vm1936_vm13 = vweird.f32 %v1930_v56 }
 0x3e1   :  { %2222 = vmatpush.bf16.msrb.mxu2 %v3994_v35 }
 0x3e2   :  { %2285 = vmatpush.bf16.msrb.mxu3 %v3992_v34  ;;  %2298 = vmatpush.bf16.msrb.mxu0 %v4090_v19  ;;  %v3355_v5 = vpop.eup %3354 }
 0x3e3   :  { %v1910_v8 = vadd.f32 1.0, %v3355_v5  ;;  %v5282_v5 = vld [vmem:[#allocation49_spill] sm:$0xff] }
 0x3e5   :  { %2223 = vmatpush.bf16.msrb.mxu2 %v4018_v45  ;;  %3358 = vrcp.f32 %v1910_v8  ;;  %v3357_v61 = vpop.eup %3356  ;;  %v1922_v42 = vand.u32 2147483648, %v1910_v8  ;;  %v1920_v31 = vand.u32 2147483647, %v1910_v8  ;;  %vm1916_vm9 = vweird.f32 %v1910_v8 }
 0x3e6   :  { %2286 = vmatpush.bf16.msrb.mxu3 %v4021_v48  ;;  %2299 = vmatpush.bf16.msrb.mxu0 %v4119_v38  ;;  %v1932_v51 = vmul.f32 %v3357_v61, %v1930_v56  ;;  %vm1937_vm12 = vweird.f32 %v3357_v61 }
 0x3e7   :  { %v1923_v13 = vor.u32 1.1754944e-38, %v1922_v42  ;;  %vm1921_vm11 = vcmp.eq.f32.partialorder %v1920_v31, 8.507059e+37  ;;  %vm1938_vm14 = vmor %vm1936_vm13, %vm1937_vm12 }
 0x3e8   :  { %v1933_v7 = vsub.f32 1.0, %v1932_v51  ;;  %v5283_v51 = vld [vmem:[#allocation58_spill] sm:$0xff] }
 0x3e9   :  { %2224 = vmatpush.bf16.msrb.mxu2 %v4037_v55 }
 0x3ea   :  { %2287 = vmatpush.bf16.msrb.mxu3 %v4045_v59  ;;  %2300 = vmatpush.bf16.msrb.mxu0 %v4156_v63  ;;  %v1934_v36 = vmul.f32 %v3357_v61, %v1933_v7  ;;  %v1942_v7 = vand.u32 2147483648, %v1930_v56 }
 0x3eb   :  { %v3359_v46 = vpop.eup %3358 }
 0x3ec   :  { %v1912_v24 = vmul.f32 %v3359_v46, %v1910_v8  ;;  %vm1917_vm8 = vweird.f32 %v3359_v46  ;;  %v1935_v10 = vadd.f32 %v3357_v61, %v1934_v36  ;;  %v1943_v42 = vor.u32 1.1754944e-38, %v1942_v7 }
 0x3ed   :  { %2225 = vmatpush.bf16.msrb.mxu2 %v4072_v4  ;;  %vm1918_vm10 = vmor %vm1916_vm9, %vm1917_vm8 }
 0x3ee   :  { %2288 = vmatpush.bf16.msrb.mxu3 %v4056_v62  ;;  %2301 = vmatpush.bf16.msrb.mxu0 %v4178_v11  ;;  %v1913_v30 = vsub.f32 1.0, %v1912_v24  ;;  %v521_v24 = vadd.f32 %v5283_v51, %v5282_v5  ;;  %v5296_v51 = vld [vmem:[#allocation23_spill] sm:$0xff] }
 0x3f0   :  { %v1914_v0 = vmul.f32 %v3359_v46, %v1913_v30  ;;  %v1940_v30 = vand.u32 2147483647, %v1930_v56 }
 0x3f1   :  { %2226 = vmatpush.bf16.msrb.mxu2 %v4107_v29 }
 0x3f2   :  { %2289 = vmatpush.bf16.msrb.mxu3 %v4103_v26  ;;  %2302 = vmatpush.bf16.msrb.mxu0 %v4212_v37  ;;  %v1915_v33 = vadd.f32 %v3359_v46, %v1914_v0  ;;  %vm1941_vm15 = vcmp.eq.f32.partialorder %v1940_v30, 8.507059e+37 }
 0x3f4   :  { %v1919_v16 = vsel %vm1918_vm10, %v3359_v46, %v1915_v33  ;;  %v1939_v46 = vsel %vm1938_vm14, %v3357_v61, %v1935_v10  ;;  %v5293_v61 = vld [vmem:[#allocation12_spill] sm:$0xff] }
 0x3f5   :  { %2227 = vmatpush.bf16.msrb.mxu2 %v4134_v49  ;;  %v1924_v41 = vsel %vm1921_vm11, %v1923_v13, %v1919_v16  ;;  %v1944_v0 = vsel %vm1941_vm15, %v1943_v42, %v1939_v46 }
 0x3f6   :  { %2290 = vmatpush.bf16.msrb.mxu3 %v4137_v50  ;;  %2303 = vmatpush.bf16.msrb.mxu0 %v4229_v52  ;;  %v1947_v8 = vmul.f32 %v1946_v60, %v1924_v41  ;;  %v1950_v31 = vsub.f32 1.0, %v1944_v0  ;;  %v1952_v13 = vmul.f32 %v1944_v0, %v4781_v40  ;;  %v5290_v40 = vld [vmem:[#allocation10_spill] sm:$0xff]  ;;  %v5294_v60 = vld [vmem:[#allocation21_spill] sm:$0xff] }
 0x3f7   :  { %v5295_v41 = vld [vmem:[#allocation37_spill] sm:$0xff] }
 0x3f8   :  { %v1948_v22 = vadd.f32 %v1947_v8, %v521_v24  ;;  %v381_v10 = vadd.f32 %v5295_v41, %v5294_v60  ;;  %v5297_v24 = vld [vmem:[#allocation39_spill] sm:$0xff] }
 0x3f9   :  { %v410_v7 = vadd.f32 %v5297_v24, %v5296_v51 }
 0x3fa   :  { %3360 = vtanh.f32 %v1948_v22 }
 0x400   :  { %v3361_v36 = vpop.eup %3360 }
 0x401   :  { %v1951_v33 = vmul.f32 %v3361_v36, %v1950_v31 }
 0x403   :  { %v4858_v16 = vadd.f32 %v1952_v13, %v1951_v33 }
 0x405   :  { %3130 = vst [vmem:[%s5109_s6 + $0x38] sm:$0xff] %v4858_v16  ;;  %v2074_v56 = vpack.c.bf16 %v4858_v16, %v4858_v16 }
 0x407   :  { %2083 = vmatmul.bf16.vlgmr.msrb.gmra.mxu1 %v2074_v56  ;;  %2096 = vmatmul.bf16.vlgmr.msra.gmra.mxu2 %v2074_v56 }
 0x408   :  { %2109 = vmatmul.bf16.vlgmr.msra.gmra.mxu3 %v2074_v56  ;;  %2309 = vmatpush.bf16.msrb.mxu1 %v4105_v28 }
 0x409   :  { %2402 = vmatpush.bf16.msra.mxu2 %v3725_v54  ;;  %2415 = vmatpush.bf16.msra.mxu3 %v3707_v47  ;;  %v5284_v47 = vld [vmem:[#allocation5_spill] sm:$0xff]  ;;  %v5285_v54 = vld [vmem:[#allocation14_spill] sm:$0xff] }
 0x40c   :  { %2310 = vmatpush.bf16.msrb.mxu1 %v4131_v44 }
 0x40d   :  { %2403 = vmatpush.bf16.msra.mxu2 %v3758_v2  ;;  %2416 = vmatpush.bf16.msra.mxu3 %v3738_v58  ;;  %v5286_v58 = vld [vmem:[#allocation8_spill] sm:$0xff]  ;;  %v5287_v2 = vld [vmem:[#allocation7_spill] sm:$0xff] }
 0x410   :  { %2311 = vmatpush.bf16.msrb.mxu1 %v4168_v3 }
 0x411   :  { %2404 = vmatpush.bf16.msra.mxu2 %v3770_v6  ;;  %2417 = vmatpush.bf16.msra.mxu3 %v3776_v9  ;;  %v5288_v6 = vld [vmem:[#allocation15_spill] sm:$0xff]  ;;  %v5289_v9 = vld [vmem:[#allocation9_spill] sm:$0xff] }
 0x414   :  { %2312 = vmatpush.bf16.msrb.mxu1 %v4181_v15 }
 0x415   :  { %2405 = vmatpush.bf16.msra.mxu2 %v3797_v17  ;;  %2418 = vmatpush.bf16.msra.mxu3 %v3805_v20  ;;  %v5291_v17 = vld [vmem:[#allocation16_spill] sm:$0xff]  ;;  %v5292_v20 = vld [vmem:[#allocation11_spill] sm:$0xff] }
 0x418   :  { %2313 = vmatpush.bf16.msrb.mxu1 %v5245_v23 }
 0x419   :  { %2406 = vmatpush.bf16.msra.mxu2 %v5246_v25  ;;  %2419 = vmatpush.bf16.msra.mxu3 %v5284_v47 }
 0x41c   :  { %2314 = vmatpush.bf16.msrb.mxu1 %v5285_v54 }
 0x41d   :  { %2407 = vmatpush.bf16.msra.mxu2 %v5286_v58  ;;  %2420 = vmatpush.bf16.msra.mxu3 %v5287_v2 }
 0x420   :  { %2315 = vmatpush.bf16.msrb.mxu1 %v5288_v6 }
 0x421   :  { %2408 = vmatpush.bf16.msra.mxu2 %v5289_v9  ;;  %2421 = vmatpush.bf16.msra.mxu3 %v5290_v40 }
 0x424   :  { %2316 = vmatpush.bf16.msrb.mxu1 %v5291_v17 }
 0x425   :  { %2409 = vmatpush.bf16.msra.mxu2 %v5292_v20  ;;  %2422 = vmatpush.bf16.msra.mxu3 %v5293_v61 }
 0x456   :  { %v2021_v25 = vpop.f32.mrf.mxu0 }
 0x45b   :  { %v1995_v8 = vpop.f32.mrf.mxu2  ;;  %v2008_v30 = vpop.f32.mrf.mxu3 }
 0x45c   :  { %v2025_v22 = vadd.f32 %v1995_v8, %v381_v10  ;;  %v2045_v46 = vadd.f32 %v2008_v30, %v410_v7 }
 0x45e   :  { %v3133_v42 = vmul.f32 -1.442695, %v2025_v22  ;;  %v3134_v0 = vmul.f32 -1.442695, %v2045_v46  ;;  %v2023_v31 = vpop.f32.mrf.mxu0  ;;  %v2065_v46 = vadd.f32 %v4733_v1, %v2021_v25 }
 0x460   :  { %3362 = vpow2.f32 %v3133_v42 }
 0x461   :  { %3364 = vpow2.f32 %v3134_v0 }
 0x463   :  { %v1997_v36 = vpop.f32.mrf.mxu2  ;;  %v2010_v33 = vpop.f32.mrf.mxu3 }
 0x464   :  { %v5298_v36 = vld [vmem:[#allocation27_spill] sm:$0xff]  ;;  %v5299_v33 = vld [vmem:[#allocation40_spill] sm:$0xff] }
 0x466   :  { %v3363_v13 = vpop.eup %3362 }
 0x467   :  { %v3365_v56 = vpop.eup %3364  ;;  %v2029_v47 = vadd.f32 1.0, %v3363_v13  ;;  %v439_v13 = vadd.f32 %v5299_v33, %v5298_v36 }
 0x468   :  { %v2049_v58 = vadd.f32 1.0, %v3365_v56 }
 0x469   :  { %3366 = vrcp.f32 %v2029_v47  ;;  %v2041_v41 = vand.u32 2147483648, %v2029_v47  ;;  %v2039_v7 = vand.u32 2147483647, %v2029_v47  ;;  %vm2035_vm1 = vweird.f32 %v2029_v47 }
 0x46a   :  { %3368 = vrcp.f32 %v2049_v58  ;;  %vm2055_vm5 = vweird.f32 %v2049_v58 }
 0x46b   :  { %v2042_v22 = vor.u32 1.1754944e-38, %v2041_v41  ;;  %vm2040_vm3 = vcmp.eq.f32.partialorder %v2039_v7, 8.507059e+37 }
 0x46f   :  { %v3367_v2 = vpop.eup %3366 }
 0x470   :  { %v3369_v9 = vpop.eup %3368  ;;  %v2031_v40 = vmul.f32 %v3367_v2, %v2029_v47  ;;  %vm2036_vm0 = vweird.f32 %v3367_v2 }
 0x471   :  { %v2051_v20 = vmul.f32 %v3369_v9, %v2049_v58  ;;  %vm2037_vm2 = vmor %vm2035_vm1, %vm2036_vm0  ;;  %vm2056_vm4 = vweird.f32 %v3369_v9 }
 0x472   :  { %v2032_v61 = vsub.f32 1.0, %v2031_v40  ;;  %v2061_v40 = vand.u32 2147483648, %v2049_v58  ;;  %vm2057_vm6 = vmor %vm2055_vm5, %vm2056_vm4 }
 0x473   :  { %v2052_v10 = vsub.f32 1.0, %v2051_v20  ;;  %v2059_v20 = vand.u32 2147483647, %v2049_v58 }
 0x474   :  { %v2033_v24 = vmul.f32 %v3367_v2, %v2032_v61  ;;  %v2062_v47 = vor.u32 1.1754944e-38, %v2061_v40 }
 0x475   :  { %v2053_v8 = vmul.f32 %v3369_v9, %v2052_v10  ;;  %vm2060_vm7 = vcmp.eq.f32.partialorder %v2059_v20, 8.507059e+37 }
 0x476   :  { %v2034_v30 = vadd.f32 %v3367_v2, %v2033_v24 }
 0x477   :  { %v2054_v31 = vadd.f32 %v3369_v9, %v2053_v8 }
 0x478   :  { %v2038_v42 = vsel %vm2037_vm2, %v3367_v2, %v2034_v30  ;;  %v5300_v30 = vld [vmem:[#allocation30_spill] sm:$0xff] }
 0x479   :  { %v2043_v0 = vsel %vm2040_vm3, %v2042_v22, %v2038_v42  ;;  %v2058_v10 = vsel %vm2057_vm6, %v3369_v9, %v2054_v31 }
 0x47a   :  { %v2066_v56 = vmul.f32 %v2065_v46, %v2043_v0  ;;  %v2063_v41 = vsel %vm2060_vm7, %v2062_v47, %v2058_v10  ;;  %v5301_v0 = vld [vmem:[#allocation55_spill] sm:$0xff] }
 0x47b   :  { %v2069_v25 = vsub.f32 1.0, %v2063_v41  ;;  %v2071_v8 = vmul.f32 %v2063_v41, %v4820_v53 }
 0x47c   :  { %v2067_v61 = vadd.f32 %v2066_v56, %v439_v13 }
 0x47e   :  { %3370 = vtanh.f32 %v2067_v61 }
 0x484   :  { %v3371_v2 = vpop.eup %3370  ;;  %v2084_v24 = vpop.f32.mrf.mxu1 }
 0x485   :  { %v2070_v7 = vmul.f32 %v3371_v2, %v2069_v25  ;;  %v2114_v22 = vadd.f32 %v2084_v24, %v5300_v30 }
 0x487   :  { %v4899_v42 = vadd.f32 %v2071_v8, %v2070_v7  ;;  %v3135_v46 = vmul.f32 -1.442695, %v2114_v22 }
 0x489   :  { %3137 = vst [vmem:[%s5109_s6 + $0x50] sm:$0xff] %v4899_v42  ;;  %v2193_v58 = vpack.c.bf16 %v4899_v42, %v4899_v42  ;;  %3372 = vpow2.f32 %v3135_v46 }
 0x48a   :  { %v2097_v9 = vpop.f32.mrf.mxu2 }
 0x48b   :  { %2202 = vmatmul.bf16.vlgmr.msra.gmra.mxu0 %v2193_v58  ;;  %2215 = vmatmul.bf16.vlgmr.msra.gmra.mxu1 %v2193_v58  ;;  %v2134_v53 = vadd.f32 %v2097_v9, %v5301_v0  ;;  %v2110_v31 = vpop.f32.mrf.mxu3  ;;  %v5303_v9 = vld [vmem:[#allocation42_spill] sm:$0xff] }
 0x48c   :  { %2228 = vmatmul.bf16.vlgmr.msrb.gmra.mxu2 %v2193_v58  ;;  %2428 = vmatpush.bf16.msra.mxu0 %v3937_v12  ;;  %v2086_v33 = vpop.f32.mrf.mxu1 }
 0x48d   :  { %2491 = vmatpush.bf16.msra.mxu1 %v3944_v14  ;;  %2504 = vmatpush.bf16.msrb.mxu2 %v3985_v32  ;;  %v3136_v13 = vmul.f32 -1.442695, %v2134_v53  ;;  %v3147_v14 = vld [vmem:[%s5106_s1 + $0x30] sm:$0xff] }
 0x48e   :  { %2378 = vperm.xlu1 %3258, %v3147_v14   ;;  %v5304_v53 = vld [vmem:[#allocation43_spill] sm:$0xff] }
 0x48f   :  { %v3373_v56 = vpop.eup %3372  ;;  %3374 = vpow2.f32 %v3136_v13 }
 0x490   :  { %2429 = vmatpush.bf16.msra.mxu0 %v3973_v27  ;;  %v2118_v40 = vadd.f32 1.0, %v3373_v56 }
 0x491   :  { %2492 = vmatpush.bf16.msra.mxu1 %v3957_v21  ;;  %2505 = vmatpush.bf16.msrb.mxu2 %v4012_v43  ;;  %v3148_v21 = vld [vmem:[%s5106_s1 + $0x8] sm:$0xff] }
 0x492   :  { %3376 = vrcp.f32 %v2118_v40  ;;  %v2099_v20 = vpop.f32.mrf.mxu2  ;;  %2388 = vperm.xlu0 %3257, %v3148_v21   ;;  %v2130_v43 = vand.u32 2147483648, %v2118_v40  ;;  %v2128_v10 = vand.u32 2147483647, %v2118_v40  ;;  %vm2124_vm9 = vweird.f32 %v2118_v40 }
 0x493   :  { %v2112_v61 = vpop.f32.mrf.mxu3 }
 0x494   :  { %2430 = vmatpush.bf16.msra.mxu0 %v3994_v35  ;;  %vm2129_vm11 = vcmp.eq.f32.partialorder %v2128_v10, 8.507059e+37 }
 0x495   :  { %2493 = vmatpush.bf16.msra.mxu1 %v3992_v34  ;;  %2506 = vmatpush.bf16.msrb.mxu2 %v4090_v19  ;;  %v3375_v12 = vpop.eup %3374 }
 0x496   :  { %v2138_v27 = vadd.f32 1.0, %v3375_v12 }
 0x498   :  { %2431 = vmatpush.bf16.msra.mxu0 %v4018_v45  ;;  %v3377_v32 = vpop.eup %3376  ;;  %3378 = vrcp.f32 %v2138_v27  ;;  %v2150_v2 = vand.u32 2147483648, %v2138_v27  ;;  %v2148_v7 = vand.u32 2147483647, %v2138_v27  ;;  %vm2144_vm13 = vweird.f32 %v2138_v27 }
 0x499   :  { %2494 = vmatpush.bf16.msra.mxu1 %v4021_v48  ;;  %2507 = vmatpush.bf16.msrb.mxu2 %v4119_v38  ;;  %v2120_v34 = vmul.f32 %v3377_v32, %v2118_v40  ;;  %vm2125_vm8 = vweird.f32 %v3377_v32  ;;  %v2131_v48 = vor.u32 1.1754944e-38, %v2130_v43 }
 0x49a   :  { %vm2126_vm10 = vmor %vm2124_vm9, %vm2125_vm8  ;;  %v2151_v30 = vor.u32 1.1754944e-38, %v2150_v2  ;;  %vm2149_vm15 = vcmp.eq.f32.partialorder %v2148_v7, 8.507059e+37 }
 0x49b   :  { %v2121_v35 = vsub.f32 1.0, %v2120_v34 }
 0x49c   :  { %2432 = vmatpush.bf16.msra.mxu0 %v4037_v55 }
 0x49d   :  { %2495 = vmatpush.bf16.msra.mxu1 %v4045_v59  ;;  %2508 = vmatpush.bf16.msrb.mxu2 %v4156_v63  ;;  %v2122_v19 = vmul.f32 %v3377_v32, %v2121_v35  ;;  %v2154_v59 = vadd.f32 %v4770_v18, %v2110_v31 }
 0x49e   :  { %v3379_v47 = vpop.eup %3378 }
 0x49f   :  { %v2140_v45 = vmul.f32 %v3379_v47, %v2138_v27  ;;  %v2123_v41 = vadd.f32 %v3377_v32, %v2122_v19  ;;  %vm2145_vm12 = vweird.f32 %v3379_v47 }
 0x4a0   :  { %2433 = vmatpush.bf16.msra.mxu0 %v4072_v4  ;;  %vm2146_vm14 = vmor %vm2144_vm13, %vm2145_vm12 }
 0x4a1   :  { %2496 = vmatpush.bf16.msra.mxu1 %v4056_v62  ;;  %2509 = vmatpush.bf16.msrb.mxu2 %v4178_v11  ;;  %v2141_v55 = vsub.f32 1.0, %v2140_v45  ;;  %v2127_v38 = vsel %vm2126_vm10, %v3377_v32, %v2123_v41  ;;  %v5302_v62 = vld [vmem:[#allocation56_spill] sm:$0xff] }
 0x4a2   :  { %v2132_v63 = vsel %vm2129_vm11, %v2131_v48, %v2127_v38  ;;  %v5305_v38 = vld [vmem:[#allocation44_spill] sm:$0xff] }
 0x4a3   :  { %v2142_v25 = vmul.f32 %v3379_v47, %v2141_v55  ;;  %v2155_v24 = vmul.f32 %v2154_v59, %v2132_v63 }
 0x4a4   :  { %2434 = vmatpush.bf16.msra.mxu0 %v4107_v29 }
 0x4a5   :  { %2497 = vmatpush.bf16.msra.mxu1 %v4103_v26  ;;  %2510 = vmatpush.bf16.msrb.mxu2 %v4212_v37  ;;  %v2156_v4 = vadd.f32 %v2155_v24, %v5302_v62  ;;  %v2143_v11 = vadd.f32 %v3379_v47, %v2142_v25  ;;  %v5306_v62 = vld [vmem:[#allocation53_spill] sm:$0xff] }
 0x4a7   :  { %3380 = vtanh.f32 %v2156_v4  ;;  %v2147_v8 = vsel %vm2146_vm14, %v3379_v47, %v2143_v11 }
 0x4a8   :  { %2435 = vmatpush.bf16.msra.mxu0 %v4134_v49  ;;  %v2152_v29 = vsel %vm2149_vm15, %v2151_v30, %v2147_v8 }
 0x4a9   :  { %2498 = vmatpush.bf16.msra.mxu1 %v4137_v50  ;;  %2511 = vmatpush.bf16.msrb.mxu2 %v4229_v52  ;;  %v2158_v22 = vsub.f32 1.0, %v2152_v29  ;;  %v2160_v37 = vmul.f32 %v2152_v29, %v4858_v16 }
 0x4ad   :  { %v3381_v26 = vpop.eup %3380 }
 0x4ae   :  { %v2159_v46 = vmul.f32 %v3381_v26, %v2158_v22 }
 0x4b0   :  { %v4941_v58 = vadd.f32 %v2160_v37, %v2159_v46  ;;  %v5307_v37 = vld [vmem:[#allocation24_spill] sm:$0xff] }
 0x4b2   :  { %3138 = vst [vmem:[%s5109_s6 + $0x28] sm:$0xff] %v4941_v58  ;;  %v2282_v49 = vpack.c.bf16 %v4941_v58, %v4941_v58 }
 0x4b4   :  { %2291 = vmatmul.bf16.vlgmr.msrb.gmra.mxu3 %v2282_v49  ;;  %2304 = vmatmul.bf16.vlgmr.msrb.gmra.mxu0 %v2282_v49 }
 0x4b5   :  { %2317 = vmatmul.bf16.vlgmr.msrb.gmra.mxu1 %v2282_v49  ;;  %2517 = vmatpush.bf16.msrb.mxu3 %v4105_v28 }
 0x4b9   :  { %2518 = vmatpush.bf16.msrb.mxu3 %v4131_v44 }
 0x4bd   :  { %2519 = vmatpush.bf16.msrb.mxu3 %v4168_v3 }
 0x4c1   :  { %2520 = vmatpush.bf16.msrb.mxu3 %v4181_v15 }
 0x4c5   :  { %2521 = vmatpush.bf16.msrb.mxu3 %v5245_v23 }
 0x4c9   :  { %2522 = vmatpush.bf16.msrb.mxu3 %v5285_v54 }
 0x4cd   :  { %2523 = vmatpush.bf16.msrb.mxu3 %v5288_v6 }
 0x4d1   :  { %2524 = vmatpush.bf16.msrb.mxu3 %v5291_v17 }
 0x508   :  { %v2203_v50 = vpop.f32.mrf.mxu0  ;;  %v2216_v52 = vpop.f32.mrf.mxu1 }
 0x509   :  { %v2233_v0 = vadd.f32 %v2203_v50, %v5303_v9  ;;  %v2253_v28 = vadd.f32 %v2216_v52, %v5304_v53 }
 0x50b   :  { %v3141_v31 = vmul.f32 -1.442695, %v2233_v0  ;;  %v3142_v44 = vmul.f32 -1.442695, %v2253_v28 }
 0x50d   :  { %3382 = vpow2.f32 %v3141_v31 }
 0x50e   :  { %3384 = vpow2.f32 %v3142_v44 }
 0x50f   :  { %v2229_v3 = vpop.f32.mrf.mxu2 }
 0x510   :  { %v2205_v15 = vpop.f32.mrf.mxu0  ;;  %v2218_v33 = vpop.f32.mrf.mxu1  ;;  %v2273_v10 = vadd.f32 %v4733_v1, %v2229_v3  ;;  %v487_v1 = vadd.f32 %v5306_v62, %v5278_v57  ;;  %v458_v57 = vadd.f32 %v5307_v37, %v5280_v39  ;;  %v3154_v39 = vld [vmem:[%s5106_s1 + $0x38] sm:$0xff]  ;;  %v5310_v62 = vld [vmem:[#allocation47_spill] sm:$0xff] }
 0x511   :  { %v2593_v33 = vld [vmem:[%s5106_s1] sm:$0xff]  ;;  %2586 = vperm.xlu0 %3257, %v3154_v39  }
 0x512   :  { %2596 = vperm.xlu2 %3259, %v2593_v33  }
 0x513   :  { %v3383_v23 = vpop.eup %3382 }
 0x514   :  { %v3385_v13 = vpop.eup %3384  ;;  %v2237_v54 = vadd.f32 1.0, %v3383_v23 }
 0x515   :  { %v2257_v56 = vadd.f32 1.0, %v3385_v13 }
 0x516   :  { %3386 = vrcp.f32 %v2237_v54  ;;  %v2249_v21 = vand.u32 2147483648, %v2237_v54  ;;  %v2247_v32 = vand.u32 2147483647, %v2237_v54  ;;  %vm2243_vm1 = vweird.f32 %v2237_v54 }
 0x517   :  { %3388 = vrcp.f32 %v2257_v56  ;;  %v2231_v6 = vpop.f32.mrf.mxu2  ;;  %v2269_v41 = vand.u32 2147483648, %v2257_v56  ;;  %vm2263_vm5 = vweird.f32 %v2257_v56  ;;  %v2267_v55 = vand.u32 2147483647, %v2257_v56 }
 0x518   :  { %v2250_v43 = vor.u32 1.1754944e-38, %v2249_v21  ;;  %vm2248_vm3 = vcmp.eq.f32.partialorder %v2247_v32, 8.507059e+37 }
 0x519   :  { %v2270_v25 = vor.u32 1.1754944e-38, %v2269_v41  ;;  %vm2268_vm7 = vcmp.eq.f32.partialorder %v2267_v55, 8.507059e+37 }
 0x51c   :  { %v3387_v17 = vpop.eup %3386 }
 0x51d   :  { %v3389_v40 = vpop.eup %3388  ;;  %v2239_v20 = vmul.f32 %v3387_v17, %v2237_v54  ;;  %vm2244_vm0 = vweird.f32 %v3387_v17 }
 0x51e   :  { %v2259_v61 = vmul.f32 %v3389_v40, %v2257_v56  ;;  %vm2245_vm2 = vmor %vm2243_vm1, %vm2244_vm0  ;;  %vm2264_vm4 = vweird.f32 %v3389_v40 }
 0x51f   :  { %v2240_v12 = vsub.f32 1.0, %v2239_v20  ;;  %vm2265_vm6 = vmor %vm2263_vm5, %vm2264_vm4 }
 0x520   :  { %v2260_v14 = vsub.f32 1.0, %v2259_v61 }
 0x521   :  { %v2241_v27 = vmul.f32 %v3387_v17, %v2240_v12 }
 0x522   :  { %v2261_v34 = vmul.f32 %v3389_v40, %v2260_v14 }
 0x523   :  { %v2242_v35 = vadd.f32 %v3387_v17, %v2241_v27 }
 0x524   :  { %v2262_v45 = vadd.f32 %v3389_v40, %v2261_v34 }
 0x525   :  { %v2246_v19 = vsel %vm2245_vm2, %v3387_v17, %v2242_v35  ;;  %v5308_v35 = vld [vmem:[#allocation54_spill] sm:$0xff] }
 0x526   :  { %v2251_v47 = vsel %vm2248_vm3, %v2250_v43, %v2246_v19  ;;  %v2266_v63 = vsel %vm2265_vm6, %v3389_v40, %v2262_v45  ;;  %v516_v43 = vadd.f32 %v5308_v35, %v5282_v5 }
 0x527   :  { %v2274_v48 = vmul.f32 %v2273_v10, %v2251_v47  ;;  %v2271_v2 = vsel %vm2268_vm7, %v2270_v25, %v2266_v63 }
 0x528   :  { %v2277_v24 = vsub.f32 1.0, %v2271_v2  ;;  %v2279_v8 = vmul.f32 %v2271_v2, %v4899_v42 }
 0x529   :  { %v2275_v59 = vadd.f32 %v2274_v48, %v5305_v38 }
 0x52b   :  { %3390 = vtanh.f32 %v2275_v59 }
 0x531   :  { %v3391_v7 = vpop.eup %3390  ;;  %v2305_v4 = vpop.f32.mrf.mxu0 }
 0x532   :  { %v2278_v11 = vmul.f32 %v3391_v7, %v2277_v24  ;;  %v2342_v30 = vadd.f32 %v2305_v4, %v487_v1  ;;  %v2318_v29 = vpop.f32.mrf.mxu1  ;;  %v5309_v24 = vld [vmem:[#allocation45_spill] sm:$0xff]  ;;  %v415_v1 = vadd.f32 %v5310_v62, %v5296_v51  ;;  %v1540_v62 = vpop.permute.xlu2 %1539 }
 0x533   :  { %v2362_v21 = vadd.f32 %v4770_v18, %v2318_v29  ;;  %v386_v7 = vadd.f32 %v5309_v24, %v5294_v60 }
 0x534   :  { %v4964_v22 = vadd.f32 %v2279_v8, %v2278_v11  ;;  %v3144_v26 = vmul.f32 -1.442695, %v2342_v30 }
 0x536   :  { %3145 = vst [vmem:[%s5109_s6 + $0x60] sm:$0xff] %v4964_v22  ;;  %v2401_v46 = vpack.c.bf16 %v4964_v22, %v4964_v22  ;;  %3392 = vpow2.f32 %v3144_v26 }
 0x537   :  { %v2292_v49 = vpop.f32.mrf.mxu3 }
 0x538   :  { %2410 = vmatmul.bf16.vlgmr.msra.gmra.mxu2 %v2401_v46  ;;  %2423 = vmatmul.bf16.vlgmr.msra.gmra.mxu3 %v2401_v46  ;;  %v2322_v50 = vadd.f32 %v2292_v49, %v458_v57 }
 0x539   :  { %2436 = vmatmul.bf16.vlgmr.msra.gmra.mxu0 %v2401_v46  ;;  %v2307_v52 = vpop.f32.mrf.mxu0 }
 0x53a   :  { %v3143_v9 = vmul.f32 -1.442695, %v2322_v50  ;;  %v2320_v0 = vpop.f32.mrf.mxu1 }
 0x53c   :  { %v3393_v53 = vpop.eup %3392  ;;  %3394 = vpow2.f32 %v3143_v9 }
 0x53d   :  { %v2346_v28 = vadd.f32 1.0, %v3393_v53 }
 0x53f   :  { %v2294_v31 = vpop.f32.mrf.mxu3  ;;  %3396 = vrcp.f32 %v2346_v28  ;;  %v2358_v19 = vand.u32 2147483648, %v2346_v28  ;;  %vm2352_vm13 = vweird.f32 %v2346_v28  ;;  %v2356_v47 = vand.u32 2147483647, %v2346_v28 }
 0x541   :  { %v2359_v48 = vor.u32 1.1754944e-38, %v2358_v19  ;;  %vm2357_vm15 = vcmp.eq.f32.partialorder %v2356_v47, 8.507059e+37  ;;  %v1111_v19 = vpop.permute.xlu0 %1110 }
 0x542   :  { %v3395_v44 = vpop.eup %3394 }
 0x543   :  { %v2326_v3 = vadd.f32 1.0, %v3395_v44 }
 0x545   :  { %3398 = vrcp.f32 %v2326_v3  ;;  %v3397_v15 = vpop.eup %3396  ;;  %v2338_v17 = vand.u32 2147483648, %v2326_v3  ;;  %v2336_v20 = vand.u32 2147483647, %v2326_v3  ;;  %vm2332_vm9 = vweird.f32 %v2326_v3 }
 0x546   :  { %v2348_v23 = vmul.f32 %v3397_v15, %v2346_v28  ;;  %vm2353_vm12 = vweird.f32 %v3397_v15 }
 0x547   :  { %v2339_v14 = vor.u32 1.1754944e-38, %v2338_v17  ;;  %vm2337_vm11 = vcmp.eq.f32.partialorder %v2336_v20, 8.507059e+37  ;;  %vm2354_vm14 = vmor %vm2352_vm13, %vm2353_vm12 }
 0x548   :  { %v2349_v56 = vsub.f32 1.0, %v2348_v23 }
 0x54a   :  { %v2350_v61 = vmul.f32 %v3397_v15, %v2349_v56 }
 0x54b   :  { %v3399_v13 = vpop.eup %3398 }
 0x54c   :  { %v2328_v54 = vmul.f32 %v3399_v13, %v2326_v3  ;;  %vm2333_vm8 = vweird.f32 %v3399_v13  ;;  %v2351_v34 = vadd.f32 %v3397_v15, %v2350_v61 }
 0x54d   :  { %vm2334_vm10 = vmor %vm2332_vm9, %vm2333_vm8 }
 0x54e   :  { %v2329_v6 = vsub.f32 1.0, %v2328_v54  ;;  %v2355_v41 = vsel %vm2354_vm14, %v3397_v15, %v2351_v34 }
 0x54f   :  { %v2360_v55 = vsel %vm2357_vm15, %v2359_v48, %v2355_v41  ;;  %v5312_v41 = vld [vmem:[#allocation19_spill] sm:$0xff] }
 0x550   :  { %v2330_v40 = vmul.f32 %v3399_v13, %v2329_v6  ;;  %v2366_v18 = vsub.f32 1.0, %v2360_v55  ;;  %v2368_v63 = vmul.f32 %v2360_v55, %v4941_v58 }
 0x552   :  { %v2331_v12 = vadd.f32 %v3399_v13, %v2330_v40  ;;  %v5311_v40 = vld [vmem:[#allocation50_spill] sm:$0xff] }
 0x553   :  { %v444_v20 = vadd.f32 %v5311_v40, %v5298_v36 }
 0x554   :  { %v2335_v27 = vsel %vm2334_vm10, %v3399_v13, %v2331_v12  ;;  %v3424_v13 = vld [vmem:[%s5107_s5] ss:$0 sm:$0xff] }
 0x555   :  { %v2340_v32 = vsel %vm2337_vm11, %v2339_v14, %v2335_v27 }
 0x556   :  { %v2363_v10 = vmul.f32 %v2362_v21, %v2340_v32 }
 0x558   :  { %v2364_v45 = vadd.f32 %v2363_v10, %v516_v43 }
 0x55a   :  { %3400 = vtanh.f32 %v2364_v45 }
 0x560   :  { %v3401_v38 = vpop.eup %3400 }
 0x561   :  { %v2367_v59 = vmul.f32 %v3401_v38, %v2366_v18  ;;  %v1326_v18 = vpop.permute.xlu1 %1325 }
 0x563   :  { %v4984_v25 = vadd.f32 %v2368_v63, %v2367_v59  ;;  %v1123_v59 = vpop.permute.xlu0 %1122  ;;  %v5313_v63 = vld [vmem:[#allocation51_spill] sm:$0xff] }
 0x565   :  { %3146 = vst [vmem:[%s5109_s6 + $0x18] sm:$0xff] %v4984_v25  ;;  %v2490_v5 = vpack.c.bf16 %v4984_v25, %v4984_v25 }
 0x567   :  { %2499 = vmatmul.bf16.vlgmr.msra.gmra.mxu1 %v2490_v5  ;;  %2512 = vmatmul.bf16.vlgmr.msrb.gmra.mxu2 %v2490_v5 }
 0x568   :  { %2525 = vmatmul.bf16.vlgmr.msrb.gmra.mxu3 %v2490_v5 }
 0x5b6   :  { %v2437_v2 = vpop.f32.mrf.mxu0 }
 0x5b7   :  { %v2481_v54 = vadd.f32 %v3424_v13, %v2437_v2 }
 0x5bb   :  { %v2411_v4 = vpop.f32.mrf.mxu2  ;;  %v2424_v11 = vpop.f32.mrf.mxu3 }
 0x5bc   :  { %v2441_v8 = vadd.f32 %v2411_v4, %v386_v7  ;;  %v2461_v30 = vadd.f32 %v2424_v11, %v415_v1  ;;  %v1337_v11 = vpop.permute.xlu1 %1336 }
 0x5be   :  { %v3149_v29 = vmul.f32 -1.442695, %v2441_v8  ;;  %v3150_v26 = vmul.f32 -1.442695, %v2461_v30  ;;  %v2439_v46 = vpop.f32.mrf.mxu0  ;;  %v1754_v30 = vpop.permute.xlu0 %1753 }
 0x5bf   :  { %v1551_v46 = vpop.permute.xlu2 %1550 }
 0x5c0   :  { %3402 = vpow2.f32 %v3149_v29 }
 0x5c1   :  { %3404 = vpow2.f32 %v3150_v26 }
 0x5c3   :  { %v2413_v37 = vpop.f32.mrf.mxu2  ;;  %v2426_v57 = vpop.f32.mrf.mxu3 }
 0x5c6   :  { %v3403_v49 = vpop.eup %3402 }
 0x5c7   :  { %v3405_v50 = vpop.eup %3404  ;;  %v2445_v52 = vadd.f32 1.0, %v3403_v49  ;;  %v1765_v49 = vpop.permute.xlu1 %1764 }
 0x5c8   :  { %v2465_v9 = vadd.f32 1.0, %v3405_v50 }
 0x5c9   :  { %3406 = vrcp.f32 %v2445_v52  ;;  %v2457_v31 = vand.u32 2147483648, %v2445_v52  ;;  %v2455_v15 = vand.u32 2147483647, %v2445_v52  ;;  %vm2451_vm1 = vweird.f32 %v2445_v52 }
 0x5ca   :  { %3408 = vrcp.f32 %v2465_v9  ;;  %v2477_v61 = vand.u32 2147483648, %v2465_v9  ;;  %vm2471_vm5 = vweird.f32 %v2465_v9  ;;  %v2475_v14 = vand.u32 2147483647, %v2465_v9 }
 0x5cb   :  { %v2458_v23 = vor.u32 1.1754944e-38, %v2457_v31  ;;  %vm2456_vm3 = vcmp.eq.f32.partialorder %v2455_v15, 8.507059e+37 }
 0x5cc   :  { %v2478_v32 = vor.u32 1.1754944e-38, %v2477_v61  ;;  %vm2476_vm7 = vcmp.eq.f32.partialorder %v2475_v14, 8.507059e+37 }
 0x5cf   :  { %v3407_v60 = vpop.eup %3406 }
 0x5d0   :  { %v3409_v0 = vpop.eup %3408  ;;  %v2447_v51 = vmul.f32 %v3407_v60, %v2445_v52  ;;  %vm2452_vm0 = vweird.f32 %v3407_v60  ;;  %v1963_v52 = vpop.permute.xlu0 %1962 }
 0x5d1   :  { %v2467_v53 = vmul.f32 %v3409_v0, %v2465_v9  ;;  %vm2453_vm2 = vmor %vm2451_vm1, %vm2452_vm0  ;;  %vm2472_vm4 = vweird.f32 %v3409_v0  ;;  %vm2611_vm1 = vcmask 1040384  }
 0x5d2   :  { %v2448_v28 = vsub.f32 1.0, %v2447_v51  ;;  %vm2473_vm6 = vmor %vm2471_vm5, %vm2472_vm4  ;;  %vm2616_vm4 = vcmask 1042434   ;;  %vm2619_vm5 = vcmask 1043459  }
 0x5d3   :  { %v2468_v44 = vsub.f32 1.0, %v2467_v53 }
 0x5d4   :  { %v2449_v3 = vmul.f32 %v3407_v60, %v2448_v28  ;;  %v3425_v28 = vld [vmem:[%s5109_s6] sm:$0xff] }
 0x5d5   :  { %v2469_v39 = vmul.f32 %v3409_v0, %v2468_v44  ;;  %v1113_v31 = vadd.f32 %v3425_v28, %v1111_v19  ;;  %v1973_v44 = vpop.permute.xlu2 %1972 }
 0x5d6   :  { %v2450_v33 = vadd.f32 %v3407_v60, %v2449_v3 }
 0x5d7   :  { %v2470_v17 = vadd.f32 %v3409_v0, %v2469_v39  ;;  %v3426_v39 = vld [vmem:[%s5109_s6 + $0x78] sm:$0xff]  ;;  %v1114_v61 = vmax.f32 %v1113_v31, -1e+30 }
 0x5d8   :  { %v2454_v56 = vsel %vm2453_vm2, %v3407_v60, %v2450_v33  ;;  %v1125_v33 = vadd.f32 %v3426_v39, %v1123_v59 }
 0x5d9   :  { %v2459_v6 = vsel %vm2456_vm3, %v2458_v23, %v2454_v56  ;;  %v2474_v27 = vsel %vm2473_vm6, %v3409_v0, %v2470_v17  ;;  %v3427_v23 = vld [vmem:[%s5109_s6 + $0x10] sm:$0xff]  ;;  %v2181_v56 = vpop.permute.xlu1 %2180  ;;  %v3428_v17 = vld [vmem:[%s5107_s5 + $0x1] ss:$0 sm:$0xff]  ;;  %vm2613_vm3 = vcmask 1041409   ;;  %vm2622_vm6 = vcmask 1044484  }
 0x5da   :  { %v2482_v12 = vmul.f32 %v2481_v54, %v2459_v6  ;;  %v2479_v34 = vsel %vm2476_vm7, %v2478_v32, %v2474_v27  ;;  %v1328_v13 = vadd.f32 %v3427_v23, %v1326_v18 }
 0x5db   :  { %v2485_v35 = vsub.f32 1.0, %v2479_v34  ;;  %v2487_v45 = vmul.f32 %v2479_v34, %v4964_v22  ;;  %v2389_v34 = vpop.permute.xlu0 %2388 }
 0x5dc   :  { %v2483_v21 = vadd.f32 %v2482_v12, %v444_v20  ;;  %v3429_v12 = vld [vmem:[%s5109_s6 + $0x68] sm:$0xff]  ;;  %v2391_v31 = vadd.f32 %v2389_v34, %v4984_v25 }
 0x5dd   :  { %v1339_v14 = vadd.f32 %v3429_v12, %v1337_v11 }
 0x5de   :  { %3410 = vtanh.f32 %v2483_v21  ;;  %v3430_v21 = vld [vmem:[%s5109_s6 + $0x20] sm:$0xff] }
 0x5df   :  { %v1542_v27 = vadd.f32 %v3430_v21, %v1540_v62  ;;  %v2171_v62 = vpop.permute.xlu2 %2170 }
 0x5e4   :  { %v3411_v43 = vpop.eup %3410  ;;  %v2500_v10 = vpop.f32.mrf.mxu1 }
 0x5e5   :  { %v2486_v47 = vmul.f32 %v3411_v43, %v2485_v35  ;;  %v2530_v36 = vadd.f32 %v2500_v10, %v5312_v41  ;;  %v1126_v10 = vmax.f32 %v1125_v33, -1e+30 }
 0x5e7   :  { %v5003_v48 = vadd.f32 %v2487_v45, %v2486_v47  ;;  %v3151_v55 = vmul.f32 -1.442695, %v2530_v36  ;;  %v1329_v47 = vmax.f32 %v1114_v61, %v1328_v13  ;;  %v3431_v45 = vld [vmem:[%s5109_s6 + $0x58] sm:$0xff]  ;;  %v2597_v33 = vpop.permute.xlu2 %2596 }
 0x5e8   :  { %v1553_v41 = vadd.f32 %v3431_v45, %v1551_v46  ;;  %v2173_v46 = vadd.f32 %v2171_v62, %v4899_v42 }
 0x5e9   :  { %3153 = vst [vmem:[%s5109_s6 + $0x70] sm:$0xff] %v5003_v48  ;;  %3412 = vpow2.f32 %v3151_v55  ;;  %v3432_v55 = vld [vmem:[%s5109_s6 + $0x30] sm:$0xff] }
 0x5ea   :  { %v2513_v38 = vpop.f32.mrf.mxu2  ;;  %v1756_v18 = vadd.f32 %v3432_v55, %v1754_v30 }
 0x5eb   :  { %v2550_v5 = vadd.f32 %v2513_v38, %v5313_v63  ;;  %v2526_v2 = vpop.f32.mrf.mxu3  ;;  %v5314_v38 = vld [vmem:[#allocation52_spill] sm:$0xff] }
 0x5ec   :  { %v2502_v24 = vpop.f32.mrf.mxu1  ;;  %v2570_v40 = vadd.f32 %v3428_v17, %v2526_v2  ;;  %v1543_v2 = vmax.f32 %v1329_v47, %v1542_v27 }
 0x5ed   :  { %v3152_v7 = vmul.f32 -1.442695, %v2550_v5  ;;  %v1340_v5 = vmax.f32 %v1126_v10, %v1339_v14  ;;  %v3433_v24 = vld [vmem:[%s5109_s6 + $0x48] sm:$0xff] }
 0x5ef   :  { %v3413_v1 = vpop.eup %3412  ;;  %3414 = vpow2.f32 %v3152_v7  ;;  %v1767_v7 = vadd.f32 %v3433_v24, %v1765_v49  ;;  %v1554_v30 = vmax.f32 %v1340_v5, %v1553_v41 }
 0x5f0   :  { %v2534_v4 = vadd.f32 1.0, %v3413_v1  ;;  %v3434_v1 = vld [vmem:[%s5109_s6 + $0x40] sm:$0xff] }
 0x5f1   :  { %v1768_v49 = vmax.f32 %v1554_v30, %v1767_v7 }
 0x5f2   :  { %3416 = vrcp.f32 %v2534_v4  ;;  %v2515_v8 = vpop.f32.mrf.mxu2  ;;  %v2546_v60 = vand.u32 2147483648, %v2534_v4  ;;  %v2544_v51 = vand.u32 2147483647, %v2534_v4  ;;  %vm2540_vm9 = vweird.f32 %v2534_v4 }
 0x5f3   :  { %v2528_v29 = vpop.f32.mrf.mxu3 }
 0x5f4   :  { %v2547_v54 = vor.u32 1.1754944e-38, %v2546_v60  ;;  %vm2545_vm11 = vcmp.eq.f32.partialorder %v2544_v51, 8.507059e+37  ;;  %v1757_v29 = vmax.f32 %v1543_v2, %v1756_v18  ;;  %v2183_v60 = vadd.f32 %v2181_v56, %v4941_v58 }
 0x5f5   :  { %v3415_v26 = vpop.eup %3414 }
 0x5f6   :  { %v5010_v37 = vadd.f32 1.0, %v3415_v26  ;;  %v1975_v26 = vadd.f32 %v1973_v44, %v4858_v16 }
 0x5f8   :  { %v3417_v57 = vpop.eup %3416  ;;  %3418 = vrcp.f32 %v5010_v37  ;;  %v2566_v19 = vand.u32 2147483648, %v5010_v37  ;;  %v2564_v36 = vand.u32 2147483647, %v5010_v37  ;;  %vm2560_vm13 = vweird.f32 %v5010_v37 }
 0x5f9   :  { %v2536_v50 = vmul.f32 %v3417_v57, %v2534_v4  ;;  %vm2541_vm8 = vweird.f32 %v3417_v57  ;;  %v1965_v4 = vadd.f32 %v3434_v1, %v1963_v52 }
 0x5fa   :  { %vm2542_vm10 = vmor %vm2540_vm9, %vm2541_vm8  ;;  %v2567_v8 = vor.u32 1.1754944e-38, %v2566_v19  ;;  %vm2565_vm15 = vcmp.eq.f32.partialorder %v2564_v36, 8.507059e+37  ;;  %vm2625_vm8 = vcmask 1045509   ;;  %vm2628_vm9 = vcmask 1046534  }
 0x5fb   :  { %v2537_v9 = vsub.f32 1.0, %v2536_v50  ;;  %v1966_v50 = vmax.f32 %v1757_v29, %v1965_v4 }
 0x5fd   :  { %v2538_v0 = vmul.f32 %v3417_v57, %v2537_v9  ;;  %v2587_v9 = vpop.permute.xlu0 %2586  ;;  %v2174_v28 = vmax.f32 %v1966_v50, %v2173_v46 }
 0x5fe   :  { %v3419_v53 = vpop.eup %3418 }
 0x5ff   :  { %v2556_v3 = vmul.f32 %v3419_v53, %v5010_v37  ;;  %v2539_v15 = vadd.f32 %v3417_v57, %v2538_v0  ;;  %vm2561_vm12 = vweird.f32 %v3419_v53  ;;  %v2379_v37 = vpop.permute.xlu1 %2378 }
 0x600   :  { %vm2562_vm14 = vmor %vm2560_vm13, %vm2561_vm12  ;;  %v2381_v0 = vadd.f32 %v2379_v37, %v4964_v22  ;;  %v2642_v22 = vlaneseq }
 0x601   :  { %v2543_v6 = vsel %vm2542_vm10, %v3417_v57, %v2539_v15  ;;  %v2557_v20 = vsub.f32 1.0, %v2556_v3  ;;  %v2589_v3 = vadd.f32 %v2587_v9, %v5003_v48  ;;  %vm2631_vm10 = vcmask 1046528  }
 0x602   :  { %v2548_v32 = vsel %vm2545_vm11, %v2547_v54, %v2543_v6  ;;  %v2382_v15 = vmax.f32 %v2174_v28, %v2381_v0  ;;  %vm5059_vm7 = vcmp.lt.s32.totalorder %v2642_v22, 256 }
 0x603   :  { %v2571_v35 = vmul.f32 %v2570_v40, %v2548_v32  ;;  %v2558_v43 = vmul.f32 %v3419_v53, %v2557_v20 }
 0x604   :  { %v2590_v13 = vmax.f32 %v2382_v15, %v2589_v3 }
 0x605   :  { %v2572_v59 = vadd.f32 %v2571_v35, %v5314_v38  ;;  %v2559_v63 = vadd.f32 %v3419_v53, %v2558_v43 }
 0x606   :  { %vm2604_vm0 = vcmp.gt.f32.partialorder %v2590_v13, -1e+20 }
 0x607   :  { %3420 = vtanh.f32 %v2572_v59  ;;  %v2563_v11 = vsel %vm2562_vm14, %v3419_v53, %v2559_v63  ;;  %v1976_v53 = vmax.f32 %v1768_v49, %v1975_v26  ;;  %v2606_v6 = vsel %vm2604_vm0, %v2590_v13, 0.0 }
 0x608   :  { %v2568_v57 = vsel %vm2565_vm15, %v2567_v8, %v2563_v11 }
 0x609   :  { %v2574_v52 = vsub.f32 1.0, %v2568_v57  ;;  %v2576_v42 = vmul.f32 %v2568_v57, %v4984_v25  ;;  %v2184_v44 = vmax.f32 %v1976_v53, %v2183_v60 }
 0x60b   :  { %v2392_v23 = vmax.f32 %v2184_v44, %v2391_v31 }
 0x60d   :  { %v3421_v51 = vpop.eup %3420 }
 0x60e   :  { %v2575_v16 = vmul.f32 %v3421_v51, %v2574_v52 }
 0x610   :  { %v2577_v39 = vadd.f32 %v2576_v42, %v2575_v16 }
 0x612   :  { %2581 = vst [vmem:[%s5109_s6 + $0x8] sm:$0xff] %v2577_v39  ;;  %v2599_v58 = vadd.f32 %v2597_v33, %v2577_v39 }
 0x614   :  { %v2600_v54 = vmax.f32 %v2392_v23, %v2599_v58 }
 0x616   :  { %vm2605_vm2 = vcmp.gt.f32.partialorder %v2600_v54, -1e+20 }
 0x617   :  { %v2607_v25 = vsel %vm2605_vm2, %v2600_v54, 0.0 }
 0x618   :  { %v2610_v56 = vrot.slane %v2607_v25, 7 }
 0x61a   :  { %v2612_v17 = vsel %vm2611_vm1, %v2606_v6, %v2610_v56  ;;  %v2614_v40 = vsel %vm2613_vm3, %v2606_v6, %v2610_v56  ;;  %v2617_v20 = vsel %vm2616_vm4, %v2606_v6, %v2610_v56  ;;  %v2620_v61 = vsel %vm2619_vm5, %v2606_v6, %v2610_v56 }
 0x61b   :  { %v2615_v12 = vrot.slane %v2614_v40, 1  ;;  %v2618_v14 = vrot.slane %v2617_v20, 2  ;;  %v2621_v21 = vrot.slane %v2620_v61, 3  ;;  %v2623_v27 = vsel %vm2622_vm6, %v2606_v6, %v2610_v56  ;;  %2646 = vst.msk [vmem:[%s5110_s7] sm:$0x3] %vm5059_vm7, %v2612_v17 }
 0x61c   :  { %v2624_v32 = vrot.slane %v2623_v27, 4  ;;  %v2626_v34 = vsel %vm2625_vm8, %v2606_v6, %v2610_v56  ;;  %v2629_v35 = vsel %vm2628_vm9, %v2606_v6, %v2610_v56  ;;  %v2632_v43 = vsel %vm2631_vm10, %v2610_v56, %v2606_v6 }
 0x61d   :  { %v2627_v19 = vrot.slane %v2626_v34, 5  ;;  %2647 = vst.msk [vmem:[%s5110_s7 + $0x2] sm:$0x3] %vm5059_vm7, %v2615_v12  ;;  %v2630_v10 = vrot.slane %v2629_v35, 6  ;;  %v2633_v47 = vrot.slane %v2632_v43, 7 }
 0x61e   :  { %2648 = vst.msk [vmem:[%s5110_s7 + $0x4] sm:$0x3] %vm5059_vm7, %v2618_v14 }
 0x61f   :  { %2649 = vst.msk [vmem:[%s5110_s7 + $0x6] sm:$0x3] %vm5059_vm7, %v2621_v21 }
 0x620   :  { %2650 = vst.msk [vmem:[%s5110_s7 + $0x8] sm:$0x3] %vm5059_vm7, %v2624_v32 }
 0x621   :  { %2651 = vst.msk [vmem:[%s5110_s7 + $0xa] sm:$0x3] %vm5059_vm7, %v2627_v19 }
 0x622   :  { %2652 = vst.msk [vmem:[%s5110_s7 + $0xc] sm:$0x3] %vm5059_vm7, %v2630_v10 }
 0x623   :  { %2653 = vst.msk [vmem:[%s5110_s7 + $0xe] sm:$0x3] %vm5059_vm7, %v2633_v47 }

</bundles_post_ra>
